<compile_context>
chip_gen: v5e
topology: v5e:2x2
jax: 0.10.0
libtpu: 0.0.40
codegen_flags: <defaults>
</compile_context>

<pallas_src>
import functools

import numpy as np
import jax
import jax.numpy as jnp
from jax.experimental import pallas as pl
from jax.experimental.pallas import tpu as pltpu

IN_DIM = 3
NUM_FREQ = 10
OUT_DIM = IN_DIM * (1 + 2 * NUM_FREQ)          # 63
PACK = 2                                       # points packed per lane row
PIN = IN_DIM * PACK                            # 6
POUT = OUT_DIM * PACK                          # 126
FREQS = (2.0 ** np.linspace(0.0, NUM_FREQ - 1, NUM_FREQ)).astype(np.float32)  # [1..512]


def _round_up(a, b):
    return ((a + b - 1) // b) * b


def _build_tables_np():
    """Per-output-column constants for one 63-wide point, then packed x2."""
    col_freq = np.ones((OUT_DIM,), np.float32)           # identity cols keep freq 1
    phase = np.zeros((OUT_DIM,), np.float32)             # 0 -> sin, pi/2 -> cos
    is_input = np.zeros((OUT_DIM,), np.float32)
    is_input[:IN_DIM] = 1.0
    for i, f in enumerate(FREQS):
        base = IN_DIM + 2 * IN_DIM * i
        col_freq[base:base + IN_DIM] = f                              # sin block
        col_freq[base + IN_DIM:base + 2 * IN_DIM] = f                 # cos block
        phase[base + IN_DIM:base + 2 * IN_DIM] = np.float32(np.pi / 2)
    # selection * frequency matrix for one point: theta[:, c] = x[:, c % 3] * col_freq[c]
    fsel = np.zeros((IN_DIM, OUT_DIM), np.float32)
    for c in range(OUT_DIM):
        fsel[c % IN_DIM, c] = col_freq[c]
    # two points per packed row -> block-diagonal (6, 126); tables tiled to (1, 126)
    fsel2 = np.zeros((PIN, POUT), np.float32)
    fsel2[:IN_DIM, :OUT_DIM] = fsel
    fsel2[IN_DIM:, OUT_DIM:] = fsel
    phase2 = np.tile(phase, PACK).reshape(1, POUT)
    is_input2 = np.tile(is_input, PACK).reshape(1, POUT)
    return fsel2, phase2, is_input2


_FSEL2_NP, _PHASE2_NP, _IS_INPUT2_NP = _build_tables_np()


@functools.lru_cache(maxsize=1)
def _device_tables():
    return (jnp.asarray(_FSEL2_NP),
            jnp.asarray(_PHASE2_NP),
            jnp.asarray(_IS_INPUT2_NP))


def pe_kernel(x_ref, fsel_ref, phase_ref, is_input_ref, o_ref):
    x = x_ref[...]                                                   # (T, 6)
    # Replicate each coordinate into its 21 output columns and scale by the
    # (power-of-two) frequency in one tiny MXU matmul: (T, 6) @ (6, 126).
    theta = jnp.dot(x, fsel_ref[...], preferred_element_type=jnp.float32)   # (T, 126)
    # cos(t) = sin(t + pi/2): one sin evaluation covers both periodic fns.
    trig = jnp.sin(theta + phase_ref[...])
    # Identity columns have freq == 1, so theta already equals x there.
    o_ref[...] = jnp.where(is_input_ref[...] > 0.5, theta, trig)


def pe_forward(x, *, tile_rows=2048):
    """Positional-encode x of shape (..., 3) -> (..., 63).

    tile_rows = packed rows (2 points each) per grid step.
    """
    orig_shape = x.shape
    assert orig_shape[-1] == IN_DIM, f"last dim must be {IN_DIM}"
    x2 = x.reshape(-1, IN_DIM).astype(jnp.float32)
    n = x2.shape[0]

    n_packed = -(-n // PACK)                               # ceil(n / 2)
    tile = min(tile_rows, _round_up(max(n_packed, 1), 8))  # multiple of 8 sublanes
    n_packed_pad = _round_up(n_packed, tile)
    n_rows_pad = n_packed_pad * PACK
    if n_rows_pad != n:
        x2 = jnp.pad(x2, ((0, n_rows_pad - n), (0, 0)))
    xp = x2.reshape(n_packed_pad, PIN)                     # 2 points per row

    fsel2, phase2, is_input2 = _device_tables()
    const = lambda i: (0, 0)

    out = pl.pallas_call(
        pe_kernel,
        out_shape=jax.ShapeDtypeStruct((n_packed_pad, POUT), jnp.float32),
        grid=(n_packed_pad // tile,),
        in_specs=[
            pl.BlockSpec((tile, PIN), lambda i: (i, 0)),   # packed points
            pl.BlockSpec((PIN, POUT), const),              # selection * freq matrix
            pl.BlockSpec((1, POUT), const),                # phase table (0 / pi/2)
            pl.BlockSpec((1, POUT), const),                # is_input mask
        ],
        out_specs=pl.BlockSpec((tile, POUT), lambda i: (i, 0)),
        compiler_params=pltpu.CompilerParams(
            dimension_semantics=("parallel",)),
    )(xp, fsel2, phase2, is_input2)

    # (n_packed_pad, 126) is byte-identical to (2*n_packed_pad, 63) row-major.
    out = out.reshape(n_rows_pad, OUT_DIM)[:n]
    return out.reshape(*orig_shape[:-1], OUT_DIM)


def pe_ref(x):
    """Pure-JAX reference matching the torch PE.forward ordering exactly."""
    outs = [x]
    for f in FREQS:
        outs.append(jnp.sin(x * f))
        outs.append(jnp.cos(x * f))
    return jnp.concatenate(outs, axis=-1)


if __name__ == "__main__":
    key = jax.random.PRNGKey(0)
    x = jax.random.uniform(key, (4, 64, IN_DIM), jnp.float32, minval=-1.0, maxval=1.0)

    y = jax.block_until_ready(pe_forward(x))
    assert y.shape == (4, 64, OUT_DIM) and y.dtype == jnp.float32

    y_ref = pe_ref(x)
    assert bool(jnp.isfinite(y).all())
    max_err = float(jnp.max(jnp.abs(y - y_ref)))
    assert max_err < 1e-3, f"max abs error vs reference: {max_err}"
    print("KERNEL_OK")
</pallas_src>

<mosaic_0001>
module attributes {stable_mosaic.version = 11 : i64} {
  func.func @pe_kernel(%arg0: i32, %arg1: memref<128x6xf32, #tpu.memory_space<vmem>>, %arg2: memref<6x126xf32, #tpu.memory_space<vmem>>, %arg3: memref<1x126xf32, #tpu.memory_space<vmem>>, %arg4: memref<1x126xf32, #tpu.memory_space<vmem>>, %arg5: memref<128x126xf32, #tpu.memory_space<vmem>>) attributes {dimension_semantics = [#tpu.dimension_semantics<parallel>], iteration_bounds = array<i64: 1>, scalar_prefetch = 0 : i64, scratch_operands = 0 : i64, tpu.core_type = #tpu.core_type<tc>, window_params = [{transform_indices = @transform_0, window_bounds = array<i64: 128, 6>}, {pipeline_mode = #tpu.pipeline_mode<synchronous>, transform_indices = @transform_1, window_bounds = array<i64: 6, 126>}, {pipeline_mode = #tpu.pipeline_mode<synchronous>, transform_indices = @transform_2, window_bounds = array<i64: 1, 126>}, {pipeline_mode = #tpu.pipeline_mode<synchronous>, transform_indices = @transform_3, window_bounds = array<i64: 1, 126>}, {transform_indices = @transform_4, window_bounds = array<i64: 128, 126>}]} {
    %c0 = arith.constant 0 : index
    %c0_0 = arith.constant 0 : index
    %0 = vector.load %arg1[%c0, %c0_0] : memref<128x6xf32, #tpu.memory_space<vmem>>, vector<128x6xf32>
    %c0_1 = arith.constant 0 : index
    %c0_2 = arith.constant 0 : index
    %1 = vector.load %arg2[%c0_1, %c0_2] : memref<6x126xf32, #tpu.memory_space<vmem>>, vector<6x126xf32>
    %cst = arith.constant dense<0.000000e+00> : vector<128x126xf32>
    %2 = tpu.matmul %0, %1, %cst {dimension_numbers = #tpu.dot_dimension_numbers<[1], [0], [0], [1], [0, 0, 1, 1], [], []>} : vector<128x6xf32>, vector<6x126xf32>, vector<128x126xf32> -> vector<128x126xf32>
    %c0_3 = arith.constant 0 : index
    %c0_4 = arith.constant 0 : index
    %3 = vector.load %arg3[%c0_3, %c0_4] : memref<1x126xf32, #tpu.memory_space<vmem>>, vector<1x126xf32>
    %4 = vector.broadcast %3 : vector<1x126xf32> to vector<128x126xf32>
    %5 = arith.addf %2, %4 : vector<128x126xf32>
    %6 = math.sin %5 : vector<128x126xf32>
    %c0_5 = arith.constant 0 : index
    %c0_6 = arith.constant 0 : index
    %7 = vector.load %arg4[%c0_5, %c0_6] : memref<1x126xf32, #tpu.memory_space<vmem>>, vector<1x126xf32>
    %cst_7 = arith.constant 5.000000e-01 : f32
    %8 = vector.broadcast %cst_7 : f32 to vector<1x126xf32>
    %9 = arith.cmpf ogt, %7, %8 : vector<1x126xf32>
    %10 = vector.shape_cast %9 : vector<1x126xi1> to vector<1x126xi1>
    %11 = vector.broadcast %10 : vector<1x126xi1> to vector<128x126xi1>
    %12 = arith.select %11, %2, %6 : vector<128x126xi1>, vector<128x126xf32>
    %c0_8 = arith.constant 0 : index
    %c0_9 = arith.constant 0 : index
    %13 = vector.load %arg5[%c0_8, %c0_9] : memref<128x126xf32, #tpu.memory_space<vmem>>, vector<128x126xf32>
    tpu.vector_store %arg5[%c0_8, %c0_9], %12 {strides = array<i32>} : memref<128x126xf32, #tpu.memory_space<vmem>>, vector<128x126xf32>,
    return
  }
  func.func @transform_0(%arg0: i32) -> (i32, i32) {
    %c0_i32 = arith.constant 0 : i32
    %c0_i32_0 = arith.constant 0 : i32
    return %arg0, %c0_i32 : i32, i32
  }
  func.func @transform_1(%arg0: i32) -> (i32, i32) {
    %c0_i32 = arith.constant 0 : i32
    %c0_i32_0 = arith.constant 0 : i32
    %c0_i32_1 = arith.constant 0 : i32
    return %c0_i32, %c0_i32_0 : i32, i32
  }
  func.func @transform_2(%arg0: i32) -> (i32, i32) {
    %c0_i32 = arith.constant 0 : i32
    %c0_i32_0 = arith.constant 0 : i32
    %c0_i32_1 = arith.constant 0 : i32
    return %c0_i32, %c0_i32_0 : i32, i32
  }
  func.func @transform_3(%arg0: i32) -> (i32, i32) {
    %c0_i32 = arith.constant 0 : i32
    %c0_i32_0 = arith.constant 0 : i32
    %c0_i32_1 = arith.constant 0 : i32
    return %c0_i32, %c0_i32_0 : i32, i32
  }
  func.func @transform_4(%arg0: i32) -> (i32, i32) {
    %c0_i32 = arith.constant 0 : i32
    %c0_i32_0 = arith.constant 0 : i32
    return %arg0, %c0_i32 : i32, i32
  }
}

</mosaic_0001>

<bundles_post_ra>
// kernel: tpu_custom_call.1
= control target key start
LH: loop header
LB: loop body
LE: loop exit
PB: predicated region body
PF: predicated region fallthrough
CT: control target
= control target key end

     0   :  { %9 = vsyncpa [#allocation3], 0  ;;  %vm84_vm0 = vcmask 1045504   ;;  %vm35_vm1 = vcmask 48128   ;;  %v5614_v33 = vmov 683565275   ;;  %s5603_s0 = inlined_call_operand.vmem [shape: f32[128,6], index: 0, kind: input, shape index: {}]   ;;  %s5604_s1 = inlined_call_operand.vmem [shape: f32[6,126], index: 1, kind: input, shape index: {}]   ;;  %s5605_s2 = inlined_call_operand.vmem [shape: f32[1,126], index: 2, kind: input, shape index: {}]   ;;  %s5606_s3 = inlined_call_operand.vmem [shape: f32[1,126], index: 3, kind: input, shape index: {}]   ;;  %s5607_s4 = inlined_call_operand.hbm [shape: f32[128,126], index: 4, kind: output, shape index: {}]  }
   0x1   :  { %v18_v0 = vld [vmem:[%s5603_s0] sm:$0xff]  ;;  %v19_v5 = vld [vmem:[%s5603_s0 + $0x8] sm:$0xff]  ;;  %v20_v9 = vld [vmem:[%s5603_s0 + $0x10] sm:$0xff]  ;;  %v5616_v35 = vmov 2475754826   ;;  %s2697_s28 = sshll.u32 %s5607_s4, 4  ;;  %s2698_s28 = int_to_ptr.hbm [resolvable:$true] %s2697_s28 }
   0x2   :  { %v22_v1 = vld [vmem:[%s5603_s0 + $0x20] sm:$0xff]  ;;  %v23_v6 = vld [vmem:[%s5603_s0 + $0x28] sm:$0xff]  ;;  %v24_v10 = vld [vmem:[%s5603_s0 + $0x30] sm:$0xff]  ;;  %v5620_v37 = vmov 2131351028   ;;  %s2823_s29 = smov 128  }
   0x3   :  { %v34_v2 = vld [vmem:[%s5604_s1] sm:$0x3f]  ;;  %v27_v7 = vld [vmem:[%s5603_s0 + $0x48] sm:$0xff]  ;;  %v28_v11 = vld [vmem:[%s5603_s0 + $0x50] sm:$0xff]  ;;  %v5622_v39 = vmov 2102212464  }
   0x4   :  { %v26_v3 = vld [vmem:[%s5603_s0 + $0x40] sm:$0xff]  ;;  %2709 = vmatpush.msk.msra.mxu0 %vm84_vm0, %v34_v2  ;;  %2774 = vmatpush.msk.msra.mxu1 %vm84_vm0, %v34_v2  ;;  %v31_v8 = vld [vmem:[%s5603_s0 + $0x68] sm:$0xff]  ;;  %v32_v12 = vld [vmem:[%s5603_s0 + $0x70] sm:$0xff]  ;;  %v5624_v41 = vmov 920167782   ;;  %s2824_s30 = smov 8  }
   0x5   :  { %v30_v4 = vld [vmem:[%s5603_s0 + $0x60] sm:$0xff]  ;;  %2775 = vmatpush.msk.msra.mxu2 %vm84_vm0, %v34_v2  ;;  %2776 = vmatpush.msk.msra.mxu3 %vm84_vm0, %v34_v2  ;;  %v21_v13 = vld [vmem:[%s5603_s0 + $0x18] sm:$0xff]  ;;  %v5618_v49 = vmov 1326507024  }
   0x6   :  { %2710 = vmatmul.msk.f32.vlgmr.msra.gmra.mxu0 %vm35_vm1, %v18_v0  ;;  %2714 = vmatmul.msk.f32.vlgmr.msra.gmra.mxu1 %vm35_vm1, %v22_v1  ;;  %v25_v14 = vld [vmem:[%s5603_s0 + $0x38] sm:$0xff]  ;;  %v2920_v17 = vld [vmem:[%s5605_s2] ss:$0 sm:$0xff] }
   0x7   :  { %2718 = vmatmul.msk.f32.vlgmr.msra.gmra.mxu2 %vm35_vm1, %v26_v3  ;;  %2722 = vmatmul.msk.f32.vlgmr.msra.gmra.mxu3 %vm35_vm1, %v30_v4  ;;  %v29_v15 = vld [vmem:[%s5603_s0 + $0x58] sm:$0xff] }
   0x8   :  { %v33_v16 = vld [vmem:[%s5603_s0 + $0x78] sm:$0xff] }
   0xe   :  { %2711 = vmatmul.msk.f32.gmra.mxu0 %vm35_vm1, %v19_v5  ;;  %2715 = vmatmul.msk.f32.gmra.mxu1 %vm35_vm1, %v23_v6 }
   0xf   :  { %2719 = vmatmul.msk.f32.gmra.mxu2 %vm35_vm1, %v27_v7  ;;  %2723 = vmatmul.msk.f32.gmra.mxu3 %vm35_vm1, %v31_v8 }
  0x16   :  { %2712 = vmatmul.msk.f32.gmra.mxu0 %vm35_vm1, %v20_v9  ;;  %2716 = vmatmul.msk.f32.gmra.mxu1 %vm35_vm1, %v24_v10 }
  0x17   :  { %2720 = vmatmul.msk.f32.gmra.mxu2 %vm35_vm1, %v28_v11  ;;  %2724 = vmatmul.msk.f32.gmra.mxu3 %vm35_vm1, %v32_v12 }
  0x1e   :  { %2713 = vmatmul.msk.f32.gmra.mxu0 %vm35_vm1, %v21_v13  ;;  %2717 = vmatmul.msk.f32.gmra.mxu1 %vm35_vm1, %v25_v14 }
  0x1f   :  { %2721 = vmatmul.msk.f32.gmra.mxu2 %vm35_vm1, %v29_v15  ;;  %2725 = vmatmul.msk.f32.gmra.mxu3 %vm35_vm1, %v33_v16 }
  0x83   :  { %v2922_v18 = vpop.f32.mrf.mxu0 }
  0x84   :  { %5682 = vst [vmem:[#allocation5_spill] sm:$0xff] %v2922_v18  ;;  %v2926_v19 = vadd.f32 %v2920_v17, %v2922_v18 }
  0x86   :  { %v176_v20 = vand.u32 2139095040, %v2926_v19  ;;  %v173_v25 = vand.u32 2147483647, %v2926_v19 }
  0x88   :  { %v177_v21 = vshrl.u32 %v176_v20, 23  ;;  %v180_v28 = vand.u32 8388607, %v173_v25 }
  0x8a   :  { %v2726_v22 = vadd.s32 4294967169, %v177_v21  ;;  %v181_v43 = vor.u32 8388608, %v180_v28 }
  0x8b   :  { %v2929_v23 = vpop.f32.mrf.mxu0 }
  0x8c   :  { %5683 = vst [vmem:[#allocation6_spill] sm:$0xff] %v2929_v23  ;;  %v2933_v24 = vadd.f32 %v2920_v17, %v2929_v23  ;;  %v183_v26 = vadd.s32 1, %v2726_v22  ;;  %v2973_v59 = vshll.u32 %v181_v43, 8 }
  0x8e   :  { %5684 = vst [vmem:[#allocation7_spill] sm:$0xff] %v2933_v24  ;;  %vm184_vm2 = vcmp.gt.s32.totalorder %v183_v26, 0  ;;  %v331_v30 = vand.u32 2139095040, %v2933_v24  ;;  %v222_v4 = vand.u32 65535, %v2973_v59  ;;  %v223_v5 = vshrl.u32 %v2973_v59, 16 }
  0x8f   :  { %v185_v27 = vsel %vm184_vm2, %v183_v26, 0 }
  0x90   :  { %v187_v29 = vand.u32 31, %v185_v27  ;;  %v2939_v31 = vshrl.u32 %v185_v27, 5  ;;  %v332_v45 = vshrl.u32 %v331_v30, 23 }
  0x92   :  { %v2941_v32 = vsub.s32 32, %v187_v29  ;;  %v190_v34 = vshll.u32 %v5614_v33, %v187_v29  ;;  %v193_v36 = vshll.u32 %v5616_v35, %v187_v29  ;;  %v196_v38 = vshll.u32 %v5620_v37, %v187_v29 }
  0x93   :  { %v199_v40 = vshll.u32 %v5622_v39, %v187_v29  ;;  %v202_v42 = vshll.u32 %v5624_v41, %v187_v29  ;;  %vm205_vm3 = vcmp.lt.s32.totalorder %v2939_v31, 1  ;;  %vm207_vm4 = vcmp.lt.s32.totalorder %v2939_v31, 3 }
  0x94   :  { %v191_v44 = vshrl.u32 %v5616_v35, %v2941_v32  ;;  %v194_v46 = vshrl.u32 %v5620_v37, %v2941_v32  ;;  %v197_v47 = vshrl.u32 %v5622_v39, %v2941_v32  ;;  %v200_v48 = vshrl.u32 %v5624_v41, %v2941_v32 }
  0x95   :  { %v203_v50 = vshrl.u32 %v5618_v49, %v2941_v32  ;;  %vm208_vm5 = vcmp.lt.s32.totalorder %v2939_v31, 4  ;;  %v2729_v56 = vadd.s32 4294967169, %v332_v45  ;;  %vm206_vm6 = vcmp.lt.s32.totalorder %v2939_v31, 2 }
  0x96   :  { %v2958_v51 = vor.u32 %v191_v44, %v190_v34  ;;  %v2962_v52 = vor.u32 %v194_v46, %v193_v36  ;;  %v2964_v53 = vor.u32 %v197_v47, %v196_v38  ;;  %v201_v54 = vor.u32 %v200_v48, %v199_v40 }
  0x97   :  { %v204_v55 = vor.u32 %v203_v50, %v202_v42  ;;  %v338_v2 = vadd.s32 1, %v2729_v56  ;;  %v5611_v29 = vmov 0   ;;  %v5610_v48 = vand.u32 2147483647, %v2933_v24 }
  0x98   :  { %v213_v57 = vsel %vm205_vm3, %v2958_v51, %v2962_v52  ;;  %v214_v58 = vsel %vm208_vm5, %v201_v54, 920167782  ;;  %v217_v61 = vsel %vm205_vm3, %v2962_v52, %v2964_v53 }
  0x99   :  { %v215_v60 = vsel %vm207_vm4, %v2964_v53, %v214_v58  ;;  %v218_v62 = vsel %vm208_vm5, %v204_v55, 1326507024  ;;  %vm339_vm7 = vcmp.gt.s32.totalorder %v338_v2, 0 }
  0x9a   :  { %v216_v63 = vsel %vm206_vm6, %v213_v57, %v215_v60  ;;  %v219_v0 = vsel %vm207_vm4, %v201_v54, %v218_v62  ;;  %v340_v26 = vsel %vm339_vm7, %v338_v2, 0 }
  0x9b   :  { %v246_v1 = vand.u32 65535, %v216_v63  ;;  %v220_v3 = vsel %vm206_vm6, %v217_v61, %v219_v0  ;;  %v247_v6 = vshrl.u32 %v216_v63, 16  ;;  %v342_v40 = vand.u32 31, %v340_v26 }
  0x9c   :  { %v224_v7 = vand.u32 65535, %v220_v3  ;;  %v225_v8 = vshrl.u32 %v220_v3, 16  ;;  %v3004_v50 = vshrl.u32 %v340_v26, 5 }
  0x9d   :  { %v249_v9 = vmul.u32 %v247_v6, %v222_v4  ;;  %v2993_v10 = vmul.u32 %v246_v1, %v223_v5  ;;  %v248_v13 = vmul.u32 %v246_v1, %v222_v4  ;;  %v251_v20 = vmul.u32 %v247_v6, %v223_v5 }
  0x9e   :  { %v227_v11 = vmul.u32 %v225_v8, %v222_v4  ;;  %v228_v12 = vmul.u32 %v224_v7, %v223_v5  ;;  %v226_v15 = vmul.u32 %v224_v7, %v222_v4  ;;  %v229_v34 = vmul.u32 %v225_v8, %v223_v5 }
  0x9f   :  { %v252_v14 = vshll.u32 %v249_v9, 16  ;;  %v254_v21 = vshll.u32 %v2993_v10, 16  ;;  %v3000_v45 = vsub.s32 32, %v342_v40  ;;  %v357_v46 = vshll.u32 %v5624_v41, %v342_v40 }
  0xa0   :  { %v230_v16 = vshll.u32 %v227_v11, 16  ;;  %v232_v27 = vshll.u32 %v228_v12, 16  ;;  %v354_v54 = vshll.u32 %v5622_v39, %v342_v40  ;;  %v253_v56 = vshrl.u32 %v249_v9, 16 }
  0xa1   :  { %vm256_vm8 = vc.u32 %v248_v13, %v252_v14  ;;  %v258_v22 = vadd.s32 %v252_v14, %v248_v13  ;;  %v355_v57 = vshrl.u32 %v5624_v41, %v3000_v45  ;;  %v358_v58 = vshrl.u32 %v5618_v49, %v3000_v45 }
  0xa2   :  { %vm234_vm9 = vc.u32 %v226_v15, %v230_v16  ;;  %v236_v28 = vadd.s32 %v230_v16, %v226_v15  ;;  %v257_v30 = vsel %vm256_vm8, 1, %v5611_v29  ;;  %v348_v60 = vshll.u32 %v5616_v35, %v342_v40 }
  0xa3   :  { %v235_v36 = vsel %vm234_vm9, 1, %v5611_v29  ;;  %vm260_vm10 = vc.u32 %v258_v22, %v254_v21  ;;  %v259_v38 = vadd.s32 %v257_v30, %v251_v20  ;;  %v349_v61 = vshrl.u32 %v5620_v37, %v3000_v45 }
  0xa4   :  { %vm238_vm11 = vc.u32 %v236_v28, %v232_v27  ;;  %v237_v42 = vadd.s32 %v235_v36, %v229_v34  ;;  %v261_v43 = vsel %vm260_vm10, 1, %v5611_v29  ;;  %v351_v62 = vshll.u32 %v5620_v37, %v342_v40 }
  0xa5   :  { %v239_v44 = vsel %vm238_vm11, 1, %v5611_v29  ;;  %v263_v47 = vadd.s32 %v261_v43, %v259_v38  ;;  %v352_v63 = vshrl.u32 %v5622_v39, %v3000_v45  ;;  %v231_v0 = vshrl.u32 %v227_v11, 16 }
  0xa6   :  { %v241_v55 = vadd.s32 %v239_v44, %v237_v42  ;;  %v345_v1 = vshll.u32 %v5614_v33, %v342_v40  ;;  %v346_v2 = vshrl.u32 %v5616_v35, %v3000_v45  ;;  %v359_v3 = vor.u32 %v358_v58, %v357_v46  ;;  %v3075_v42 = vpop.f32.mrf.mxu0 }
  0xa7   :  { %v264_v4 = vadd.s32 %v263_v47, %v253_v56  ;;  %v356_v5 = vor.u32 %v355_v57, %v354_v54  ;;  %vm363_vm12 = vcmp.lt.s32.totalorder %v3004_v50, 4  ;;  %v189_v6 = vshrl.u32 %v5614_v33, %v2941_v32  ;;  %5685 = vst [vmem:[#allocation8_spill] sm:$0xff] %v3075_v42 }
  0xa8   :  { %v242_v7 = vadd.s32 %v241_v55, %v231_v0  ;;  %v335_v8 = vand.u32 8388607, %v5610_v48  ;;  %v233_v9 = vshrl.u32 %v228_v12, 16  ;;  %v255_v11 = vshrl.u32 %v2993_v10, 16 }
  0xa9   :  { %v3026_v13 = vor.u32 %v349_v61, %v348_v60  ;;  %v3028_v14 = vor.u32 %v352_v63, %v351_v62  ;;  %v3030_v15 = vor.u32 %v346_v2, %v345_v1  ;;  %vm360_vm13 = vcmp.lt.s32.totalorder %v3004_v50, 1 }
  0xaa   :  { %vm362_vm14 = vcmp.lt.s32.totalorder %v3004_v50, 3  ;;  %v373_v32 = vsel %vm363_vm12, %v359_v3, 1326507024  ;;  %v210_v16 = vsel %vm208_vm5, %v2964_v53, 2102212464  ;;  %v265_v12 = vadd.s32 %v264_v4, %v255_v11 }
  0xab   :  { %v369_v10 = vsel %vm363_vm12, %v356_v5, 920167782  ;;  %v3041_v20 = vadd.s32 %v242_v7, %v233_v9  ;;  %v209_v26 = vsel %vm205_vm3, %v189_v6, %v2958_v51  ;;  %v336_v27 = vor.u32 8388608, %v335_v8 }
  0xac   :  { %v372_v28 = vsel %vm360_vm13, %v3026_v13, %v3028_v14  ;;  %v374_v30 = vsel %vm362_vm14, %v356_v5, %v373_v32  ;;  %v211_v53 = vsel %vm207_vm4, %v2962_v52, %v210_v16  ;;  %v3055_v34 = vadd.s32 %v258_v22, %v254_v21 }
  0xad   :  { %v368_v51 = vsel %vm360_vm13, %v3030_v15, %v3026_v13  ;;  %v370_v36 = vsel %vm362_vm14, %v3028_v14, %v369_v10  ;;  %v269_v38 = vadd.s32 1, %v265_v12  ;;  %vm361_vm15 = vcmp.lt.s32.totalorder %v3004_v50, 2 }
  0xae   :  { %vm268_vm0 = vc.u32 %v3041_v20, %v3055_v34  ;;  %v375_v52 = vsel %vm361_vm15, %v372_v28, %v374_v30  ;;  %v212_v21 = vsel %vm206_vm6, %v209_v26, %v211_v53  ;;  %v371_v22 = vsel %vm361_vm15, %v368_v51, %v370_v36 }
  0xaf   :  { %v3073_v40 = vshll.u32 %v336_v27, 8  ;;  %v270_v43 = vsel %vm268_vm0, %v269_v38, %v265_v12  ;;  %v380_v44 = vshrl.u32 %v375_v52, 16  ;;  %v266_v46 = vmul.u32 %v2973_v59, %v212_v21 }
  0xb0   :  { %v402_v47 = vshrl.u32 %v371_v22, 16  ;;  %v3080_v54 = vadd.f32 %v2920_v17, %v3075_v42  ;;  %v379_v58 = vand.u32 65535, %v375_v52  ;;  %v401_v62 = vand.u32 65535, %v371_v22 }
  0xb1   :  { %v377_v55 = vand.u32 65535, %v3073_v40  ;;  %v271_v31 = vadd.s32 %v270_v43, %v266_v46  ;;  %v378_v63 = vshrl.u32 %v3073_v40, 16 }
  0xb2   :  { %v486_v60 = vand.u32 2139095040, %v3080_v54  ;;  %v5609_v51 = vand.u32 2147483647, %v3080_v54 }
  0xb3   :  { %v3083_v56 = vmul.u32 %v380_v44, %v377_v55  ;;  %v3085_v57 = vmul.u32 %v402_v47, %v377_v55  ;;  %v272_v61 = vadd.s32 536870912, %v271_v31  ;;  %v381_v2 = vmul.u32 %v379_v58, %v377_v55 }
  0xb4   :  { %v487_v0 = vshrl.u32 %v486_v60, 23  ;;  %v3091_v3 = vmul.u32 %v379_v58, %v378_v63  ;;  %v403_v6 = vmul.u32 %v401_v62, %v377_v55  ;;  %v3095_v7 = vmul.u32 %v401_v62, %v378_v63 }
  0xb5   :  { %v385_v59 = vshll.u32 %v3083_v56, 16  ;;  %v407_v1 = vshll.u32 %v3085_v57, 16  ;;  %v3093_v5 = vshrl.u32 %v272_v61, 30  ;;  %v384_v30 = vmul.u32 %v380_v44, %v378_v63 }
  0xb6   :  { %v2732_v4 = vadd.s32 4294967169, %v487_v0  ;;  %v387_v32 = vshll.u32 %v3091_v3, 16  ;;  %v409_v12 = vshll.u32 %v3095_v7, 16  ;;  %v406_v53 = vmul.u32 %v402_v47, %v378_v63 }
  0xb7   :  { %v391_v8 = vadd.s32 %v385_v59, %v381_v2  ;;  %vm389_vm1 = vc.u32 %v381_v2, %v385_v59  ;;  %vm411_vm2 = vc.u32 %v403_v6, %v407_v1  ;;  %v3097_v11 = vadd.s32 %v407_v1, %v403_v6  ;;  %v3133_v6 = vpop.f32.mrf.mxu0 }
  0xb8   :  { %v493_v9 = vadd.s32 1, %v2732_v4  ;;  %v274_v16 = vshll.u32 %v3093_v5, 30  ;;  %v390_v26 = vsel %vm389_vm1, 1, %v5611_v29  ;;  %v412_v27 = vsel %vm411_vm2, 1, %v5611_v29  ;;  %5686 = vst [vmem:[#allocation9_spill] sm:$0xff] %v3133_v6 }
  0xb9   :  { %vm393_vm4 = vc.u32 %v391_v8, %v387_v32  ;;  %vm415_vm5 = vc.u32 %v3097_v11, %v409_v12  ;;  %v392_v52 = vadd.s32 %v390_v26, %v384_v30  ;;  %v414_v22 = vadd.s32 %v412_v27, %v406_v53 }
  0xba   :  { %vm494_vm3 = vcmp.gt.s32.totalorder %v493_v9, 0  ;;  %v3110_v38 = vsub.s32 %v271_v31, %v274_v16  ;;  %v394_v21 = vsel %vm393_vm4, 1, %v5611_v29  ;;  %v416_v43 = vsel %vm415_vm5, 1, %v5611_v29 }
  0xbb   :  { %v495_v10 = vsel %vm494_vm3, %v493_v9, 0  ;;  %v418_v0 = vadd.s32 %v416_v43, %v414_v22  ;;  %v490_v1 = vand.u32 8388607, %v5609_v51  ;;  %v396_v2 = vadd.s32 %v394_v21, %v392_v52 }
  0xbc   :  { %v497_v28 = vand.u32 31, %v495_v10  ;;  %v3114_v46 = vshrl.u32 %v495_v10, 5  ;;  %v277_v8 = vsub.s32 0, %v3110_v38  ;;  %v386_v9 = vshrl.u32 %v3083_v56, 16 }
  0xbd   :  { %v408_v32 = vshrl.u32 %v3085_v57, 16  ;;  %v491_v30 = vor.u32 8388608, %v490_v1  ;;  %v3149_v56 = vadd.f32 %v2920_v17, %v3133_v6  ;;  %vm276_vm9 = vcmp.lt.s32.totalorder %v3110_v38, 0 }
  0xbe   :  { %v3108_v36 = vsub.s32 32, %v497_v28  ;;  %v500_v44 = vshll.u32 %v5614_v33, %v497_v28  ;;  %v509_v47 = vshll.u32 %v5622_v39, %v497_v28  ;;  %v503_v55 = vshll.u32 %v5616_v35, %v497_v28 }
  0xbf   :  { %v506_v58 = vshll.u32 %v5620_v37, %v497_v28  ;;  %v512_v60 = vshll.u32 %v5624_v41, %v497_v28  ;;  %vm518_vm6 = vcmp.lt.s32.totalorder %v3114_v46, 4  ;;  %v419_v28 = vadd.s32 %v418_v0, %v408_v32  ;;  %5687 = vst [vmem:[#allocation10_spill] sm:$0xff] %v3149_v56 }
  0xc0   :  { %v510_v31 = vshrl.u32 %v5624_v41, %v3108_v36  ;;  %v501_v61 = vshrl.u32 %v5616_v35, %v3108_v36  ;;  %v504_v62 = vshrl.u32 %v5620_v37, %v3108_v36  ;;  %v507_v63 = vshrl.u32 %v5622_v39, %v3108_v36 }
  0xc1   :  { %v513_v59 = vshrl.u32 %v5618_v49, %v3108_v36  ;;  %vm515_vm7 = vcmp.lt.s32.totalorder %v3114_v46, 1  ;;  %vm517_vm8 = vcmp.lt.s32.totalorder %v3114_v46, 3  ;;  %v397_v57 = vadd.s32 %v396_v2, %v386_v9 }
  0xc2   :  { %v511_v4 = vor.u32 %v510_v31, %v509_v47  ;;  %v3139_v16 = vor.u32 %v501_v61, %v500_v44  ;;  %v3141_v10 = vor.u32 %v504_v62, %v503_v55  ;;  %v3143_v26 = vor.u32 %v507_v63, %v506_v58 }
  0xc3   :  { %v514_v27 = vor.u32 %v513_v59, %v512_v60  ;;  %v344_v52 = vshrl.u32 %v5614_v33, %v3000_v45  ;;  %v365_v21 = vsel %vm363_vm12, %v3028_v14, 2102212464  ;;  %v388_v22 = vshrl.u32 %v3091_v3, 16 }
  0xc4   :  { %v524_v53 = vsel %vm518_vm6, %v511_v4, 920167782  ;;  %v410_v43 = vshrl.u32 %v3095_v7, 16  ;;  %v523_v44 = vsel %vm515_vm7, %v3139_v16, %v3141_v10  ;;  %v527_v45 = vsel %vm515_vm7, %v3141_v10, %v3143_v26 }
  0xc5   :  { %v525_v47 = vsel %vm517_vm8, %v3143_v26, %v524_v53  ;;  %v528_v14 = vsel %vm518_vm6, %v514_v27, 1326507024  ;;  %v278_v3 = vsel %vm276_vm9, %v277_v8, %v3110_v38  ;;  %v3177_v31 = vshll.u32 %v491_v30, 8 }
  0xc6   :  { %v420_v55 = vadd.s32 %v419_v28, %v410_v43  ;;  %v529_v58 = vsel %vm517_vm8, %v511_v4, %v528_v14  ;;  %v3179_v60 = vadd.s32 %v397_v57, %v388_v22  ;;  %vm516_vm10 = vcmp.lt.s32.totalorder %v3114_v46, 2 }
  0xc7   :  { %v364_v61 = vsel %vm360_vm13, %v344_v52, %v3030_v15  ;;  %v526_v62 = vsel %vm516_vm10, %v523_v44, %v525_v47  ;;  %v530_v63 = vsel %vm516_vm10, %v527_v45, %v529_v58  ;;  %v279_v59 = vclz %v278_v3 }
  0xc8   :  { %v366_v0 = vsel %vm362_vm14, %v3026_v13, %v365_v21  ;;  %v3195_v1 = vadd.s32 %v3097_v11, %v409_v12  ;;  %v535_v2 = vshrl.u32 %v530_v63, 16  ;;  %v424_v4 = vadd.s32 1, %v420_v55 }
  0xc9   :  { %v532_v15 = vand.u32 65535, %v3177_v31  ;;  %v641_v8 = vand.u32 2139095040, %v3149_v56  ;;  %v557_v9 = vshrl.u32 %v526_v62, 16  ;;  %v367_v32 = vsel %vm361_vm15, %v364_v61, %v366_v0 }
  0xca   :  { %vm423_vm11 = vc.u32 %v3179_v60, %v3195_v1  ;;  %v2727_v13 = vadd.s32 4294967294, %v279_v59  ;;  %v556_v7 = vand.u32 65535, %v526_v62  ;;  %v534_v11 = vand.u32 65535, %v530_v63 }
  0xcb   :  { %v3203_v27 = vmul.u32 %v535_v2, %v532_v15  ;;  %v425_v28 = vsel %vm423_vm11, %v424_v4, %v420_v55  ;;  %v642_v12 = vshrl.u32 %v641_v8, 23  ;;  %v421_v30 = vmul.u32 %v3073_v40, %v367_v32 }
  0xcc   :  { %v533_v57 = vshrl.u32 %v3177_v31, 16  ;;  %v559_v53 = vmul.u32 %v557_v9, %v532_v15  ;;  %vm2728_vm12 = vcmp.lt.s32.totalorder %v2727_v13, 0  ;;  %v536_v50 = vmul.u32 %v534_v11, %v532_v15 }
  0xcd   :  { %v540_v52 = vshll.u32 %v3203_v27, 16  ;;  %v426_v21 = vadd.s32 %v425_v28, %v421_v30  ;;  %v2735_v44 = vadd.s32 4294967169, %v642_v12  ;;  %v558_v47 = vmul.u32 %v556_v7, %v532_v15 }
  0xce   :  { %v3208_v22 = vmul.u32 %v556_v7, %v533_v57  ;;  %v3210_v43 = vmul.u32 %v534_v11, %v533_v57  ;;  %v562_v45 = vshll.u32 %v559_v53, 16  ;;  %v3212_v14 = vsel %vm2728_vm12, 0, %v2727_v13 }
  0xcf   :  { %vm544_vm13 = vc.u32 %v536_v50, %v540_v52  ;;  %v546_v3 = vadd.s32 %v540_v52, %v536_v50  ;;  %v427_v40 = vadd.s32 536870912, %v426_v21  ;;  %v648_v63 = vadd.s32 1, %v2735_v44 }
  0xd0   :  { %v564_v55 = vshll.u32 %v3208_v22, 16  ;;  %vm566_vm14 = vc.u32 %v558_v47, %v562_v45  ;;  %v3215_v58 = vadd.s32 %v562_v45, %v558_v47  ;;  %v542_v61 = vshll.u32 %v3210_v43, 16 }
  0xd1   :  { %v567_v62 = vsel %vm566_vm14, 1, %v5611_v29  ;;  %v545_v59 = vsel %vm544_vm13, 1, %v5611_v29  ;;  %v561_v0 = vmul.u32 %v557_v9, %v533_v57  ;;  %v287_v4 = vsub.s32 4294967266, %v3212_v14 }
  0xd2   :  { %vm570_vm15 = vc.u32 %v3215_v58, %v564_v55  ;;  %v539_v15 = vmul.u32 %v535_v2, %v533_v57  ;;  %vm548_vm0 = vc.u32 %v546_v3, %v542_v61  ;;  %vm649_vm1 = vcmp.gt.s32.totalorder %v648_v63, 0 }
  0xd3   :  { %v3224_v8 = vshrl.u32 %v427_v40, 30  ;;  %v569_v32 = vadd.s32 %v567_v62, %v561_v0  ;;  %v5608_v13 = vand.u32 2147483647, %v3149_v56  ;;  %v650_v7 = vsel %vm649_vm1, %v648_v63, 0 }
  0xd4   :  { %v547_v28 = vadd.s32 %v545_v59, %v539_v15  ;;  %v571_v11 = vsel %vm570_vm15, 1, %v5611_v29  ;;  %v549_v9 = vsel %vm548_vm0, 1, %v5611_v29  ;;  %v652_v12 = vand.u32 31, %v650_v7 }
  0xd5   :  { %v3229_v30 = vadd.s32 127, %v287_v4  ;;  %v429_v52 = vshll.u32 %v3224_v8, 30  ;;  %v573_v50 = vadd.s32 %v571_v11, %v569_v32  ;;  %v645_v2 = vand.u32 8388607, %v5608_v13 }
  0xd6   :  { %v3234_v57 = vsub.s32 32, %v652_v12  ;;  %v541_v44 = vshrl.u32 %v3203_v27, 16  ;;  %v551_v47 = vadd.s32 %v549_v9, %v547_v28  ;;  %v658_v45 = vshll.u32 %v5616_v35, %v652_v12 }
  0xd7   :  { %v661_v3 = vshll.u32 %v5620_v37, %v652_v12  ;;  %v563_v40 = vshrl.u32 %v559_v53, 16  ;;  %v3239_v61 = vshrl.u32 %v650_v7, 5  ;;  %v655_v62 = vshll.u32 %v5614_v33, %v652_v12 }
  0xd8   :  { %v664_v63 = vshll.u32 %v5622_v39, %v652_v12  ;;  %v656_v59 = vshrl.u32 %v5616_v35, %v3234_v57  ;;  %v659_v0 = vshrl.u32 %v5620_v37, %v3234_v57  ;;  %v662_v27 = vshrl.u32 %v5622_v39, %v3234_v57 }
  0xd9   :  { %v665_v4 = vshrl.u32 %v5624_v41, %v3234_v57  ;;  %v3251_v15 = vsub.s32 %v426_v21, %v429_v52  ;;  %v499_v53 = vshrl.u32 %v5614_v33, %v3108_v36  ;;  %v574_v32 = vadd.s32 %v573_v50, %v563_v40 }
  0xda   :  { %v667_v7 = vshll.u32 %v5624_v41, %v652_v12  ;;  %v552_v28 = vadd.s32 %v551_v47, %v541_v44  ;;  %v565_v11 = vshrl.u32 %v3208_v22, 16  ;;  %v3257_v9 = vor.u32 %v659_v0, %v658_v45 }
  0xdb   :  { %v3259_v13 = vor.u32 %v662_v27, %v661_v3  ;;  %v666_v51 = vor.u32 %v665_v4, %v664_v63  ;;  %v668_v48 = vshrl.u32 %v5618_v49, %v3234_v57  ;;  %vm670_vm2 = vcmp.lt.s32.totalorder %v3239_v61, 1 }
  0xdc   :  { %vm673_vm3 = vcmp.lt.s32.totalorder %v3239_v61, 4  ;;  %v520_v36 = vsel %vm518_vm6, %v3143_v26, 2102212464  ;;  %v543_v21 = vshrl.u32 %v3210_v43, 16  ;;  %v646_v12 = vor.u32 8388608, %v645_v2 }
  0xdd   :  { %v3269_v52 = vor.u32 %v656_v59, %v655_v62  ;;  %v519_v50 = vsel %vm515_vm7, %v499_v53, %v3139_v16  ;;  %v575_v44 = vadd.s32 %v574_v32, %v565_v11  ;;  %v669_v47 = vor.u32 %v668_v48, %v667_v7 }
  0xde   :  { %vm672_vm4 = vcmp.lt.s32.totalorder %v3239_v61, 3  ;;  %vm431_vm5 = vcmp.lt.s32.totalorder %v3251_v15, 0  ;;  %v3276_v45 = vadd.s32 %v552_v28, %v543_v21  ;;  %v679_v26 = vsel %vm673_vm3, %v666_v51, 920167782 }
  0xdf   :  { %v682_v43 = vsel %vm670_vm2, %v3257_v9, %v3259_v13  ;;  %v432_v2 = vsub.s32 0, %v3251_v15  ;;  %v521_v48 = vsel %vm517_vm8, %v3141_v10, %v520_v36  ;;  %v3291_v16 = vadd.s32 %v3215_v58, %v564_v55 }
  0xe0   :  { %v683_v3 = vsel %vm673_vm3, %v669_v47, 1326507024  ;;  %vm671_vm6 = vcmp.lt.s32.totalorder %v3239_v61, 2  ;;  %v678_v40 = vsel %vm670_vm2, %v3269_v52, %v3257_v9  ;;  %v680_v62 = vsel %vm672_vm4, %v3259_v13, %v679_v26 }
  0xe1   :  { %v684_v10 = vsel %vm672_vm4, %v666_v51, %v683_v3  ;;  %v579_v22 = vadd.s32 1, %v575_v44  ;;  %v3307_v58 = vshll.u32 %v646_v12, 8  ;;  %v283_v63 = vsub.s32 32, %v3212_v14 }
  0xe2   :  { %v685_v55 = vsel %vm671_vm6, %v682_v43, %v684_v10  ;;  %vm578_vm7 = vc.u32 %v3276_v45, %v3291_v16  ;;  %v433_v59 = vsel %vm431_vm5, %v432_v2, %v3251_v15  ;;  %v522_v0 = vsel %vm516_vm10, %v519_v50, %v521_v48 }
  0xe3   :  { %v681_v51 = vsel %vm671_vm6, %v678_v40, %v680_v62  ;;  %v690_v27 = vshrl.u32 %v685_v55, 16  ;;  %v267_v4 = vadd.s32 %v3055_v34, %v3041_v20  ;;  %v289_v53 = vshll.u32 %v3229_v30, 23 }
  0xe4   :  { %v580_v32 = vsel %vm578_vm7, %v579_v22, %v575_v44  ;;  %v687_v7 = vand.u32 65535, %v3307_v58  ;;  %v434_v11 = vclz %v433_v59  ;;  %v576_v36 = vmul.u32 %v3177_v31, %v522_v0  ;;  %v3330_v44 = vpop.f32.mrf.mxu1  ;;  %v3345_v0 = vpop.f32.mrf.mxu2 }
  0xe5   :  { %v285_v28 = vshrl.u32 %v267_v4, %v283_v63  ;;  %v712_v21 = vshrl.u32 %v681_v51, 16  ;;  %v284_v46 = vshll.u32 %v3110_v38, %v3212_v14  ;;  %v290_v50 = vor.u32 4788187, %v289_v53  ;;  %5688 = vst [vmem:[#allocation11_spill] sm:$0xff] %v3330_v44  ;;  %v3347_v4 = vpop.f32.mrf.mxu3 }
  0xe6   :  { %v3324_v12 = vmul.u32 %v690_v27, %v687_v7  ;;  %v581_v47 = vadd.s32 %v580_v32, %v576_v36  ;;  %v689_v26 = vand.u32 65535, %v685_v55  ;;  %v711_v43 = vand.u32 65535, %v681_v51  ;;  %5690 = vst [vmem:[#allocation13_spill] sm:$0xff] %v3345_v0 }
  0xe7   :  { %v286_v20 = vor.u32 %v285_v28, %v284_v46  ;;  %v2730_v34 = vadd.s32 4294967294, %v434_v11  ;;  %v3328_v30 = vmul.u32 %v712_v21, %v687_v7  ;;  %v688_v2 = vshrl.u32 %v3307_v58, 16  ;;  %5691 = vst [vmem:[#allocation14_spill] sm:$0xff] %v3347_v4 }
  0xe8   :  { %v695_v31 = vshll.u32 %v3324_v12, 16  ;;  %v291_v48 = vand.u32 2147483647, %v290_v50  ;;  %v582_v3 = vadd.s32 536870912, %v581_v47  ;;  %v691_v62 = vmul.u32 %v689_v26, %v687_v7 }
  0xe9   :  { %v717_v40 = vshll.u32 %v3328_v30, 16  ;;  %v3335_v38 = vmul.u32 %v689_v26, %v688_v2  ;;  %v713_v14 = vmul.u32 %v711_v43, %v687_v7  ;;  %v3337_v10 = vmul.u32 %v711_v43, %v688_v2 }
  0xea   :  { %v3341_v22 = vadd.f32 %v2920_v17, %v3330_v44  ;;  %v293_v55 = vcvt.s32.f32 %v286_v20  ;;  %vm2731_vm8 = vcmp.lt.s32.totalorder %v2730_v34, 0  ;;  %vm699_vm9 = vc.u32 %v691_v62, %v695_v31 }
  0xeb   :  { %v701_v63 = vadd.s32 %v695_v31, %v691_v62  ;;  %vm721_vm10 = vc.u32 %v713_v14, %v717_v40  ;;  %v3343_v59 = vadd.s32 %v717_v40, %v713_v14  ;;  %v437_v53 = vsel %vm2731_vm8, 0, %v2730_v34 }
  0xec   :  { %5689 = vst [vmem:[#allocation12_spill] sm:$0xff] %v3341_v22  ;;  %v294_v51 = vmul.f32 %v293_v55, %v291_v48  ;;  %v3349_v32 = vshrl.u32 %v582_v3, 30  ;;  %v697_v7 = vshll.u32 %v3335_v38, 16  ;;  %v719_v28 = vshll.u32 %v3337_v10, 16 }
  0xed   :  { %v700_v11 = vsel %vm699_vm9, 1, %v5611_v29  ;;  %v722_v36 = vsel %vm721_vm10, 1, %v5611_v29  ;;  %v796_v46 = vand.u32 2139095040, %v3341_v22  ;;  %v694_v50 = vmul.u32 %v690_v27, %v688_v2 }
  0xee   :  { %vm703_vm11 = vc.u32 %v701_v63, %v697_v7  ;;  %v716_v26 = vmul.u32 %v712_v21, %v688_v2  ;;  %vm725_vm12 = vc.u32 %v3343_v59, %v719_v28  ;;  %v438_v43 = vsub.s32 32, %v437_v53  ;;  %v3369_v2 = vpop.f32.mrf.mxu1 }
  0xef   :  { %v442_v20 = vsub.s32 4294967266, %v437_v53  ;;  %v797_v34 = vshrl.u32 %v796_v46, 23  ;;  %v295_v31 = vxor.u32 2147483648, %v294_v51  ;;  %v584_v48 = vshll.u32 %v3349_v32, 30  ;;  %5694 = vst [vmem:[#allocation15_spill] sm:$0xff] %v3369_v2 }
  0xf0   :  { %v702_v3 = vadd.s32 %v700_v11, %v694_v50  ;;  %v724_v40 = vadd.s32 %v722_v36, %v716_v26  ;;  %v422_v62 = vadd.s32 %v3195_v1, %v3179_v60  ;;  %v704_v14 = vsel %vm703_vm11, 1, %v5611_v29  ;;  %v3379_v50 = vpop.f32.mrf.mxu2 }
  0xf1   :  { %v726_v55 = vsel %vm725_vm12, 1, %v5611_v29  ;;  %v2738_v27 = vadd.s32 4294967169, %v797_v34  ;;  %vm3364_vm13 = vcmp.le.f32.partialorder %v173_v25, 0.7853982  ;;  %vm175_vm14 = vcmp.lt.s32.totalorder %v2926_v19, 0  ;;  %5696 = vst [vmem:[#allocation17_spill] sm:$0xff] %v3379_v50 }
  0xf2   :  { %v3373_v63 = vadd.f32 %v2920_v17, %v3345_v0  ;;  %v440_v60 = vshrl.u32 %v422_v62, %v438_v43  ;;  %v443_v1 = vadd.s32 127, %v442_v20  ;;  %v296_v11 = vsel %vm175_vm14, %v295_v31, %v294_v51  ;;  %v3387_v43 = vpop.f32.mrf.mxu3 }
  0xf3   :  { %v803_v7 = vadd.s32 1, %v2738_v27  ;;  %v3377_v36 = vsub.s32 %v581_v47, %v584_v48  ;;  %v706_v25 = vadd.s32 %v704_v14, %v702_v3  ;;  %v728_v46 = vadd.s32 %v726_v55, %v724_v40  ;;  %5698 = vst [vmem:[#allocation19_spill] sm:$0xff] %v3387_v43 }
  0xf4   :  { %5695 = vst [vmem:[#allocation16_spill] sm:$0xff] %v3373_v63  ;;  %v3383_v26 = vadd.f32 %v2920_v17, %v3347_v4  ;;  %v297_v34 = vsub.s32 4, %v3093_v5  ;;  %v439_v29 = vshll.u32 %v3251_v15, %v437_v53  ;;  %v3391_v51 = vadd.f32 %v2920_v17, %v3369_v2 }
  0xf5   :  { %vm804_vm15 = vcmp.gt.s32.totalorder %v803_v7, 0  ;;  %v696_v47 = vshrl.u32 %v3324_v12, 16  ;;  %v718_v20 = vshrl.u32 %v3328_v30, 16  ;;  %v3398_v48 = vsel %vm3364_vm13, %v2926_v19, %v296_v11 }
  0xf6   :  { %5697 = vst [vmem:[#allocation18_spill] sm:$0xff] %v3383_v26  ;;  %v805_v31 = vsel %vm804_vm15, %v803_v7, 0  ;;  %v441_v3 = vor.u32 %v440_v60, %v439_v29  ;;  %v444_v40 = vshll.u32 %v443_v1, 23  ;;  %v3402_v53 = vadd.f32 %v2920_v17, %v3379_v50 }
  0xf7   :  { %5699 = vst [vmem:[#allocation20_spill] sm:$0xff] %v3391_v51  ;;  %v807_v15 = vand.u32 31, %v805_v31  ;;  %v587_v62 = vsub.s32 0, %v3377_v36  ;;  %v707_v14 = vadd.s32 %v706_v25, %v696_v47  ;;  %v729_v55 = vadd.s32 %v728_v46, %v718_v20 }
  0xf8   :  { %5700 = vst [vmem:[#allocation21_spill] sm:$0xff] %v3402_v53  ;;  %v3407_v12 = vadd.f32 %v2920_v17, %v3387_v43  ;;  %v3412_v30 = vsel %vm175_vm14, %v297_v34, %v3093_v5  ;;  %vm586_vm0 = vcmp.lt.s32.totalorder %v3377_v36, 0  ;;  %v3419_v27 = vmul.f32 %v3398_v48, %v3398_v48 }
  0xf9   :  { %v3415_v29 = vsub.s32 32, %v807_v15  ;;  %v698_v60 = vshrl.u32 %v3335_v38, 16  ;;  %v720_v1 = vshrl.u32 %v3337_v10, 16  ;;  %v5613_v7 = vand.u32 2147483647, %v3341_v22 }
  0xfa   :  { %5701 = vst [vmem:[#allocation22_spill] sm:$0xff] %v3407_v12  ;;  %v445_v11 = vor.u32 4788187, %v444_v40  ;;  %v448_v25 = vcvt.s32.f32 %v441_v3  ;;  %v654_v5 = vshrl.u32 %v5614_v33, %v3234_v57  ;;  %v675_v46 = vsel %vm673_vm3, %v3259_v13, 2102212464 }
  0xfb   :  { %v588_v34 = vsel %vm586_vm0, %v587_v62, %v3377_v36  ;;  %v3430_v47 = vadd.s32 %v707_v14, %v698_v60  ;;  %v3433_v20 = vadd.s32 %v3343_v59, %v719_v28  ;;  %v730_v38 = vadd.s32 %v729_v55, %v720_v1 }
  0xfc   :  { %v810_v10 = vshll.u32 %v5614_v33, %v807_v15  ;;  %v811_v3 = vshrl.u32 %v5616_v35, %v3415_v29  ;;  %v813_v40 = vshll.u32 %v5616_v35, %v807_v15  ;;  %v814_v57 = vshrl.u32 %v5620_v37, %v3415_v29 }
  0xfd   :  { %v800_v13 = vand.u32 8388607, %v5613_v7  ;;  %v3443_v62 = vshrl.u32 %v805_v31, 5  ;;  %v819_v14 = vshll.u32 %v5622_v39, %v807_v15  ;;  %v820_v59 = vshrl.u32 %v5624_v41, %v3415_v29 }
  0xfe   :  { %v674_v28 = vsel %vm670_vm2, %v654_v5, %v3269_v52  ;;  %v676_v55 = vsel %vm672_vm4, %v3257_v9, %v675_v46  ;;  %v816_v60 = vshll.u32 %v5620_v37, %v807_v15  ;;  %v817_v1 = vshrl.u32 %v5622_v39, %v3415_v29 }
  0xff   :  { %v446_v31 = vand.u32 2147483647, %v445_v11  ;;  %v589_v7 = vclz %v588_v34  ;;  %vm733_vm1 = vc.u32 %v3430_v47, %v3433_v20  ;;  %v734_v33 = vadd.s32 1, %v730_v38  ;;  %v3469_v11 = vpop.f32.mrf.mxu1  ;;  %v3471_v34 = vpop.f32.mrf.mxu2 }
 0x100   :  { %v3459_v35 = vor.u32 %v811_v3, %v810_v10  ;;  %v3461_v49 = vor.u32 %v814_v57, %v813_v40  ;;  %v822_v52 = vshll.u32 %v5624_v41, %v807_v15  ;;  %v5702_v5 = vmov 1326507024   ;;  %5703 = vst [vmem:[#allocation23_spill] sm:$0xff] %v3469_v11 }
 0x101   :  { %v823_v9 = vshrl.u32 %v5702_v5, %v3415_v29  ;;  %v677_v46 = vsel %vm671_vm6, %v674_v28, %v676_v55  ;;  %v801_v37 = vor.u32 8388608, %v800_v13  ;;  %v821_v39 = vor.u32 %v820_v59, %v819_v14  ;;  %5704 = vst [vmem:[#allocation24_spill] sm:$0xff] %v3471_v34 }
 0x102   :  { %vm825_vm2 = vcmp.lt.s32.totalorder %v3443_v62, 1  ;;  %v302_v10 = vmul.f32 -0.001358992, %v3419_v27  ;;  %v3474_v3 = vor.u32 %v817_v1, %v816_v60  ;;  %vm828_vm3 = vcmp.lt.s32.totalorder %v3443_v62, 4 }
 0x103   :  { %v951_v15 = vand.u32 2139095040, %v3391_v51  ;;  %v309_v40 = vmul.f32 -0.00019511016, %v3419_v27  ;;  %v449_v61 = vmul.f32 %v448_v25, %v446_v31  ;;  %v735_v57 = vsel %vm733_vm1, %v734_v33, %v730_v38 }
 0x104   :  { %vm827_vm4 = vcmp.lt.s32.totalorder %v3443_v62, 3  ;;  %v2733_v13 = vadd.s32 4294967294, %v589_v7  ;;  %v731_v14 = vmul.u32 %v3307_v58, %v677_v46  ;;  %v824_v59 = vor.u32 %v823_v9, %v822_v52  ;;  %v3516_v52 = vpop.f32.mrf.mxu3 }
 0x105   :  { %v833_v28 = vsel %vm825_vm2, %v3459_v35, %v3461_v49  ;;  %v3490_v55 = vadd.f32 %v2920_v17, %v3469_v11  ;;  %v3494_v25 = vadd.f32 %v2920_v17, %v3471_v34  ;;  %vm330_vm5 = vcmp.lt.s32.totalorder %v2933_v24, 0  ;;  %5707 = vst [vmem:[#allocation27_spill] sm:$0xff] %v3516_v52 }
 0x106   :  { %v834_v33 = vsel %vm828_vm3, %v821_v39, 920167782  ;;  %v3499_v58 = vshll.u32 %v801_v37, 8  ;;  %v3501_v7 = vadd.s32 %v735_v57, %v731_v14  ;;  %vm826_vm6 = vcmp.lt.s32.totalorder %v3443_v62, 2 }
 0x107   :  { %5705 = vst [vmem:[#allocation25_spill] sm:$0xff] %v3490_v55  ;;  %v835_v38 = vsel %vm827_vm4, %v3474_v3, %v834_v33  ;;  %v952_v60 = vshrl.u32 %v951_v15, 23  ;;  %v300_v17 = vsel %vm3364_vm13, 0, %v3412_v30  ;;  %v303_v1 = vadd.f32 0.041655596, %v302_v10 }
 0x108   :  { %5706 = vst [vmem:[#allocation26_spill] sm:$0xff] %v3494_v25  ;;  %v836_v31 = vsel %vm826_vm6, %v833_v28, %v835_v38  ;;  %v837_v37 = vsel %vm825_vm2, %v3461_v49, %v3474_v3  ;;  %v310_v9 = vadd.f32 0.008332121, %v309_v40  ;;  %v450_v46 = vxor.u32 2147483648, %v449_v61  ;;  %v3530_v38 = vld [vmem:[%s5605_s2] ss:$0 sm:$0xff] }
 0x109   :  { %vm2734_vm7 = vcmp.lt.s32.totalorder %v2733_v13, 0  ;;  %v838_v15 = vsel %vm828_vm3, %v824_v59, 1326507024  ;;  %v842_v30 = vand.u32 65535, %v3499_v58  ;;  %v866_v10 = vand.u32 65535, %v836_v31 }
 0x10a   :  { %v839_v21 = vsel %vm827_vm4, %v821_v39, %v838_v15  ;;  %v867_v57 = vshrl.u32 %v836_v31, 16  ;;  %v737_v14 = vadd.s32 536870912, %v3501_v7  ;;  %v843_v33 = vshrl.u32 %v3499_v58, 16 }
 0x10b   :  { %v840_v28 = vsel %vm826_vm6, %v837_v37, %v839_v21  ;;  %v2741_v40 = vadd.s32 4294967169, %v952_v60  ;;  %v3534_v39 = vadd.f32 %v3530_v38, %v3516_v52  ;;  %v317_v59 = vadd.s32 3, %v300_v17 }
 0x10c   :  { %v844_v15 = vand.u32 65535, %v840_v28  ;;  %v845_v31 = vshrl.u32 %v840_v28, 16  ;;  %v5709_v41 = vand.u32 2147483647, %v2933_v24  ;;  %v452_v60 = vsub.s32 4, %v3224_v8 }
 0x10d   :  { %5708 = vst [vmem:[#allocation28_spill] sm:$0xff] %v3534_v39  ;;  %v3544_v37 = vsel %vm2734_vm7, 0, %v2733_v13  ;;  %v869_v21 = vmul.u32 %v867_v57, %v842_v30  ;;  %v3546_v6 = vmul.u32 %v866_v10, %v843_v33  ;;  %v304_v52 = vmul.f32 %v303_v1, %v3419_v27 }
 0x10e   :  { %vm3538_vm8 = vcmp.le.f32.partialorder %v5709_v41, 0.7853982  ;;  %v311_v17 = vmul.f32 %v310_v9, %v3419_v27  ;;  %v847_v11 = vmul.u32 %v845_v31, %v842_v30  ;;  %v3550_v28 = vmul.u32 %v844_v15, %v843_v33 }
 0x10f   :  { %v451_v41 = vsel %vm330_vm5, %v450_v46, %v449_v61  ;;  %v3554_v42 = vshrl.u32 %v737_v14, 30  ;;  %v872_v43 = vshll.u32 %v869_v21, 16  ;;  %v958_v50 = vadd.s32 1, %v2741_v40  ;;  %v3561_v61 = vpop.f32.mrf.mxu1  ;;  %v3563_v46 = vpop.f32.mrf.mxu2 }
 0x110   :  { %v597_v13 = vsub.s32 4294967266, %v3544_v37  ;;  %v846_v2 = vmul.u32 %v844_v15, %v842_v30  ;;  %v850_v23 = vshll.u32 %v847_v11, 16  ;;  %v868_v4 = vmul.u32 %v866_v10, %v842_v30  ;;  %5713 = vst [vmem:[#allocation30_spill] sm:$0xff] %v3561_v61 }
 0x111   :  { %5712 = vst [vmem:[#allocation29_spill] sm:$0xff] %v3554_v42  ;;  %v849_v0 = vmul.u32 %v845_v31, %v843_v33  ;;  %v852_v1 = vshll.u32 %v3550_v28, 16  ;;  %v871_v44 = vmul.u32 %v867_v57, %v843_v33  ;;  %v5640_v9 = vshll.u32 %v3546_v6, 16 }
 0x112   :  { %vm854_vm9 = vc.u32 %v846_v2, %v850_v23  ;;  %v856_v18 = vadd.s32 %v850_v23, %v846_v2  ;;  %vm876_vm10 = vc.u32 %v868_v4, %v872_v43  ;;  %v3559_v39 = vadd.s32 %v872_v43, %v868_v4  ;;  %5714 = vst [vmem:[#allocation31_spill] sm:$0xff] %v3563_v46 }
 0x113   :  { %v739_v14 = vshll.u32 %v3554_v42, 30  ;;  %v5715_v40 = vmov 0   ;;  %vm959_vm11 = vcmp.gt.s32.totalorder %v958_v50, 0  ;;  %v312_v23 = vadd.f32 -0.16666654, %v311_v17 }
 0x114   :  { %v855_v15 = vsel %vm854_vm9, 1, %v5715_v40  ;;  %v877_v30 = vsel %vm876_vm10, 1, %v5715_v40  ;;  %vm858_vm12 = vc.u32 %v856_v18, %v852_v1  ;;  %vm880_vm13 = vc.u32 %v3559_v39, %v5640_v9 }
 0x115   :  { %v857_v10 = vadd.s32 %v855_v15, %v849_v0  ;;  %v879_v57 = vadd.s32 %v877_v30, %v871_v44  ;;  %v3574_v4 = vsel %vm330_vm5, %v452_v60, %v3224_v8  ;;  %v859_v2 = vsel %vm858_vm12, 1, %v5715_v40 }
 0x116   :  { %v881_v43 = vsel %vm880_vm13, 1, %v5715_v40  ;;  %v3580_v33 = vadd.f32 %v3530_v38, %v3561_v61  ;;  %v3584_v18 = vadd.f32 %v3530_v38, %v3563_v46  ;;  %v3589_v44 = vsel %vm3538_vm8, %v2933_v24, %v451_v41 }
 0x117   :  { %v960_v0 = vsel %vm959_vm11, %v958_v50, 0  ;;  %v3591_v8 = vand.u32 3, %v317_v59  ;;  %v598_v31 = vadd.s32 127, %v597_v13  ;;  %v3594_v60 = vsub.s32 %v3501_v7, %v739_v14 }
 0x118   :  { %5716 = vst [vmem:[#allocation32_spill] sm:$0xff] %v3580_v33  ;;  %v962_v17 = vand.u32 31, %v960_v0  ;;  %v3596_v1 = vadd.f32 -0.4999988, %v304_v52  ;;  %v861_v30 = vadd.s32 %v859_v2, %v857_v10  ;;  %v883_v9 = vadd.s32 %v881_v43, %v879_v57 }
 0x119   :  { %5717 = vst [vmem:[#allocation33_spill] sm:$0xff] %v3584_v18  ;;  %v313_v46 = vmul.f32 %v312_v23, %v3419_v27  ;;  %v3604_v50 = vmul.f32 %v3589_v44, %v3589_v44  ;;  %v577_v59 = vadd.s32 %v3291_v16, %v3276_v45  ;;  %v593_v52 = vsub.s32 32, %v3544_v37 }
 0x11a   :  { %v3608_v7 = vsub.s32 32, %v962_v17  ;;  %v594_v41 = vshll.u32 %v3377_v36, %v3544_v37  ;;  %v851_v13 = vshrl.u32 %v847_v11, 16  ;;  %v873_v14 = vshrl.u32 %v869_v21, 16 }
 0x11b   :  { %v599_v10 = vshll.u32 %v598_v31, 23  ;;  %vm741_vm14 = vcmp.lt.s32.totalorder %v3594_v60, 0  ;;  %v742_v57 = vsub.s32 0, %v3594_v60  ;;  %v3616_v15 = vshrl.u32 %v960_v0, 5 }
 0x11c   :  { %v862_v2 = vadd.s32 %v861_v30, %v851_v13  ;;  %v884_v43 = vadd.s32 %v883_v9, %v873_v14  ;;  %v5718_v45 = vmov 2102212464   ;;  %v5719_v61 = vmov 2475754826  }
 0x11d   :  { %v974_v16 = vshll.u32 %v5718_v45, %v962_v17  ;;  %v968_v12 = vshll.u32 %v5719_v61, %v962_v17  ;;  %v5720_v26 = vmov 2131351028   ;;  %v972_v37 = vshrl.u32 %v5718_v45, %v3608_v7 }
 0x11e   :  { %v969_v36 = vshrl.u32 %v5720_v26, %v3608_v7  ;;  %v971_v11 = vshll.u32 %v5720_v26, %v962_v17  ;;  %v5721_v21 = vmov 683565275   ;;  %v966_v30 = vshrl.u32 %v5719_v61, %v3608_v7 }
 0x11f   :  { %v965_v31 = vshll.u32 %v5721_v21, %v962_v17  ;;  %v5722_v9 = vmov 920167782   ;;  %v809_v14 = vshrl.u32 %v5721_v21, %v3415_v29  ;;  %v853_v23 = vshrl.u32 %v3550_v28, 16 }
 0x120   :  { %v975_v0 = vshrl.u32 %v5722_v9, %v3608_v7  ;;  %v977_v13 = vshll.u32 %v5722_v9, %v962_v17  ;;  %v875_v18 = vshrl.u32 %v3546_v6, 16  ;;  %v5723_v25 = vand.u32 2147483647, %v3391_v51 }
 0x121   :  { %v743_v24 = vsel %vm741_vm14, %v742_v57, %v3594_v60  ;;  %v830_v63 = vsel %vm828_vm3, %v3474_v3, 2102212464  ;;  %v978_v17 = vshrl.u32 %v5702_v5, %v3608_v7  ;;  %v3645_v29 = vadd.s32 %v862_v2, %v853_v23 }
 0x122   :  { %v955_v53 = vand.u32 8388607, %v5723_v25  ;;  %v976_v22 = vor.u32 %v975_v0, %v974_v16  ;;  %v885_v28 = vadd.s32 %v884_v43, %v875_v18  ;;  %v3647_v42 = vor.u32 %v969_v36, %v968_v12 }
 0x123   :  { %v3649_v33 = vor.u32 %v972_v37, %v971_v11  ;;  %v3651_v25 = vor.u32 %v966_v30, %v965_v31  ;;  %v979_v51 = vor.u32 %v978_v17, %v977_v13  ;;  %vm980_vm15 = vcmp.lt.s32.totalorder %v3616_v15, 1 }
 0x124   :  { %vm983_vm0 = vcmp.lt.s32.totalorder %v3616_v15, 4  ;;  %v595_v57 = vshrl.u32 %v577_v59, %v593_v52  ;;  %v829_v3 = vsel %vm825_vm2, %v809_v14, %v3459_v35  ;;  %v956_v16 = vor.u32 8388608, %v955_v53 }
 0x125   :  { %vm982_vm1 = vcmp.lt.s32.totalorder %v3616_v15, 3  ;;  %v831_v12 = vsel %vm827_vm4, %v3461_v49, %v830_v63  ;;  %v5724_v18 = vshll.u32 %v3546_v6, 16  ;;  %v989_v2 = vsel %vm983_vm0, %v976_v22, 920167782 }
 0x126   :  { %v993_v59 = vsel %vm983_vm0, %v979_v51, 1326507024  ;;  %v600_v52 = vor.u32 4788187, %v599_v10  ;;  %v744_v35 = vclz %v743_v24  ;;  %v889_v53 = vadd.s32 1, %v885_v28 }
 0x127   :  { %v3665_v23 = vadd.s32 %v3559_v39, %v5724_v18  ;;  %v992_v43 = vsel %vm980_vm15, %v3647_v42, %v3649_v33  ;;  %v988_v49 = vsel %vm980_vm15, %v3651_v25, %v3647_v42  ;;  %v990_v6 = vsel %vm982_vm1, %v3649_v33, %v989_v2 }
 0x128   :  { %v994_v24 = vsel %vm982_vm1, %v976_v22, %v993_v59  ;;  %v314_v63 = vadd.f32 1.0, %v313_v46  ;;  %v832_v51 = vsel %vm826_vm6, %v829_v3, %v831_v12  ;;  %vm981_vm3 = vcmp.lt.s32.totalorder %v3616_v15, 2  ;;  %v3698_v22 = vpop.f32.mrf.mxu3 }
 0x129   :  { %vm888_vm2 = vc.u32 %v3645_v29, %v3665_v23  ;;  %v3689_v39 = vshll.u32 %v956_v16, 8  ;;  %v457_v10 = vmul.f32 -0.001358992, %v3604_v50  ;;  %v5725_v36 = vsel %vm3538_vm8, 0, %v3574_v4  ;;  %5726 = vst [vmem:[#allocation34_spill] sm:$0xff] %v3698_v22 }
 0x12a   :  { %v472_v11 = vadd.s32 3, %v5725_v36  ;;  %v596_v37 = vor.u32 %v595_v57, %v594_v41  ;;  %v995_v31 = vsel %vm981_vm3, %v992_v43, %v994_v24  ;;  %v464_v62 = vmul.f32 -0.00019511016, %v3604_v50 }
 0x12b   :  { %v2736_v46 = vadd.s32 4294967294, %v744_v35  ;;  %v890_v30 = vsel %vm888_vm2, %v889_v53, %v885_v28  ;;  %v991_v0 = vsel %vm981_vm3, %v988_v49, %v990_v6  ;;  %v601_v13 = vand.u32 2147483647, %v600_v52 }
 0x12c   :  { %v886_v14 = vmul.u32 %v3499_v58, %v832_v51  ;;  %v999_v34 = vand.u32 65535, %v995_v31  ;;  %v1000_v17 = vshrl.u32 %v995_v31, 16  ;;  %v306_v4 = vmul.f32 %v3596_v1, %v3419_v27 }
 0x12d   :  { %v3707_v41 = vmul.f32 %v314_v63, %v3398_v48  ;;  %v997_v57 = vand.u32 65535, %v3689_v39  ;;  %v998_v3 = vshrl.u32 %v3689_v39, 16  ;;  %v3713_v28 = vadd.f32 %v3530_v38, %v3698_v22 }
 0x12e   :  { %v603_v16 = vcvt.s32.f32 %v596_v37  ;;  %v3715_v12 = vadd.s32 %v890_v30, %v886_v14  ;;  %v1022_v58 = vshrl.u32 %v991_v0, 16  ;;  %vm2737_vm4 = vcmp.lt.s32.totalorder %v2736_v46, 0 }
 0x12f   :  { %5727 = vst [vmem:[#allocation35_spill] sm:$0xff] %v3713_v28  ;;  %v1002_v18 = vmul.u32 %v1000_v17, %v997_v57  ;;  %v3717_v2 = vmul.u32 %v999_v34, %v998_v3  ;;  %v1021_v27 = vand.u32 65535, %v991_v0  ;;  %vm320_vm5 = vcmp.eq.s32.totalorder %v3591_v8, 0 }
 0x130   :  { %v458_v48 = vadd.f32 0.041655596, %v457_v10  ;;  %v465_v1 = vadd.f32 0.008332121, %v464_v62  ;;  %v3720_v59 = vand.u32 3, %v472_v11  ;;  %v604_v52 = vmul.f32 %v603_v16, %v601_v13 }
 0x131   :  { %v3722_v35 = vadd.f32 1.0, %v306_v4  ;;  %v321_v38 = vxor.u32 2147483648, %v3707_v41  ;;  %vm485_vm6 = vcmp.lt.s32.totalorder %v3080_v54, 0  ;;  %v1001_v53 = vmul.u32 %v999_v34, %v997_v57 }
 0x132   :  { %v1005_v43 = vshll.u32 %v1002_v18, 16  ;;  %v3726_v49 = vsel %vm2737_vm4, 0, %v2736_v46  ;;  %v892_v6 = vadd.s32 536870912, %v3715_v12  ;;  %v1004_v24 = vmul.u32 %v1000_v17, %v998_v3 }
 0x133   :  { %v1024_v63 = vmul.u32 %v1022_v58, %v997_v57  ;;  %v1007_v51 = vshll.u32 %v3717_v2, 16  ;;  %v1025_v36 = vmul.u32 %v1021_v27, %v998_v3  ;;  %v459_v11 = vmul.f32 %v458_v48, %v3604_v50 }
 0x134   :  { %vm1009_vm7 = vc.u32 %v1001_v53, %v1005_v43  ;;  %v1011_v10 = vadd.s32 %v1005_v43, %v1001_v53  ;;  %v466_v37 = vmul.f32 %v465_v1, %v3604_v50  ;;  %v605_v31 = vxor.u32 2147483648, %v604_v52 }
 0x135   :  { %v1010_v62 = vsel %vm1009_vm7, 1, %v5715_v40  ;;  %v5728_v30 = vand.u32 2147483647, %v3080_v54  ;;  %v1023_v13 = vmul.u32 %v1021_v27, %v997_v57  ;;  %v1027_v14 = vshll.u32 %v1024_v63, 16 }
 0x136   :  { %v1012_v0 = vadd.s32 %v1010_v62, %v1004_v24  ;;  %vm1013_vm9 = vc.u32 %v1011_v10, %v1007_v51  ;;  %v752_v34 = vsub.s32 4294967266, %v3726_v49  ;;  %v3740_v17 = vshrl.u32 %v892_v6, 30 }
 0x137   :  { %vm3735_vm8 = vcmp.le.f32.partialorder %v5728_v30, 0.7853982  ;;  %v1014_v4 = vsel %vm1013_vm9, 1, %v5715_v40  ;;  %v1026_v16 = vmul.u32 %v1022_v58, %v998_v3  ;;  %v1029_v1 = vshll.u32 %v1025_v36, 16 }
 0x138   :  { %v1016_v48 = vadd.s32 %v1014_v4, %v1012_v0  ;;  %vm1031_vm10 = vc.u32 %v1023_v13, %v1027_v14  ;;  %v1033_v53 = vadd.s32 %v1027_v14, %v1023_v13  ;;  %v324_v43 = vxor.u32 2147483648, %v3722_v35 }
 0x139   :  { %v460_v30 = vadd.f32 -0.4999988, %v459_v11  ;;  %v467_v22 = vadd.f32 -0.16666654, %v466_v37  ;;  %v1032_v24 = vsel %vm1031_vm10, 1, %v5715_v40  ;;  %v322_v57 = vsel %vm320_vm5, %v3722_v35, %v321_v38 }
 0x13a   :  { %v1006_v27 = vshrl.u32 %v1002_v18, 16  ;;  %v1034_v6 = vadd.s32 %v1032_v24, %v1026_v16  ;;  %vm1035_vm11 = vc.u32 %v1033_v53, %v1029_v1  ;;  %vm323_vm12 = vcmp.eq.s32.totalorder %v3591_v8, 2 }
 0x13b   :  { %v606_v3 = vsel %vm485_vm6, %v605_v31, %v604_v52  ;;  %v753_v58 = vadd.s32 127, %v752_v34  ;;  %v894_v51 = vshll.u32 %v3740_v17, 30  ;;  %v1036_v10 = vsel %vm1035_vm11, 1, %v5715_v40 }
 0x13c   :  { %v1017_v11 = vadd.s32 %v1016_v48, %v1006_v27  ;;  %v1028_v37 = vshrl.u32 %v1024_v63, 16  ;;  %v1038_v62 = vadd.s32 %v1036_v10, %v1034_v6  ;;  %v1106_v0 = vand.u32 2139095040, %v3490_v55 }
 0x13d   :  { %vm319_vm13 = vcmp.lt.s32.totalorder %v3591_v8, 2  ;;  %v461_v18 = vmul.f32 %v460_v30, %v3604_v50  ;;  %v468_v35 = vmul.f32 %v467_v22, %v3604_v50  ;;  %v748_v38 = vsub.s32 32, %v3726_v49 }
 0x13e   :  { %v964_v52 = vshrl.u32 %v5721_v21, %v3608_v7  ;;  %v1008_v31 = vshrl.u32 %v3717_v2, 16  ;;  %v1030_v13 = vshrl.u32 %v1025_v36, 16  ;;  %v1039_v14 = vadd.s32 %v1038_v62, %v1028_v37 }
 0x13f   :  { %v1107_v34 = vshrl.u32 %v1106_v0, 23  ;;  %v3764_v63 = vsel %vm3735_vm8, %v3080_v54, %v606_v3  ;;  %v732_v4 = vadd.s32 %v3433_v20, %v3430_v47  ;;  %v754_v16 = vshll.u32 %v753_v58, 23 }
 0x140   :  { %v985_v50 = vsel %vm983_vm0, %v3649_v33, 2102212464  ;;  %vm316_vm14 = vweird.f32 %v2926_v19  ;;  %v3773_v7 = vsub.s32 %v3715_v12, %v894_v51  ;;  %v3775_v22 = vadd.s32 %v1017_v11, %v1008_v31 }
 0x141   :  { %v1040_v2 = vadd.s32 %v1039_v14, %v1030_v13  ;;  %v2744_v36 = vadd.s32 4294967169, %v1107_v34  ;;  %v462_v48 = vadd.f32 1.0, %v461_v18  ;;  %v469_v30 = vadd.f32 1.0, %v468_v35 }
 0x142   :  { %v607_v24 = vsub.s32 4, %v3349_v32  ;;  %v750_v27 = vshrl.u32 %v732_v4, %v748_v38  ;;  %v984_v47 = vsel %vm980_vm15, %v964_v52, %v3651_v25  ;;  %v986_v20 = vsel %vm982_vm1, %v3647_v42, %v985_v50 }
 0x143   :  { %v3784_v33 = vadd.s32 %v1033_v53, %v1029_v1  ;;  %v1113_v12 = vadd.s32 1, %v2744_v36  ;;  %v3788_v6 = vmul.f32 %v3764_v63, %v3764_v63  ;;  %v749_v3 = vshll.u32 %v3594_v60, %v3726_v49 }
 0x144   :  { %v755_v58 = vor.u32 4788187, %v754_v16  ;;  %v1044_v51 = vadd.s32 1, %v1040_v2  ;;  %v325_v25 = vsel %vm323_vm12, %v324_v43, %v3707_v41  ;;  %v897_v10 = vsub.s32 0, %v3773_v7 }
 0x145   :  { %vm1043_vm15 = vc.u32 %v3775_v22, %v3784_v33  ;;  %vm1114_vm0 = vcmp.gt.s32.totalorder %v1113_v12, 0  ;;  %v751_v42 = vor.u32 %v750_v27, %v749_v3  ;;  %vm896_vm1 = vcmp.lt.s32.totalorder %v3773_v7, 0 }
 0x146   :  { %v987_v1 = vsel %vm981_vm3, %v984_v47, %v986_v20  ;;  %v1115_v53 = vsel %vm1114_vm0, %v1113_v12, 0  ;;  %v326_v60 = vsel %vm319_vm13, %v322_v57, %v325_v25  ;;  %v470_v49 = vmul.f32 %v469_v30, %v3589_v44  ;;  %v5732_v20 = vld [vmem:[#allocation32_spill] sm:$0xff] }
 0x147   :  { %v479_v11 = vxor.u32 2147483648, %v462_v48  ;;  %v1117_v41 = vand.u32 31, %v1115_v53  ;;  %v608_v43 = vsel %vm485_vm6, %v607_v24, %v3349_v32  ;;  %v619_v37 = vmul.f32 -0.00019511016, %v3788_v6 }
 0x148   :  { %v756_v62 = vand.u32 2147483647, %v755_v58  ;;  %v1045_v0 = vsel %vm1043_vm15, %v1044_v51, %v1040_v2  ;;  %vm475_vm2 = vcmp.eq.s32.totalorder %v3720_v59, 0  ;;  %v898_v15 = vsel %vm896_vm1, %v897_v10, %v3773_v7 }
 0x149   :  { %v1041_v18 = vmul.u32 %v3689_v39, %v987_v1  ;;  %v3811_v8 = vsub.s32 32, %v1117_v41  ;;  %v3815_v44 = vsel %vm316_vm14, nan, %v326_v60  ;;  %vm478_vm3 = vcmp.eq.s32.totalorder %v3720_v59, 2 }
 0x14a   :  { %5731 = vst [vmem:[#allocation36_spill] sm:$0xff] %v3815_v44  ;;  %v758_v57 = vcvt.s32.f32 %v751_v42  ;;  %v5659_v32 = vand.u32 2147483647, %v3490_v55  ;;  %v476_v35 = vxor.u32 2147483648, %v470_v49  ;;  %v480_v38 = vsel %vm478_vm3, %v479_v11, %v470_v49 }
 0x14b   :  { %v610_v52 = vsel %vm3735_vm8, 0, %v608_v43  ;;  %v3821_v31 = vadd.s32 %v1045_v0, %v1041_v18  ;;  %vm474_vm4 = vcmp.lt.s32.totalorder %v3720_v59, 2  ;;  %v612_v39 = vmul.f32 -0.001358992, %v3788_v6 }
 0x14c   :  { %v620_v13 = vadd.f32 0.008332121, %v619_v37  ;;  %v759_v19 = vmul.f32 %v758_v57, %v756_v62  ;;  %v899_v14 = vclz %v898_v15  ;;  %vm640_vm5 = vcmp.lt.s32.totalorder %v3149_v56, 0  ;;  %v5736_v15 = vld [vmem:[#allocation29_spill] sm:$0xff] }
 0x14d   :  { %v1120_v34 = vshll.u32 %v5721_v21, %v1117_v41  ;;  %v1121_v4 = vshrl.u32 %v5719_v61, %v3811_v8  ;;  %v1123_v16 = vshll.u32 %v5719_v61, %v1117_v41  ;;  %v1124_v46 = vshrl.u32 %v5720_v26, %v3811_v8 }
 0x14e   :  { %v1110_v50 = vand.u32 8388607, %v5659_v32  ;;  %v3834_v2 = vshrl.u32 %v1115_v53, 5  ;;  %v1129_v36 = vshll.u32 %v5718_v45, %v1117_v41  ;;  %v1130_v30 = vshrl.u32 %v5722_v9, %v3811_v8 }
 0x14f   :  { %v1047_v24 = vadd.s32 536870912, %v3821_v31  ;;  %v1126_v27 = vshll.u32 %v5720_v26, %v1117_v41  ;;  %v1127_v47 = vshrl.u32 %v5718_v45, %v3811_v8  ;;  %v1261_v12 = vand.u32 2139095040, %v5732_v20 }
 0x150   :  { %v477_v3 = vsel %vm475_vm2, %v462_v48, %v476_v35  ;;  %v613_v58 = vadd.f32 0.041655596, %v612_v39  ;;  %v5733_v51 = vand.u32 2147483647, %v3149_v56  ;;  %v1132_v10 = vshll.u32 %v5722_v9, %v1117_v41 }
 0x151   :  { %v1133_v42 = vshrl.u32 %v5702_v5, %v3811_v8  ;;  %v621_v1 = vmul.f32 %v620_v13, %v3788_v6  ;;  %v760_v53 = vxor.u32 2147483648, %v759_v19  ;;  %v3856_v60 = vor.u32 %v1121_v4, %v1120_v34 }
 0x152   :  { %vm3848_vm6 = vcmp.le.f32.partialorder %v5733_v51, 0.7853982  ;;  %v3858_v49 = vor.u32 %v1124_v46, %v1123_v16  ;;  %v2739_v48 = vadd.s32 4294967294, %v899_v14  ;;  %v1111_v11 = vor.u32 8388608, %v1110_v50 }
 0x153   :  { %v1131_v43 = vor.u32 %v1130_v30, %v1129_v36  ;;  %vm1135_vm7 = vcmp.lt.s32.totalorder %v3834_v2, 1  ;;  %v3861_v37 = vshrl.u32 %v1047_v24, 30  ;;  %v3863_v62 = vor.u32 %v1127_v47, %v1126_v27 }
 0x154   :  { %vm1138_vm8 = vcmp.lt.s32.totalorder %v3834_v2, 4  ;;  %v1262_v41 = vshrl.u32 %v1261_v12, 23  ;;  %v627_v0 = vadd.s32 3, %v610_v52  ;;  %v762_v18 = vsub.s32 4, %v5736_v15 }
 0x155   :  { %v1134_v57 = vor.u32 %v1133_v42, %v1132_v10  ;;  %vm1137_vm9 = vcmp.lt.s32.totalorder %v3834_v2, 3  ;;  %v3870_v35 = vsel %vm474_vm4, %v477_v3, %v480_v38  ;;  %v614_v39 = vmul.f32 %v613_v58, %v3788_v6 }
 0x156   :  { %v622_v13 = vadd.f32 -0.16666654, %v621_v1  ;;  %v1143_v14 = vsel %vm1135_vm7, %v3856_v60, %v3858_v49  ;;  %v761_v52 = vsel %vm640_vm5, %v760_v53, %v759_v19  ;;  %vm2740_vm10 = vcmp.lt.s32.totalorder %v2739_v48, 0 }
 0x157   :  { %v1144_v34 = vsel %vm1138_vm8, %v1131_v43, 920167782  ;;  %v3881_v4 = vshll.u32 %v1111_v11, 8  ;;  %v1049_v59 = vshll.u32 %v3861_v37, 30  ;;  %vm1136_vm11 = vcmp.lt.s32.totalorder %v3834_v2, 2 }
 0x158   :  { %v1145_v38 = vsel %vm1137_vm9, %v3863_v62, %v1144_v34  ;;  %v2747_v16 = vadd.s32 4294967169, %v1262_v41  ;;  %v3891_v46 = vsel %vm640_vm5, %v762_v18, %v5736_v15  ;;  %v1147_v50 = vsel %vm1135_vm7, %v3858_v49, %v3863_v62 }
 0x159   :  { %v1146_v19 = vsel %vm1136_vm11, %v1143_v14, %v1145_v38  ;;  %v1148_v36 = vsel %vm1138_vm8, %v1134_v57, 1326507024  ;;  %v615_v30 = vadd.f32 -0.4999988, %v614_v39  ;;  %v623_v24 = vmul.f32 %v622_v13, %v3788_v6 }
 0x15a   :  { %v3905_v27 = vsel %vm3848_vm6, %v3149_v56, %v761_v52  ;;  %v3907_v47 = vsel %vm2740_vm10, 0, %v2739_v48  ;;  %v1149_v12 = vsel %vm1137_vm9, %v1131_v43, %v1148_v36  ;;  %v1152_v3 = vand.u32 65535, %v3881_v4 }
 0x15b   :  { %v1176_v58 = vand.u32 65535, %v1146_v19  ;;  %v1177_v51 = vshrl.u32 %v1146_v19, 16  ;;  %v3913_v10 = vsub.s32 %v3821_v31, %v1049_v59  ;;  %v1150_v42 = vsel %vm1136_vm11, %v1147_v50, %v1149_v12 }
 0x15c   :  { %v1153_v1 = vshrl.u32 %v3881_v4, 16  ;;  %v1268_v53 = vadd.s32 1, %v2747_v16  ;;  %v3918_v11 = vand.u32 3, %v627_v0  ;;  %v1154_v48 = vand.u32 65535, %v1150_v42 }
 0x15d   :  { %v1155_v41 = vshrl.u32 %v1150_v42, 16  ;;  %v1179_v15 = vmul.u32 %v1177_v51, %v1152_v3  ;;  %v3921_v43 = vmul.f32 %v615_v30, %v3788_v6  ;;  %v3923_v18 = vadd.f32 1.0, %v623_v24 }
 0x15e   :  { %v1180_v57 = vmul.u32 %v1176_v58, %v1153_v1  ;;  %v3930_v39 = vmul.f32 %v3905_v27, %v3905_v27  ;;  %v903_v0 = vsub.s32 32, %v3907_v47  ;;  %v1158_v14 = vmul.u32 %v1154_v48, %v1153_v1 }
 0x15f   :  { %v1157_v13 = vmul.u32 %v1155_v41, %v1152_v3  ;;  %vm1051_vm12 = vcmp.lt.s32.totalorder %v3913_v10, 0  ;;  %v1178_v52 = vmul.u32 %v1176_v58, %v1152_v3  ;;  %v1182_v6 = vshll.u32 %v1179_v15, 16 }
 0x160   :  { %vm1269_vm13 = vcmp.gt.s32.totalorder %v1268_v53, 0  ;;  %v1052_v34 = vsub.s32 0, %v3913_v10  ;;  %v1156_v59 = vmul.u32 %v1154_v48, %v1152_v3  ;;  %v1181_v16 = vmul.u32 %v1177_v51, %v1153_v1 }
 0x161   :  { %v1160_v38 = vshll.u32 %v1157_v13, 16  ;;  %v1159_v19 = vmul.u32 %v1155_v41, %v1153_v1  ;;  %v1162_v50 = vshll.u32 %v1158_v14, 16  ;;  %v1184_v36 = vshll.u32 %v1180_v57, 16 }
 0x162   :  { %vm1186_vm14 = vc.u32 %v1178_v52, %v1182_v6  ;;  %v1188_v12 = vadd.s32 %v1182_v6, %v1178_v52  ;;  %v907_v42 = vsub.s32 4294967266, %v3907_v47  ;;  %v1270_v31 = vsel %vm1269_vm13, %v1268_v53, 0 }
 0x163   :  { %vm1164_vm15 = vc.u32 %v1156_v59, %v1160_v38  ;;  %v1166_v30 = vadd.s32 %v1160_v38, %v1156_v59  ;;  %v1187_v24 = vsel %vm1186_vm14, 1, %v5715_v40  ;;  %v1119_v3 = vshrl.u32 %v5721_v21, %v3811_v8 }
 0x164   :  { %v1165_v58 = vsel %vm1164_vm15, 1, %v5715_v40  ;;  %v1189_v32 = vadd.s32 %v1187_v24, %v1181_v16  ;;  %vm1190_vm1 = vc.u32 %v1188_v12, %v1184_v36  ;;  %v1053_v1 = vsel %vm1051_vm12, %v1052_v34, %v3913_v10 }
 0x165   :  { %v1167_v51 = vadd.s32 %v1165_v58, %v1159_v19  ;;  %vm1168_vm0 = vc.u32 %v1166_v30, %v1162_v50  ;;  %v1183_v41 = vshrl.u32 %v1179_v15, 16  ;;  %v1191_v52 = vsel %vm1190_vm1, 1, %v5715_v40 }
 0x166   :  { %v1169_v48 = vsel %vm1168_vm0, 1, %v5715_v40  ;;  %v1161_v6 = vshrl.u32 %v1157_v13, 16  ;;  %v1193_v38 = vadd.s32 %v1191_v52, %v1189_v32  ;;  %v1272_v16 = vand.u32 31, %v1270_v31 }
 0x167   :  { %v1171_v59 = vadd.s32 %v1169_v48, %v1167_v51  ;;  %v887_v53 = vadd.s32 %v3665_v23, %v3645_v29  ;;  %v904_v8 = vshll.u32 %v3773_v7, %v3907_v47  ;;  %v1140_v19 = vsel %vm1138_vm8, %v3863_v62, 2102212464 }
 0x168   :  { %v1163_v34 = vshrl.u32 %v1158_v14, 16  ;;  %v1185_v30 = vshrl.u32 %v1180_v57, 16  ;;  %v1194_v15 = vadd.s32 %v1193_v38, %v1183_v41  ;;  %v3953_v24 = vsub.s32 32, %v1272_v16 }
 0x169   :  { %v1172_v50 = vadd.s32 %v1171_v59, %v1161_v6  ;;  %v905_v13 = vshrl.u32 %v887_v53, %v903_v0  ;;  %v908_v58 = vadd.s32 127, %v907_v42  ;;  %v1054_v32 = vclz %v1053_v1 }
 0x16a   :  { %v5660_v51 = vand.u32 2147483647, %v5732_v20  ;;  %v1139_v29 = vsel %vm1135_vm7, %v1119_v3, %v3856_v60  ;;  %v1141_v23 = vsel %vm1137_vm9, %v3858_v49, %v1140_v19  ;;  %v1195_v62 = vadd.s32 %v1194_v15, %v1185_v30 }
 0x16b   :  { %v3962_v7 = vadd.s32 %v1172_v50, %v1163_v34  ;;  %v1275_v47 = vshll.u32 %v5721_v21, %v1272_v16  ;;  %v1276_v57 = vshrl.u32 %v5719_v61, %v3953_v24  ;;  %v1278_v0 = vshll.u32 %v5719_v61, %v1272_v16 }
 0x16c   :  { %v1279_v14 = vshrl.u32 %v5720_v26, %v3953_v24  ;;  %v3970_v42 = vadd.s32 %v1188_v12, %v1184_v36  ;;  %v3972_v60 = vshrl.u32 %v1270_v31, 5  ;;  %v1281_v3 = vshll.u32 %v5720_v26, %v1272_v16 }
 0x16d   :  { %v1282_v49 = vshrl.u32 %v5718_v45, %v3953_v24  ;;  %v909_v1 = vshll.u32 %v908_v58, 23  ;;  %v2742_v48 = vadd.s32 4294967294, %v1054_v32  ;;  %v1199_v41 = vadd.s32 1, %v1195_v62 }
 0x16e   :  { %v1265_v52 = vand.u32 8388607, %v5660_v51  ;;  %vm1198_vm2 = vc.u32 %v3962_v7, %v3970_v42  ;;  %v1284_v6 = vshll.u32 %v5718_v45, %v1272_v16  ;;  %v1285_v31 = vshrl.u32 %v5722_v9, %v3953_v24 }
 0x16f   :  { %v1287_v36 = vshll.u32 %v5722_v9, %v1272_v16  ;;  %v1142_v12 = vsel %vm1136_vm11, %v1139_v29, %v1141_v23  ;;  %v3987_v59 = vor.u32 %v1276_v57, %v1275_v47  ;;  %v3989_v38 = vor.u32 %v1279_v14, %v1278_v0 }
 0x170   :  { %v1288_v53 = vshrl.u32 %v5702_v5, %v3953_v24  ;;  %v3993_v19 = vor.u32 %v1282_v49, %v1281_v3  ;;  %v1286_v34 = vor.u32 %v1285_v31, %v1284_v6  ;;  %vm1290_vm3 = vcmp.lt.s32.totalorder %v3972_v60, 1 }
 0x171   :  { %vm1293_vm4 = vcmp.lt.s32.totalorder %v3972_v60, 4  ;;  %v910_v50 = vor.u32 4788187, %v909_v1  ;;  %v1200_v30 = vsel %vm1198_vm2, %v1199_v41, %v1195_v62  ;;  %vm1292_vm5 = vcmp.lt.s32.totalorder %v3972_v60, 3 }
 0x172   :  { %v1289_v16 = vor.u32 %v1288_v53, %v1287_v36  ;;  %v617_v2 = vadd.f32 1.0, %v3921_v43  ;;  %v1196_v15 = vmul.u32 %v3881_v4, %v1142_v12  ;;  %v1266_v58 = vor.u32 8388608, %v1265_v52 }
 0x173   :  { %v1299_v32 = vsel %vm1293_vm4, %v1286_v34, 920167782  ;;  %v625_v29 = vmul.f32 %v3923_v18, %v3764_v63  ;;  %v767_v23 = vmul.f32 -0.001358992, %v3930_v39  ;;  %v906_v47 = vor.u32 %v905_v13, %v904_v8 }
 0x174   :  { %v1298_v62 = vsel %vm1290_vm3, %v3987_v59, %v3989_v38  ;;  %vm2743_vm7 = vcmp.lt.s32.totalorder %v2742_v48, 0  ;;  %v4009_v57 = vadd.s32 %v1200_v30, %v1196_v15  ;;  %v1300_v4 = vsel %vm1292_vm5, %v3993_v19, %v1299_v32  ;;  %v5739_v32 = vld [vmem:[#allocation16_spill] sm:$0xff] }
 0x175   :  { %v1303_v43 = vsel %vm1293_vm4, %v1289_v16, 1326507024  ;;  %v774_v63 = vmul.f32 -0.00019511016, %v3930_v39  ;;  %v911_v18 = vand.u32 2147483647, %v910_v50  ;;  %v1302_v8 = vsel %vm1290_vm3, %v3989_v38, %v3993_v19 }
 0x176   :  { %vm1291_vm8 = vcmp.lt.s32.totalorder %v3972_v60, 2  ;;  %vm630_vm9 = vcmp.eq.s32.totalorder %v3918_v11, 0  ;;  %v1304_v0 = vsel %vm1292_vm5, %v1286_v34, %v1303_v43  ;;  %v4027_v14 = vshll.u32 %v1266_v58, 8  ;;  %v5738_v58 = vld [vmem:[#allocation12_spill] sm:$0xff] }
 0x177   :  { %v1301_v13 = vsel %vm1291_vm8, %v1298_v62, %v1300_v4  ;;  %vm633_vm10 = vcmp.eq.s32.totalorder %v3918_v11, 2  ;;  %v5737_v3 = vsel %vm3848_vm6, 0, %v3891_v46  ;;  %v913_v1 = vcvt.s32.f32 %v906_v47 }
 0x178   :  { %v782_v49 = vadd.s32 3, %v5737_v3  ;;  %v1057_v41 = vsel %vm2743_vm7, 0, %v2742_v48  ;;  %v634_v52 = vxor.u32 2147483648, %v617_v2  ;;  %v1202_v6 = vadd.s32 536870912, %v4009_v57 }
 0x179   :  { %v1305_v31 = vsel %vm1291_vm8, %v1302_v8, %v1304_v0  ;;  %v1332_v36 = vshrl.u32 %v1301_v13, 16  ;;  %v631_v12 = vxor.u32 2147483648, %v625_v29  ;;  %v768_v53 = vadd.f32 0.041655596, %v767_v23 }
 0x17a   :  { %v775_v34 = vadd.f32 0.008332121, %v774_v63  ;;  %v914_v50 = vmul.f32 %v913_v1, %v911_v18  ;;  %v1062_v30 = vsub.s32 4294967266, %v1057_v41  ;;  %v1307_v16 = vand.u32 65535, %v4027_v14 }
 0x17b   :  { %v1309_v25 = vand.u32 65535, %v1305_v31  ;;  %v1310_v15 = vshrl.u32 %v1305_v31, 16  ;;  %v4038_v46 = vand.u32 3, %v782_v49  ;;  %vm795_vm6 = vcmp.lt.s32.totalorder %v5738_v58, 0 }
 0x17c   :  { %v1308_v48 = vshrl.u32 %v4027_v14, 16  ;;  %v1416_v47 = vand.u32 2139095040, %v5739_v32  ;;  %v4045_v62 = vsel %vm633_vm10, %v634_v52, %v625_v29  ;;  %v4047_v23 = vshrl.u32 %v1202_v6, 30 }
 0x17d   :  { %v1331_v4 = vand.u32 65535, %v1301_v13  ;;  %v1334_v43 = vmul.u32 %v1332_v36, %v1307_v16  ;;  %v4051_v63 = vsel %vm630_vm9, %v617_v2, %v631_v12  ;;  %v769_v18 = vmul.f32 %v768_v53, %v3930_v39 }
 0x17e   :  { %v5740_v8 = vand.u32 2147483647, %v5738_v58  ;;  %v1312_v3 = vmul.u32 %v1310_v15, %v1307_v16  ;;  %v4060_v49 = vmul.u32 %v1309_v25, %v1308_v48  ;;  %v776_v29 = vmul.f32 %v775_v34, %v3930_v39 }
 0x17f   :  { %v915_v1 = vxor.u32 2147483648, %v914_v50  ;;  %v1058_v13 = vsub.s32 32, %v1057_v41  ;;  %v1063_v52 = vadd.s32 127, %v1062_v30  ;;  %v1042_v2 = vadd.s32 %v3784_v33, %v3775_v22 }
 0x180   :  { %vm4056_vm11 = vcmp.le.f32.partialorder %v5740_v8, 0.7853982  ;;  %v1311_v6 = vmul.u32 %v1309_v25, %v1307_v16  ;;  %v1315_v31 = vshll.u32 %v1312_v3, 16  ;;  %v1417_v12 = vshrl.u32 %v1416_v47, 23 }
 0x181   :  { %v1204_v53 = vshll.u32 %v4047_v23, 30  ;;  %v1333_v8 = vmul.u32 %v1331_v4, %v1307_v16  ;;  %v4066_v51 = vmul.u32 %v1331_v4, %v1308_v48  ;;  %v1337_v56 = vshll.u32 %v1334_v43, 16 }
 0x182   :  { %v1314_v44 = vmul.u32 %v1310_v15, %v1308_v48  ;;  %v1317_v28 = vshll.u32 %v4060_v49, 16  ;;  %vm1319_vm12 = vc.u32 %v1311_v6, %v1315_v31  ;;  %v1321_v34 = vadd.s32 %v1315_v31, %v1311_v6 }
 0x183   :  { %v916_v30 = vsel %vm795_vm6, %v915_v1, %v914_v50  ;;  %v1060_v20 = vshrl.u32 %v1042_v2, %v1058_v13  ;;  %v1064_v55 = vshll.u32 %v1063_v52, 23  ;;  %v1320_v22 = vsel %vm1319_vm12, 1, %v5715_v40 }
 0x184   :  { %v1322_v33 = vadd.s32 %v1320_v22, %v1314_v44  ;;  %vm1323_vm13 = vc.u32 %v1321_v34, %v1317_v28  ;;  %v1336_v25 = vmul.u32 %v1332_v36, %v1308_v48  ;;  %vm1341_vm14 = vc.u32 %v1333_v8, %v1337_v56 }
 0x185   :  { %v1059_v16 = vshll.u32 %v3913_v10, %v1057_v41  ;;  %v4074_v47 = vsub.s32 %v4009_v57, %v1204_v53  ;;  %v1324_v15 = vsel %vm1323_vm13, 1, %v5715_v40  ;;  %v1342_v4 = vsel %vm1341_vm14, 1, %v5715_v40 }
 0x186   :  { %v1339_v6 = vshll.u32 %v4066_v51, 16  ;;  %v1343_v50 = vadd.s32 %v1337_v56, %v1333_v8  ;;  %v1344_v1 = vadd.s32 %v1342_v4, %v1336_v25  ;;  %v2750_v13 = vadd.s32 4294967169, %v1417_v12 }
 0x187   :  { %v770_v52 = vadd.f32 -0.4999988, %v769_v18  ;;  %v777_v2 = vadd.f32 -0.16666654, %v776_v29  ;;  %v4082_v28 = vsel %vm4056_vm11, %v5738_v58, %v916_v30  ;;  %v1061_v44 = vor.u32 %v1060_v20, %v1059_v16 }
 0x188   :  { %v1065_v10 = vor.u32 4788187, %v1064_v55  ;;  %v1326_v57 = vadd.s32 %v1324_v15, %v1322_v33  ;;  %vm1345_vm15 = vc.u32 %v1343_v50, %v1339_v6  ;;  %v1423_v41 = vadd.s32 1, %v2750_v13 }
 0x189   :  { %v1207_v36 = vsub.s32 0, %v4074_v47  ;;  %v1274_v48 = vshrl.u32 %v5721_v21, %v3953_v24  ;;  %v1295_v56 = vsel %vm1293_vm4, %v3993_v19, 2102212464  ;;  %v1346_v18 = vsel %vm1345_vm15, 1, %v5715_v40 }
 0x18a   :  { %v1316_v29 = vshrl.u32 %v1312_v3, 16  ;;  %v1338_v31 = vshrl.u32 %v1334_v43, 16  ;;  %v1348_v12 = vadd.s32 %v1346_v18, %v1344_v1  ;;  %vm1424_vm0 = vcmp.gt.s32.totalorder %v1423_v41, 0 }
 0x18b   :  { %v778_v55 = vmul.f32 %v777_v2, %v3930_v39  ;;  %v4094_v20 = vmul.f32 %v4082_v28, %v4082_v28  ;;  %vm1206_vm1 = vcmp.lt.s32.totalorder %v4074_v47, 0  ;;  %v1425_v53 = vsel %vm1424_vm0, %v1423_v41, 0 }
 0x18c   :  { %v1066_v24 = vand.u32 2147483647, %v1065_v10  ;;  %v1327_v8 = vadd.s32 %v1326_v57, %v1316_v29  ;;  %v1349_v34 = vadd.s32 %v1348_v12, %v1338_v31  ;;  %v5667_v19 = vand.u32 2147483647, %v5739_v32 }
 0x18d   :  { %v1294_v43 = vsel %vm1290_vm3, %v1274_v48, %v3987_v59  ;;  %v1296_v3 = vsel %vm1292_vm5, %v3989_v38, %v1295_v56  ;;  %v1340_v30 = vshrl.u32 %v4066_v51, 16  ;;  %v1427_v22 = vand.u32 31, %v1425_v53 }
 0x18e   :  { %v771_v33 = vmul.f32 %v770_v52, %v3930_v39  ;;  %v1068_v25 = vcvt.s32.f32 %v1061_v44  ;;  %v1208_v16 = vsel %vm1206_vm1, %v1207_v36, %v4074_v47  ;;  %v1318_v15 = vshrl.u32 %v4060_v49, 16  ;;  %v5743_v39 = vld [vmem:[#allocation20_spill] sm:$0xff] }
 0x18f   :  { %v779_v4 = vadd.f32 1.0, %v778_v55  ;;  %v922_v1 = vmul.f32 -0.001358992, %v4094_v20  ;;  %v1350_v13 = vadd.s32 %v1349_v34, %v1340_v30  ;;  %v4109_v2 = vsub.s32 32, %v1427_v22 }
 0x190   :  { %v929_v59 = vmul.f32 -0.00019511016, %v4094_v20  ;;  %v1069_v10 = vmul.f32 %v1068_v25, %v1066_v24  ;;  %v1297_v51 = vsel %vm1291_vm8, %v1294_v43, %v1296_v3  ;;  %v4114_v38 = vadd.s32 %v1327_v8, %v1318_v15  ;;  %v5747_v3 = vld [vmem:[#allocation7_spill] sm:$0xff] }
 0x191   :  { %vm629_vm2 = vcmp.lt.s32.totalorder %v3918_v11, 2  ;;  %vm950_vm3 = vcmp.lt.s32.totalorder %v5743_v39, 0  ;;  %v1209_v52 = vclz %v1208_v16  ;;  %v4118_v49 = vadd.s32 %v1343_v50, %v1339_v6 }
 0x192   :  { %v1420_v44 = vand.u32 8388607, %v5667_v19  ;;  %v1434_v57 = vshrl.u32 %v5720_v26, %v4109_v2  ;;  %v4124_v41 = vshrl.u32 %v1425_v53, 5  ;;  %v1437_v60 = vshrl.u32 %v5718_v45, %v4109_v2 }
 0x193   :  { %v1439_v36 = vshll.u32 %v5718_v45, %v1427_v22  ;;  %v1440_v48 = vshrl.u32 %v5722_v9, %v4109_v2  ;;  %v1354_v56 = vadd.s32 1, %v1350_v13  ;;  %v1431_v6 = vshrl.u32 %v5719_v61, %v4109_v2 }
 0x194   :  { %v1433_v50 = vshll.u32 %v5719_v61, %v1427_v22  ;;  %v1436_v18 = vshll.u32 %v5720_v26, %v1427_v22  ;;  %v5744_v29 = vand.u32 2147483647, %v5743_v39  ;;  %vm1353_vm5 = vc.u32 %v4114_v38, %v4118_v49 }
 0x195   :  { %v1441_v12 = vor.u32 %v1440_v48, %v1439_v36  ;;  %v1442_v55 = vshll.u32 %v5722_v9, %v1427_v22  ;;  %v1443_v53 = vshrl.u32 %v5702_v5, %v4109_v2  ;;  %v1421_v24 = vor.u32 8388608, %v1420_v44 }
 0x196   :  { %vm4137_vm4 = vcmp.le.f32.partialorder %v5744_v29, 0.7853982  ;;  %v1430_v8 = vshll.u32 %v5721_v21, %v1427_v22  ;;  %v4147_v34 = vor.u32 %v1434_v57, %v1433_v50  ;;  %v4149_v43 = vor.u32 %v1437_v60, %v1436_v18 }
 0x197   :  { %vm471_vm7 = vweird.f32 %v5747_v3  ;;  %v917_v30 = vsub.s32 4, %v3740_v17  ;;  %v923_v25 = vadd.f32 0.041655596, %v922_v1  ;;  %v1070_v16 = vxor.u32 2147483648, %v1069_v10 }
 0x198   :  { %v1444_v15 = vor.u32 %v1443_v53, %v1442_v55  ;;  %vm626_vm8 = vweird.f32 %v3080_v54  ;;  %v930_v36 = vadd.f32 0.008332121, %v929_v59  ;;  %v1355_v48 = vsel %vm1353_vm5, %v1354_v56, %v1350_v13 }
 0x199   :  { %v4154_v29 = vor.u32 %v1431_v6, %v1430_v8  ;;  %vm1448_vm9 = vcmp.lt.s32.totalorder %v4124_v41, 4  ;;  %v1351_v22 = vmul.u32 %v4027_v14, %v1297_v51  ;;  %vm1445_vm10 = vcmp.lt.s32.totalorder %v4124_v41, 1 }
 0x19a   :  { %v1454_v44 = vsel %vm1448_vm9, %v1441_v12, 920167782  ;;  %v1458_v1 = vsel %vm1448_vm9, %v1444_v15, 1326507024  ;;  %v2745_v57 = vadd.s32 4294967294, %v1209_v52  ;;  %vm1447_vm12 = vcmp.lt.s32.totalorder %v4124_v41, 3 }
 0x19b   :  { %v1457_v13 = vsel %vm1445_vm10, %v4147_v34, %v4149_v43  ;;  %v4168_v59 = vshll.u32 %v1421_v24, 8  ;;  %v636_v14 = vsel %vm629_vm2, %v4051_v63, %v4045_v62  ;;  %v1071_v51 = vsel %vm950_vm3, %v1070_v16, %v1069_v10 }
 0x19c   :  { %v1356_v60 = vadd.s32 %v1355_v48, %v1351_v22  ;;  %v1459_v52 = vsel %vm1447_vm12, %v1441_v12, %v1458_v1  ;;  %v4178_v56 = vadd.f32 1.0, %v771_v33  ;;  %vm1446_vm13 = vcmp.lt.s32.totalorder %v4124_v41, 2 }
 0x19d   :  { %v1453_v6 = vsel %vm1445_vm10, %v4154_v29, %v4147_v34  ;;  %v1455_v11 = vsel %vm1447_vm12, %v4149_v43, %v1454_v44  ;;  %v4189_v62 = vmul.f32 %v779_v4, %v3905_v27  ;;  %v918_v63 = vsel %vm795_vm6, %v917_v30, %v3740_v17 }
 0x19e   :  { %v924_v33 = vmul.f32 %v923_v25, %v4094_v20  ;;  %v1460_v10 = vsel %vm1446_vm13, %v1457_v13, %v1459_v52  ;;  %v931_v50 = vmul.f32 %v930_v36, %v4094_v20  ;;  %v4201_v18 = vsel %vm4137_vm4, %v5743_v39, %v1071_v51 }
 0x19f   :  { %vm2746_vm14 = vcmp.lt.s32.totalorder %v2745_v57, 0  ;;  %v1462_v27 = vand.u32 65535, %v4168_v59  ;;  %v1357_v4 = vadd.s32 536870912, %v1356_v60  ;;  %v1456_v12 = vsel %vm1446_vm13, %v1453_v6, %v1455_v11 }
 0x1a0   :  { %v1464_v17 = vand.u32 65535, %v1460_v10  ;;  %v1465_v55 = vshrl.u32 %v1460_v10, 16  ;;  %v4209_v53 = vsel %vm471_vm7, nan, %v3870_v35  ;;  %vm785_vm6 = vcmp.eq.s32.totalorder %v4038_v46, 0 }
 0x1a1   :  { %5748 = vst [vmem:[#allocation29_spill] sm:$0xff] %v4209_v53  ;;  %v1072_v24 = vsub.s32 4, %v3861_v37  ;;  %v1463_v8 = vshrl.u32 %v4168_v59, 16  ;;  %v4216_v30 = vsel %vm626_vm8, nan, %v636_v14  ;;  %v786_v25 = vxor.u32 2147483648, %v4189_v62 }
 0x1a2   :  { %5749 = vst [vmem:[#allocation12_spill] sm:$0xff] %v4216_v30  ;;  %v4221_v16 = vmul.f32 %v4201_v18, %v4201_v18  ;;  %v1467_v15 = vmul.u32 %v1465_v55, %v1462_v27  ;;  %v920_v35 = vsel %vm4056_vm11, 0, %v918_v63  ;;  %v4225_v3 = vsel %vm2746_vm14, 0, %v2745_v57 }
 0x1a3   :  { %v4227_v36 = vmul.u32 %v1464_v17, %v1463_v8  ;;  %v1487_v48 = vshrl.u32 %v1456_v12, 16  ;;  %v925_v54 = vadd.f32 -0.4999988, %v924_v33  ;;  %v932_v44 = vadd.f32 -0.16666654, %v931_v50 }
 0x1a4   :  { %v4230_v1 = vshrl.u32 %v1357_v4, 30  ;;  %v4235_v13 = vsel %vm950_vm3, %v1072_v24, %v3861_v37  ;;  %v1466_v14 = vmul.u32 %v1464_v17, %v1462_v27  ;;  %v1470_v51 = vshll.u32 %v1467_v15, 16 }
 0x1a5   :  { %v1486_v0 = vand.u32 65535, %v1456_v12  ;;  %v4240_v57 = vsel %vm785_vm6, %v4178_v56, %v786_v25  ;;  %v4242_v52 = vadd.s32 3, %v920_v35  ;;  %v1077_v6 = vmul.f32 -0.001358992, %v4221_v16 }
 0x1a6   :  { %5750 = vst [vmem:[#allocation7_spill] sm:$0xff] %v4230_v1  ;;  %v1217_v11 = vsub.s32 4294967266, %v4225_v3  ;;  %v1472_v63 = vshll.u32 %v4227_v36, 16  ;;  %vm1474_vm11 = vc.u32 %v1466_v14, %v1470_v51  ;;  %v1476_v33 = vadd.s32 %v1470_v51, %v1466_v14 }
 0x1a7   :  { %v1489_v37 = vmul.u32 %v1487_v48, %v1462_v27  ;;  %v926_v10 = vmul.f32 %v925_v54, %v4094_v20  ;;  %v1359_v4 = vshll.u32 %v4230_v1, 30  ;;  %v1469_v12 = vmul.u32 %v1465_v55, %v1463_v8 }
 0x1a8   :  { %v933_v17 = vmul.f32 %v932_v44, %v4094_v20  ;;  %v1475_v24 = vsel %vm1474_vm11, 1, %v5715_v40  ;;  %vm1478_vm15 = vc.u32 %v1476_v33, %v1472_v63  ;;  %v1490_v25 = vmul.u32 %v1486_v0, %v1463_v8  ;;  %v5751_v44 = vld [vmem:[#allocation21_spill] sm:$0xff] }
 0x1a9   :  { %v1084_v35 = vmul.f32 -0.00019511016, %v4221_v16  ;;  %v1197_v14 = vadd.s32 %v3970_v42, %v3962_v7  ;;  %v1477_v51 = vadd.s32 %v1475_v24, %v1469_v12  ;;  %v1479_v54 = vsel %vm1478_vm15, 1, %v5715_v40 }
 0x1aa   :  { %v1078_v19 = vadd.f32 0.041655596, %v1077_v6  ;;  %v1218_v22 = vadd.s32 127, %v1217_v11  ;;  %v1488_v50 = vmul.u32 %v1486_v0, %v1462_v27  ;;  %v1492_v30 = vshll.u32 %v1489_v37, 16 }
 0x1ab   :  { %v4258_v53 = vsub.s32 %v1356_v60, %v1359_v4  ;;  %v1471_v55 = vshrl.u32 %v1467_v15, 16  ;;  %v1481_v20 = vadd.s32 %v1479_v54, %v1477_v51  ;;  %v1571_v32 = vand.u32 2139095040, %v5751_v44 }
 0x1ac   :  { %v1491_v63 = vmul.u32 %v1487_v48, %v1463_v8  ;;  %v1494_v33 = vshll.u32 %v1490_v25, 16  ;;  %vm1496_vm0 = vc.u32 %v1488_v50, %v1492_v30  ;;  %v1498_v1 = vadd.s32 %v1492_v30, %v1488_v50 }
 0x1ad   :  { %v1085_v39 = vadd.f32 0.008332121, %v1084_v35  ;;  %v1213_v7 = vsub.s32 32, %v4225_v3  ;;  %v1482_v42 = vadd.s32 %v1481_v20, %v1471_v55  ;;  %v1497_v12 = vsel %vm1496_vm0, 1, %v5715_v40 }
 0x1ae   :  { %vm788_vm1 = vcmp.eq.s32.totalorder %v4038_v46, 2  ;;  %v1450_v60 = vsel %vm1448_vm9, %v4149_v43, 2102212464  ;;  %v1499_v27 = vadd.s32 %v1497_v12, %v1491_v63  ;;  %vm1500_vm2 = vc.u32 %v1498_v1, %v1494_v33 }
 0x1af   :  { %v1572_v15 = vshrl.u32 %v1571_v32, 23  ;;  %vm784_vm3 = vcmp.lt.s32.totalorder %v4038_v46, 2  ;;  %v1219_v8 = vshll.u32 %v1218_v22, 23  ;;  %v1429_v30 = vshrl.u32 %v5721_v21, %v4109_v2 }
 0x1b0   :  { %v1473_v48 = vshrl.u32 %v4227_v36, 16  ;;  %v1501_v0 = vsel %vm1500_vm2, 1, %v5715_v40  ;;  %v1362_v6 = vsub.s32 0, %v4258_v53  ;;  %v1493_v11 = vshrl.u32 %v1489_v37, 16 }
 0x1b1   :  { %v1503_v50 = vadd.s32 %v1501_v0, %v1499_v27  ;;  %v2753_v4 = vadd.s32 4294967169, %v1572_v15  ;;  %vm1361_vm5 = vcmp.lt.s32.totalorder %v4258_v53, 0  ;;  %v1449_v32 = vsel %vm1445_vm10, %v1429_v30, %v4154_v29 }
 0x1b2   :  { %v1451_v43 = vsel %vm1447_vm12, %v4147_v34, %v1450_v60  ;;  %v4280_v2 = vadd.s32 %v1482_v42, %v1473_v48  ;;  %v1215_v36 = vshrl.u32 %v1197_v14, %v1213_v7  ;;  %v1495_v22 = vshrl.u32 %v1490_v25, 16 }
 0x1b3   :  { %v1504_v24 = vadd.s32 %v1503_v50, %v1493_v11  ;;  %v1578_v35 = vadd.s32 1, %v2753_v4  ;;  %v4282_v51 = vadd.f32 1.0, %v926_v10  ;;  %v1214_v37 = vshll.u32 %v4074_v47, %v4225_v3 }
 0x1b4   :  { %v1220_v54 = vor.u32 4788187, %v1219_v8  ;;  %v4286_v55 = vadd.s32 %v1498_v1, %v1494_v33  ;;  %v1363_v29 = vsel %vm1361_vm5, %v1362_v6, %v4258_v53  ;;  %v1452_v20 = vsel %vm1446_vm13, %v1449_v32, %v1451_v43 }
 0x1b5   :  { %v1505_v34 = vadd.s32 %v1504_v24, %v1495_v22  ;;  %vm1579_vm7 = vcmp.gt.s32.totalorder %v1578_v35, 0  ;;  %v934_v63 = vadd.f32 1.0, %v933_v17  ;;  %v1079_v25 = vmul.f32 %v1078_v19, %v4221_v16 }
 0x1b6   :  { %vm1508_vm8 = vc.u32 %v4280_v2, %v4286_v55  ;;  %v1580_v10 = vsel %vm1579_vm7, %v1578_v35, 0  ;;  %v1086_v14 = vmul.f32 %v1085_v39, %v4221_v16  ;;  %v1216_v47 = vor.u32 %v1215_v36, %v1214_v37 }
 0x1b7   :  { %v1509_v3 = vadd.s32 1, %v1505_v34  ;;  %v1582_v1 = vand.u32 31, %v1580_v10  ;;  %v5752_v33 = vxor.u32 2147483648, %v4178_v56  ;;  %v4301_v7 = vand.u32 3, %v4242_v52 }
 0x1b8   :  { %v1364_v17 = vclz %v1363_v29  ;;  %v1506_v19 = vmul.u32 %v4168_v59, %v1452_v20  ;;  %v1221_v39 = vand.u32 2147483647, %v1220_v54  ;;  %v935_v56 = vmul.f32 %v934_v63, %v4082_v28 }
 0x1b9   :  { %v790_v41 = vsel %vm788_vm1, %v5752_v33, %v4189_v62  ;;  %v1510_v12 = vsel %vm1508_vm8, %v1509_v3, %v1505_v34  ;;  %v4309_v60 = vsub.s32 32, %v1582_v1  ;;  %v5754_v62 = vsel %vm4137_vm4, 0, %v4235_v13  ;;  %v5755_v13 = vld [vmem:[#allocation25_spill] sm:$0xff] }
 0x1ba   :  { %v4307_v42 = vsel %vm784_vm3, %v4240_v57, %v790_v41  ;;  %v1092_v52 = vadd.s32 3, %v5754_v62  ;;  %v1511_v27 = vadd.s32 %v1510_v12, %v1506_v19  ;;  %v5674_v15 = vand.u32 2147483647, %v5751_v44 }
 0x1bb   :  { %5753 = vst [vmem:[#allocation21_spill] sm:$0xff] %v4307_v42  ;;  %v944_v59 = vxor.u32 2147483648, %v4282_v51  ;;  %v1080_v8 = vadd.f32 -0.4999988, %v1079_v25  ;;  %v1087_v46 = vadd.f32 -0.16666654, %v1086_v14  ;;  %v1223_v57 = vcvt.s32.f32 %v1216_v47 }
 0x1bc   :  { %vm940_vm9 = vcmp.eq.s32.totalorder %v4301_v7, 0  ;;  %vm943_vm10 = vcmp.eq.s32.totalorder %v4301_v7, 2  ;;  %v2748_v30 = vadd.s32 4294967294, %v1364_v17  ;;  %v1512_v48 = vadd.s32 536870912, %v1511_v27 }
 0x1bd   :  { %v1586_v28 = vshrl.u32 %v5719_v61, %v4309_v60  ;;  %v1589_v31 = vshrl.u32 %v5720_v26, %v4309_v60  ;;  %vm1105_vm4 = vcmp.lt.s32.totalorder %v5755_v13, 0  ;;  %v1224_v0 = vmul.f32 %v1223_v57, %v1221_v39 }
 0x1be   :  { %v1592_v6 = vshrl.u32 %v5718_v45, %v4309_v60  ;;  %v1594_v11 = vshll.u32 %v5718_v45, %v1582_v1  ;;  %v1595_v50 = vshrl.u32 %v5722_v9, %v4309_v60  ;;  %v1575_v4 = vand.u32 8388607, %v5674_v15 }
 0x1bf   :  { %v4332_v32 = vshrl.u32 %v1580_v10, 5  ;;  %v1585_v43 = vshll.u32 %v5721_v21, %v1582_v1  ;;  %v1588_v36 = vshll.u32 %v5719_v61, %v1582_v1  ;;  %v1088_v22 = vmul.f32 %v1087_v46, %v4221_v16 }
 0x1c0   :  { %v1591_v24 = vshll.u32 %v5720_v26, %v1582_v1  ;;  %v1596_v35 = vor.u32 %v1595_v50, %v1594_v11  ;;  %v1598_v37 = vshrl.u32 %v5702_v5, %v4309_v60  ;;  %vm939_vm12 = vcmp.lt.s32.totalorder %v4301_v7, 2 }
 0x1c1   :  { %v5756_v54 = vand.u32 2147483647, %v5755_v13  ;;  %vm2749_vm14 = vcmp.lt.s32.totalorder %v2748_v30, 0  ;;  %v4347_v20 = vshrl.u32 %v1512_v48, 30  ;;  %v4349_v34 = vor.u32 %v1586_v28, %v1585_v43  ;;  %v5759_v28 = vld [vmem:[#allocation26_spill] sm:$0xff] }
 0x1c2   :  { %v4351_v63 = vor.u32 %v1589_v31, %v1588_v36  ;;  %v941_v25 = vxor.u32 2147483648, %v935_v56  ;;  %v1081_v10 = vmul.f32 %v1080_v8, %v4221_v16  ;;  %v1593_v14 = vor.u32 %v1592_v6, %v1591_v24 }
 0x1c3   :  { %vm4343_vm13 = vcmp.le.f32.partialorder %v5756_v54, 0.7853982  ;;  %v1597_v47 = vshll.u32 %v5722_v9, %v1582_v1  ;;  %v4355_v3 = vand.u32 3, %v1092_v52  ;;  %v1225_v33 = vxor.u32 2147483648, %v1224_v0 }
 0x1c4   :  { %v1576_v41 = vor.u32 8388608, %v1575_v4  ;;  %vm1603_vm6 = vcmp.lt.s32.totalorder %v4332_v32, 4  ;;  %v4358_v17 = vsel %vm2749_vm14, 0, %v2748_v30  ;;  %vm1600_vm11 = vcmp.lt.s32.totalorder %v4332_v32, 1 }
 0x1c5   :  { %v1599_v19 = vor.u32 %v1598_v37, %v1597_v47  ;;  %v1609_v39 = vsel %vm1603_vm6, %v1596_v35, 920167782  ;;  %v1089_v12 = vadd.f32 1.0, %v1088_v22  ;;  %v1514_v16 = vshll.u32 %v4347_v20, 30 }
 0x1c6   :  { %vm1602_vm15 = vcmp.lt.s32.totalorder %v4332_v32, 3  ;;  %v1608_v1 = vsel %vm1600_vm11, %v4349_v34, %v4351_v63  ;;  %v942_v62 = vsel %vm940_vm9, %v4282_v51, %v941_v25  ;;  %v945_v52 = vsel %vm943_vm10, %v944_v59, %v935_v56 }
 0x1c7   :  { %v4374_v8 = vadd.f32 1.0, %v1081_v10  ;;  %v1610_v46 = vsel %vm1602_vm15, %v1593_v14, %v1609_v39  ;;  %v1226_v57 = vsel %vm1105_vm4, %v1225_v33, %v1224_v0  ;;  %v1372_v30 = vsub.s32 4294967266, %v4358_v17 }
 0x1c8   :  { %vm1601_vm0 = vcmp.lt.s32.totalorder %v4332_v32, 2  ;;  %v4382_v48 = vshll.u32 %v1576_v41, 8  ;;  %v1612_v56 = vsel %vm1600_vm11, %v4351_v63, %v1593_v14  ;;  %v1613_v59 = vsel %vm1603_vm6, %v1599_v19, 1326507024 }
 0x1c9   :  { %v1611_v51 = vsel %vm1601_vm0, %v1608_v1, %v1610_v46  ;;  %v1726_v31 = vand.u32 2139095040, %v5759_v28  ;;  %v4393_v0 = vmul.f32 %v1089_v12, %v4201_v18  ;;  %v1227_v6 = vsub.s32 4, %v4047_v23 }
 0x1ca   :  { %v4396_v11 = vsub.s32 %v1511_v27, %v1514_v16  ;;  %v1614_v50 = vsel %vm1602_vm15, %v1596_v35, %v1613_v59  ;;  %v4402_v4 = vsel %vm939_vm12, %v942_v62, %v945_v52  ;;  %v1099_v43 = vxor.u32 2147483648, %v4374_v8 }
 0x1cb   :  { %v4408_v36 = vsel %vm4343_vm13, %v5755_v13, %v1226_v57  ;;  %v1641_v18 = vand.u32 65535, %v1611_v51  ;;  %v4410_v22 = vadd.s32 127, %v1372_v30  ;;  %v1615_v27 = vsel %vm1601_vm0, %v1612_v56, %v1614_v50 }
 0x1cc   :  { %v1617_v24 = vand.u32 65535, %v4382_v48  ;;  %v1642_v35 = vshrl.u32 %v1611_v51, 16  ;;  %v1618_v7 = vshrl.u32 %v4382_v48, 16  ;;  %v1619_v37 = vand.u32 65535, %v1615_v27 }
 0x1cd   :  { %v1620_v54 = vshrl.u32 %v1615_v27, 16  ;;  %v1727_v25 = vshrl.u32 %v1726_v31, 23  ;;  %v1096_v10 = vxor.u32 2147483648, %v4393_v0  ;;  %v4420_v47 = vsel %vm1105_vm4, %v1227_v6, %v4047_v23 }
 0x1ce   :  { %v1517_v33 = vsub.s32 0, %v4396_v11  ;;  %v1644_v41 = vmul.u32 %v1642_v35, %v1617_v24  ;;  %v4425_v19 = vmul.f32 %v4408_v36, %v4408_v36  ;;  %v1352_v39 = vadd.s32 %v4118_v49, %v4114_v38 }
 0x1cf   :  { %vm1516_vm1 = vcmp.lt.s32.totalorder %v4396_v11, 0  ;;  %v1645_v12 = vmul.u32 %v1641_v18, %v1618_v7  ;;  %v1368_v16 = vsub.s32 32, %v4358_v17  ;;  %v1374_v1 = vshll.u32 %v4410_v22, 23 }
 0x1d0   :  { %v1622_v62 = vmul.u32 %v1620_v54, %v1617_v24  ;;  %v1623_v23 = vmul.u32 %v1619_v37, %v1618_v7  ;;  %v1584_v52 = vshrl.u32 %v5721_v21, %v4309_v60  ;;  %v1605_v46 = vsel %vm1603_vm6, %v1593_v14, 2102212464 }
 0x1d1   :  { %v1647_v57 = vshll.u32 %v1644_v41, 16  ;;  %v2756_v30 = vadd.s32 4294967169, %v1727_v25  ;;  %v1518_v51 = vsel %vm1516_vm1, %v1517_v33, %v4396_v11  ;;  %v1621_v38 = vmul.u32 %v1619_v37, %v1617_v24 }
 0x1d2   :  { %v1625_v49 = vshll.u32 %v1622_v62, 16  ;;  %v1643_v56 = vmul.u32 %v1641_v18, %v1617_v24  ;;  %v1624_v59 = vmul.u32 %v1620_v54, %v1618_v7  ;;  %v1627_v31 = vshll.u32 %v1623_v23, 16 }
 0x1d3   :  { %v1646_v6 = vmul.u32 %v1642_v35, %v1618_v7  ;;  %v1649_v50 = vshll.u32 %v1645_v12, 16  ;;  %vm1095_vm2 = vcmp.eq.s32.totalorder %v4355_v3, 0  ;;  %v1604_v14 = vsel %vm1600_vm11, %v1584_v52, %v4349_v34 }
 0x1d4   :  { %vm1629_vm3 = vc.u32 %v1621_v38, %v1625_v49  ;;  %v1631_v22 = vadd.s32 %v1625_v49, %v1621_v38  ;;  %vm1651_vm5 = vc.u32 %v1643_v56, %v1647_v57  ;;  %v1653_v60 = vadd.s32 %v1647_v57, %v1643_v56 }
 0x1d5   :  { %v1606_v27 = vsel %vm1602_vm15, %v4351_v63, %v1605_v46  ;;  %v1630_v18 = vsel %vm1629_vm3, 1, %v5715_v40  ;;  %v1652_v24 = vsel %vm1651_vm5, 1, %v5715_v40  ;;  %vm936_vm7 = vweird.f32 %v5738_v58 }
 0x1d6   :  { %v1632_v35 = vadd.s32 %v1630_v18, %v1624_v59  ;;  %vm1633_vm8 = vc.u32 %v1631_v22, %v1627_v31  ;;  %v1654_v7 = vadd.s32 %v1652_v24, %v1646_v6  ;;  %vm1655_vm9 = vc.u32 %v1653_v60, %v1649_v50 }
 0x1d7   :  { %vm1098_vm10 = vcmp.eq.s32.totalorder %v4355_v3, 2  ;;  %v1519_v37 = vclz %v1518_v51  ;;  %v1634_v54 = vsel %vm1633_vm8, 1, %v5715_v40  ;;  %v1648_v34 = vshrl.u32 %v1644_v41, 16 }
 0x1d8   :  { %v1656_v25 = vsel %vm1655_vm9, 1, %v5715_v40  ;;  %vm1094_vm4 = vcmp.lt.s32.totalorder %v4355_v3, 2  ;;  %v1626_v63 = vshrl.u32 %v1622_v62, 16  ;;  %v1636_v33 = vadd.s32 %v1634_v54, %v1632_v35 }
 0x1d9   :  { %v1658_v52 = vadd.s32 %v1656_v25, %v1654_v7  ;;  %v1733_v46 = vadd.s32 1, %v2756_v30  ;;  %v1232_v57 = vmul.f32 -0.001358992, %v4425_v19  ;;  %v1369_v38 = vshll.u32 %v4258_v53, %v4358_v17 }
 0x1da   :  { %v1370_v49 = vshrl.u32 %v1352_v39, %v1368_v16  ;;  %v1628_v56 = vshrl.u32 %v1623_v23, 16  ;;  %v1637_v59 = vadd.s32 %v1636_v33, %v1626_v63  ;;  %v1650_v51 = vshrl.u32 %v1645_v12, 16  ;;  %v5761_v63 = vld [vmem:[#allocation32_spill] sm:$0xff] }
 0x1db   :  { %v1659_v31 = vadd.s32 %v1658_v52, %v1648_v34  ;;  %vm1734_vm12 = vcmp.gt.s32.totalorder %v1733_v46, 0  ;;  %v1375_v41 = vor.u32 4788187, %v1374_v1  ;;  %v2751_v6 = vadd.s32 4294967294, %v1519_v37 }
 0x1dc   :  { %v1607_v22 = vsel %vm1601_vm0, %v1604_v14, %v1606_v27  ;;  %v1735_v62 = vsel %vm1734_vm12, %v1733_v46, 0  ;;  %v4456_v18 = vadd.s32 %v1637_v59, %v1628_v56  ;;  %v4458_v30 = vadd.s32 %v1653_v60, %v1649_v50 }
 0x1dd   :  { %v1660_v24 = vadd.s32 %v1659_v31, %v1650_v51  ;;  %v1737_v35 = vand.u32 31, %v1735_v62  ;;  %v1097_v53 = vsel %vm1095_vm2, %v4374_v8, %v1096_v10  ;;  %v1230_v17 = vsel %vm4343_vm13, 0, %v4420_v47  ;;  %v5760_v47 = vld [vmem:[#allocation20_spill] sm:$0xff] }
 0x1de   :  { %v1233_v39 = vadd.f32 0.041655596, %v1232_v57  ;;  %v1239_v32 = vmul.f32 -0.00019511016, %v4425_v19  ;;  %v1371_v12 = vor.u32 %v1370_v49, %v1369_v38  ;;  %vm1663_vm14 = vc.u32 %v4456_v18, %v4458_v30 }
 0x1df   :  { %v1664_v16 = vadd.s32 1, %v1660_v24  ;;  %v5673_v1 = vand.u32 2147483647, %v5759_v28  ;;  %v4475_v23 = vsel %vm936_vm7, nan, %v4402_v4  ;;  %vm2752_vm6 = vcmp.lt.s32.totalorder %v2751_v6, 0 }
 0x1e0   :  { %v1661_v10 = vmul.u32 %v4382_v48, %v1607_v22  ;;  %v4478_v29 = vsub.s32 32, %v1737_v35  ;;  %vm1091_vm13 = vweird.f32 %v5760_v47  ;;  %v1100_v50 = vsel %vm1098_vm10, %v1099_v43, %v4393_v0 }
 0x1e1   :  { %v1247_v60 = vadd.s32 3, %v1230_v17  ;;  %v1376_v14 = vand.u32 2147483647, %v1375_v41  ;;  %v1665_v27 = vsel %vm1663_vm14, %v1664_v16, %v1660_v24  ;;  %v1101_v58 = vsel %vm1094_vm4, %v1097_v53, %v1100_v50  ;;  %v5765_v50 = vld [vmem:[#allocation7_spill] sm:$0xff] }
 0x1e2   :  { %v1234_v4 = vmul.f32 %v1233_v39, %v4425_v19  ;;  %v1240_v7 = vadd.f32 0.008332121, %v1239_v32  ;;  %v1666_v48 = vadd.s32 %v1665_v27, %v1661_v10  ;;  %v1378_v37 = vcvt.s32.f32 %v1371_v12 }
 0x1e3   :  { %v4489_v54 = vsel %vm2752_vm6, 0, %v2751_v6  ;;  %v1730_v34 = vand.u32 8388607, %v5673_v1  ;;  %v1750_v8 = vshrl.u32 %v5722_v9, %v4478_v29  ;;  %v1744_v43 = vshrl.u32 %v5720_v26, %v4478_v29 }
 0x1e4   :  { %v1667_v0 = vadd.s32 536870912, %v1666_v48  ;;  %v1747_v3 = vshrl.u32 %v5718_v45, %v4478_v29  ;;  %v1749_v25 = vshll.u32 %v5718_v45, %v1737_v35  ;;  %vm1260_vm11 = vcmp.lt.s32.totalorder %v5761_v63, 0 }
 0x1e5   :  { %v1379_v33 = vmul.f32 %v1378_v37, %v1376_v14  ;;  %v4501_v52 = vshrl.u32 %v1735_v62, 5  ;;  %v1741_v46 = vshrl.u32 %v5719_v61, %v4478_v29  ;;  %v1753_v57 = vshrl.u32 %v5702_v5, %v4478_v29 }
 0x1e6   :  { %v4507_v38 = vshrl.u32 %v1667_v0, 30  ;;  %v1743_v49 = vshll.u32 %v5719_v61, %v1737_v35  ;;  %v1746_v56 = vshll.u32 %v5720_v26, %v1737_v35  ;;  %v1751_v59 = vor.u32 %v1750_v8, %v1749_v25 }
 0x1e7   :  { %v1527_v51 = vsub.s32 4294967266, %v4489_v54  ;;  %v1731_v31 = vor.u32 8388608, %v1730_v34  ;;  %v1740_v41 = vshll.u32 %v5721_v21, %v1737_v35  ;;  %v1752_v6 = vshll.u32 %v5722_v9, %v1737_v35 }
 0x1e8   :  { %v1241_v22 = vmul.f32 %v1240_v7, %v4425_v19  ;;  %v4515_v62 = vand.u32 3, %v1247_v60  ;;  %v5762_v24 = vand.u32 2147483647, %v5761_v63  ;;  %v4523_v17 = vor.u32 %v1744_v43, %v1743_v49 }
 0x1e9   :  { %v4525_v39 = vor.u32 %v1747_v3, %v1746_v56  ;;  %v1669_v32 = vshll.u32 %v4507_v38, 30  ;;  %v4528_v12 = vor.u32 %v1741_v46, %v1740_v41  ;;  %v1754_v16 = vor.u32 %v1753_v57, %v1752_v6 }
 0x1ea   :  { %vm4519_vm15 = vcmp.le.f32.partialorder %v5762_v24, 0.7853982  ;;  %vm1758_vm0 = vcmp.lt.s32.totalorder %v4501_v52, 4  ;;  %v4533_v35 = vsel %vm1091_vm13, nan, %v1101_v58  ;;  %v1235_v10 = vadd.f32 -0.4999988, %v1234_v4 }
 0x1eb   :  { %v1382_v60 = vsub.s32 4, %v5765_v50  ;;  %v1764_v14 = vsel %vm1758_vm0, %v1751_v59, 920167782  ;;  %v1380_v27 = vxor.u32 2147483648, %v1379_v33  ;;  %v1528_v7 = vadd.s32 127, %v1527_v51 }
 0x1ec   :  { %vm1755_vm1 = vcmp.lt.s32.totalorder %v4501_v52, 1  ;;  %v4539_v37 = vshll.u32 %v1731_v31, 8  ;;  %v1242_v34 = vadd.f32 -0.16666654, %v1241_v22  ;;  %v1523_v8 = vsub.s32 32, %v4489_v54 }
 0x1ed   :  { %vm1757_vm2 = vcmp.lt.s32.totalorder %v4501_v52, 3  ;;  %v1767_v47 = vsel %vm1755_vm1, %v4523_v17, %v4525_v39  ;;  %v4547_v58 = vsub.s32 %v1666_v48, %v1669_v32  ;;  %v1763_v4 = vsel %vm1755_vm1, %v4528_v12, %v4523_v17 }
 0x1ee   :  { %v1765_v0 = vsel %vm1757_vm2, %v4525_v39, %v1764_v14  ;;  %v1768_v43 = vsel %vm1758_vm0, %v1754_v16, 1326507024  ;;  %v1383_v3 = vsel %vm1260_vm11, %v1382_v60, %v5765_v50  ;;  %v1507_v48 = vadd.s32 %v4286_v55, %v4280_v2 }
 0x1ef   :  { %vm1756_vm3 = vcmp.lt.s32.totalorder %v4501_v52, 2  ;;  %v1769_v25 = vsel %vm1757_vm2, %v1751_v59, %v1768_v43  ;;  %v1381_v46 = vsel %vm1260_vm11, %v1380_v27, %v1379_v33  ;;  %v1529_v57 = vshll.u32 %v1528_v7, 23 }
 0x1f0   :  { %v1770_v49 = vsel %vm1756_vm3, %v1767_v47, %v1769_v25  ;;  %v1772_v56 = vand.u32 65535, %v4539_v37  ;;  %v1766_v51 = vsel %vm1756_vm3, %v1763_v4, %v1765_v0  ;;  %v1773_v31 = vshrl.u32 %v4539_v37, 16 }
 0x1f1   :  { %v1774_v2 = vand.u32 65535, %v1770_v49  ;;  %v1775_v55 = vshrl.u32 %v1770_v49, 16  ;;  %v1236_v41 = vmul.f32 %v1235_v10, %v4425_v19  ;;  %v1385_v59 = vsel %vm4519_vm15, 0, %v1383_v3 }
 0x1f2   :  { %v1525_v6 = vshrl.u32 %v1507_v48, %v1523_v8  ;;  %v1672_v33 = vsub.s32 0, %v4547_v58  ;;  %v4581_v22 = vsel %vm4519_vm15, %v5761_v63, %v1381_v46  ;;  %vm1671_vm5 = vcmp.lt.s32.totalorder %v4547_v58, 0 }
 0x1f3   :  { %v1777_v24 = vmul.u32 %v1775_v55, %v1772_v56  ;;  %v1778_v32 = vmul.u32 %v1774_v2, %v1773_v31  ;;  %v1243_v16 = vmul.f32 %v1242_v34, %v4425_v19  ;;  %v1524_v10 = vshll.u32 %v4396_v11, %v4489_v54 }
 0x1f4   :  { %v1530_v50 = vor.u32 4788187, %v1529_v57  ;;  %v1797_v60 = vshrl.u32 %v1766_v51, 16  ;;  %v4587_v14 = vadd.s32 3, %v1385_v59  ;;  %v1776_v27 = vmul.u32 %v1774_v2, %v1772_v56  ;;  %v5766_v57 = vld [vmem:[#allocation33_spill] sm:$0xff] }
 0x1f5   :  { %v1780_v7 = vshll.u32 %v1777_v24, 16  ;;  %v1796_v8 = vand.u32 65535, %v1766_v51  ;;  %v4589_v47 = vadd.f32 1.0, %v1236_v41  ;;  %v4593_v53 = vmul.f32 %v4581_v22, %v4581_v22 }
 0x1f6   :  { %v1526_v4 = vor.u32 %v1525_v6, %v1524_v10  ;;  %v1673_v0 = vsel %vm1671_vm5, %v1672_v33, %v4547_v58  ;;  %v1779_v19 = vmul.u32 %v1775_v55, %v1773_v31  ;;  %v1782_v34 = vshll.u32 %v1778_v32, 16 }
 0x1f7   :  { %vm1784_vm7 = vc.u32 %v1776_v27, %v1780_v7  ;;  %v1786_v11 = vadd.s32 %v1780_v7, %v1776_v27  ;;  %v1244_v54 = vadd.f32 1.0, %v1243_v16  ;;  %v1531_v43 = vand.u32 2147483647, %v1530_v50 }
 0x1f8   :  { %v1785_v3 = vsel %vm1784_vm7, 1, %v5715_v40  ;;  %v1799_v48 = vmul.u32 %v1797_v60, %v1772_v56  ;;  %v1800_v46 = vmul.u32 %v1796_v8, %v1773_v31  ;;  %v1881_v49 = vand.u32 2139095040, %v5766_v57 }
 0x1f9   :  { %v1787_v25 = vadd.s32 %v1785_v3, %v1779_v19  ;;  %vm1788_vm8 = vc.u32 %v1786_v11, %v1782_v34  ;;  %v1674_v51 = vclz %v1673_v0  ;;  %v1798_v41 = vmul.u32 %v1796_v8, %v1772_v56  ;;  %v5767_v3 = vld [vmem:[#allocation16_spill] sm:$0xff] }
 0x1fa   :  { %v1789_v2 = vsel %vm1788_vm8, 1, %v5715_v40  ;;  %v1802_v59 = vshll.u32 %v1799_v48, 16  ;;  %v1394_v55 = vmul.f32 -0.00019511016, %v4593_v53  ;;  %v1533_v6 = vcvt.s32.f32 %v1526_v4 }
 0x1fb   :  { %v1781_v33 = vshrl.u32 %v1777_v24, 16  ;;  %v1791_v10 = vadd.s32 %v1789_v2, %v1787_v25  ;;  %v1801_v16 = vmul.u32 %v1797_v60, %v1773_v31  ;;  %v1804_v50 = vshll.u32 %v1800_v46, 16 }
 0x1fc   :  { %vm1806_vm9 = vc.u32 %v1798_v41, %v1802_v59  ;;  %v1808_v27 = vadd.s32 %v1802_v59, %v1798_v41  ;;  %v1534_v7 = vmul.f32 %v1533_v6, %v1531_v43  ;;  %v1882_v11 = vshrl.u32 %v1881_v49, 23 }
 0x1fd   :  { %v1792_v19 = vadd.s32 %v1791_v10, %v1781_v33  ;;  %v1807_v34 = vsel %vm1806_vm9, 1, %v5715_v40  ;;  %vm1415_vm10 = vcmp.lt.s32.totalorder %v5767_v3, 0  ;;  %v2754_v0 = vadd.s32 4294967294, %v1674_v51 }
 0x1fe   :  { %v1760_v56 = vsel %vm1758_vm0, %v4525_v39, 2102212464  ;;  %v1809_v8 = vadd.s32 %v1807_v34, %v1801_v16  ;;  %vm1810_vm4 = vc.u32 %v1808_v27, %v1804_v50  ;;  %v1739_v31 = vshrl.u32 %v5721_v21, %v4478_v29 }
 0x1ff   :  { %v1783_v24 = vshrl.u32 %v1778_v32, 16  ;;  %v1811_v60 = vsel %vm1810_vm4, 1, %v5715_v40  ;;  %v2759_v4 = vadd.s32 4294967169, %v1882_v11  ;;  %v1245_v43 = vmul.f32 %v1244_v54, %v4408_v36 }
 0x200   :  { %v1387_v25 = vmul.f32 -0.001358992, %v4593_v53  ;;  %v1803_v49 = vshrl.u32 %v1799_v48, 16  ;;  %v1813_v2 = vadd.s32 %v1811_v60, %v1809_v8  ;;  %v5768_v51 = vand.u32 2147483647, %v5767_v3 }
 0x201   :  { %v1759_v29 = vsel %vm1755_vm1, %v1739_v31, %v4528_v12  ;;  %v1761_v39 = vsel %vm1757_vm2, %v4523_v17, %v1760_v56  ;;  %v4622_v32 = vadd.s32 %v1792_v19, %v1783_v24  ;;  %v1888_v36 = vadd.s32 1, %v2759_v4 }
 0x202   :  { %vm4612_vm12 = vcmp.le.f32.partialorder %v5768_v51, 0.7853982  ;;  %v1395_v54 = vadd.f32 0.008332121, %v1394_v55  ;;  %vm2755_vm14 = vcmp.lt.s32.totalorder %v2754_v0, 0  ;;  %v1805_v48 = vshrl.u32 %v1800_v46, 16 }
 0x203   :  { %v1814_v59 = vadd.s32 %v1813_v2, %v1803_v49  ;;  %v1254_v6 = vxor.u32 2147483648, %v4589_v47  ;;  %v1535_v33 = vxor.u32 2147483648, %v1534_v7  ;;  %v4625_v10 = vadd.s32 %v1808_v27, %v1804_v50 }
 0x204   :  { %vm1889_vm6 = vcmp.gt.s32.totalorder %v1888_v36, 0  ;;  %v1251_v16 = vxor.u32 2147483648, %v1245_v43  ;;  %v1762_v12 = vsel %vm1756_vm3, %v1759_v29, %v1761_v39  ;;  %v1388_v17 = vadd.f32 0.041655596, %v1387_v25 }
 0x205   :  { %v1815_v34 = vadd.s32 %v1814_v59, %v1805_v48  ;;  %v1890_v11 = vsel %vm1889_vm6, %v1888_v36, 0  ;;  %v4629_v19 = vsel %vm2755_vm14, 0, %v2754_v0  ;;  %vm1818_vm13 = vc.u32 %v4622_v32, %v4625_v10 }
 0x206   :  { %v1892_v46 = vand.u32 31, %v1890_v11  ;;  %vm1249_vm11 = vcmp.lt.s32.totalorder %v4515_v62, 2  ;;  %v1396_v55 = vmul.f32 %v1395_v54, %v4593_v53  ;;  %v5672_v27 = vand.u32 2147483647, %v5766_v57 }
 0x207   :  { %v1819_v50 = vadd.s32 1, %v1815_v34  ;;  %vm1250_vm15 = vcmp.eq.s32.totalorder %v4515_v62, 0  ;;  %v1536_v52 = vsel %vm1415_vm10, %v1535_v33, %v1534_v7  ;;  %v1816_v56 = vmul.u32 %v4539_v37, %v1762_v12 }
 0x208   :  { %v4640_v0 = vsub.s32 32, %v1892_v46  ;;  %vm1253_vm0 = vcmp.eq.s32.totalorder %v4515_v62, 2  ;;  %v4644_v8 = vand.u32 3, %v4587_v14  ;;  %v1682_v31 = vsub.s32 4294967266, %v4629_v19 }
 0x209   :  { %v1820_v24 = vsel %vm1818_vm13, %v1819_v50, %v1815_v34  ;;  %v1252_v60 = vsel %vm1250_vm15, %v4589_v47, %v1251_v16  ;;  %v1255_v4 = vsel %vm1253_vm0, %v1254_v6, %v1245_v43  ;;  %v1389_v25 = vmul.f32 %v1388_v17, %v4593_v53 }
 0x20a   :  { %v1821_v49 = vadd.s32 %v1820_v24, %v1816_v56  ;;  %v1397_v2 = vadd.f32 -0.16666654, %v1396_v55  ;;  %v4652_v37 = vsel %vm4612_vm12, %v5767_v3, %v1536_v52  ;;  %v1885_v7 = vand.u32 8388607, %v5672_v27 }
 0x20b   :  { %v1905_v14 = vshrl.u32 %v5722_v9, %v4640_v0  ;;  %v1896_v51 = vshrl.u32 %v5719_v61, %v4640_v0  ;;  %v1899_v47 = vshrl.u32 %v5720_v26, %v4640_v0  ;;  %v1902_v43 = vshrl.u32 %v5718_v45, %v4640_v0 }
 0x20c   :  { %v1904_v29 = vshll.u32 %v5718_v45, %v1892_v46  ;;  %v1683_v39 = vadd.s32 127, %v1682_v31  ;;  %v1822_v36 = vadd.s32 536870912, %v1821_v49  ;;  %v4665_v54 = vshrl.u32 %v1890_v11, 5 }
 0x20d   :  { %v1895_v48 = vshll.u32 %v5721_v21, %v1892_v46  ;;  %v1898_v59 = vshll.u32 %v5719_v61, %v1892_v46  ;;  %v1901_v6 = vshll.u32 %v5720_v26, %v1892_v46  ;;  %v1908_v16 = vshrl.u32 %v5702_v5, %v4640_v0 }
 0x20e   :  { %v1906_v33 = vor.u32 %v1905_v14, %v1904_v29  ;;  %v4674_v12 = vsel %vm1249_vm11, %v1252_v60, %v1255_v4  ;;  %v1398_v34 = vmul.f32 %v1397_v2, %v4593_v53  ;;  %v4679_v11 = vmul.f32 %v4652_v37, %v4652_v37 }
 0x20f   :  { %v1678_v17 = vsub.s32 32, %v4629_v19  ;;  %v4682_v55 = vor.u32 %v1896_v51, %v1895_v48  ;;  %v4684_v50 = vor.u32 %v1899_v47, %v1898_v59  ;;  %v4686_v52 = vor.u32 %v1902_v43, %v1901_v6 }
 0x210   :  { %v1907_v56 = vshll.u32 %v5722_v9, %v1892_v46  ;;  %v1390_v31 = vadd.f32 -0.4999988, %v1389_v25  ;;  %v4689_v62 = vshrl.u32 %v1822_v36, 30  ;;  %v1886_v24 = vor.u32 8388608, %v1885_v7 }
 0x211   :  { %vm1913_vm1 = vcmp.lt.s32.totalorder %v4665_v54, 4  ;;  %v1662_v60 = vadd.s32 %v4458_v30, %v4456_v18  ;;  %v1684_v4 = vshll.u32 %v1683_v39, 23  ;;  %v1399_v51 = vadd.f32 1.0, %v1398_v34 }
 0x212   :  { %v1909_v2 = vor.u32 %v1908_v16, %v1907_v56  ;;  %v1919_v14 = vsel %vm1913_vm1, %v1906_v33, 920167782  ;;  %v1537_v47 = vsub.s32 4, %v4347_v20  ;;  %vm1910_vm2 = vcmp.lt.s32.totalorder %v4665_v54, 1 }
 0x213   :  { %vm1912_vm3 = vcmp.lt.s32.totalorder %v4665_v54, 3  ;;  %v1542_v46 = vmul.f32 -0.001358992, %v4679_v11  ;;  %v1680_v25 = vshrl.u32 %v1662_v60, %v1678_v17  ;;  %v1918_v18 = vsel %vm1910_vm2, %v4682_v55, %v4684_v50 }
 0x214   :  { %v1920_v30 = vsel %vm1912_vm3, %v4686_v52, %v1919_v14  ;;  %v1391_v7 = vmul.f32 %v1390_v31, %v4593_v53  ;;  %v1824_v43 = vshll.u32 %v4689_v62, 30  ;;  %v1922_v29 = vsel %vm1910_vm2, %v4684_v50, %v4686_v52 }
 0x215   :  { %v4713_v39 = vshll.u32 %v1886_v24, 8  ;;  %v1679_v36 = vshll.u32 %v4547_v58, %v4629_v19  ;;  %v1685_v48 = vor.u32 4788187, %v1684_v4  ;;  %vm1911_vm5 = vcmp.lt.s32.totalorder %v4665_v54, 2 }
 0x216   :  { %v1923_v59 = vsel %vm1913_vm1, %v1909_v2, 1326507024  ;;  %v4721_v53 = vmul.f32 %v1399_v51, %v4581_v22  ;;  %v4726_v6 = vsel %vm1415_vm10, %v1537_v47, %v4347_v20  ;;  %v1921_v16 = vsel %vm1911_vm5, %v1918_v18, %v1920_v30  ;;  %v5771_v30 = vld [vmem:[#allocation18_spill] sm:$0xff] }
 0x217   :  { %v1924_v58 = vsel %vm1912_vm3, %v1906_v33, %v1923_v59  ;;  %v1543_v19 = vadd.f32 0.041655596, %v1542_v46  ;;  %v1549_v34 = vmul.f32 -0.00019511016, %v4679_v11  ;;  %v1681_v17 = vor.u32 %v1680_v25, %v1679_v36 }
 0x218   :  { %v1925_v56 = vsel %vm1911_vm5, %v1922_v29, %v1924_v58  ;;  %v4735_v22 = vsub.s32 %v1821_v49, %v1824_v43  ;;  %v1927_v31 = vand.u32 65535, %v4713_v39  ;;  %v1686_v60 = vand.u32 2147483647, %v1685_v48 }
 0x219   :  { %v1929_v24 = vand.u32 65535, %v1925_v56  ;;  %v1930_v20 = vshrl.u32 %v1925_v56, 16  ;;  %v1928_v4 = vshrl.u32 %v4713_v39, 16  ;;  %v1951_v2 = vand.u32 65535, %v1921_v16 }
 0x21a   :  { %v1952_v14 = vshrl.u32 %v1921_v16, 16  ;;  %v4739_v51 = vadd.f32 1.0, %v1391_v7  ;;  %v1406_v33 = vxor.u32 2147483648, %v4721_v53  ;;  %v1540_v47 = vsel %vm4612_vm12, 0, %v4726_v6 }
 0x21b   :  { %v1932_v46 = vmul.u32 %v1930_v20, %v1927_v31  ;;  %v1688_v49 = vcvt.s32.f32 %v1681_v17  ;;  %v1933_v25 = vmul.u32 %v1929_v24, %v1928_v4  ;;  %v2036_v43 = vand.u32 2139095040, %v5771_v30 }
 0x21c   :  { %v1954_v18 = vmul.u32 %v1952_v14, %v1927_v31  ;;  %v1550_v29 = vadd.f32 0.008332121, %v1549_v34  ;;  %v1827_v36 = vsub.s32 0, %v4735_v22  ;;  %v1931_v48 = vmul.u32 %v1929_v24, %v1927_v31 }
 0x21d   :  { %v1935_v59 = vshll.u32 %v1932_v46, 16  ;;  %v1544_v7 = vmul.f32 %v1543_v19, %v4679_v11  ;;  %v1689_v16 = vmul.f32 %v1688_v49, %v1686_v60  ;;  %vm1826_vm7 = vcmp.lt.s32.totalorder %v4735_v22, 0 }
 0x21e   :  { %v1955_v58 = vmul.u32 %v1951_v2, %v1928_v4  ;;  %v1934_v56 = vmul.u32 %v1930_v20, %v1928_v4  ;;  %v1937_v41 = vshll.u32 %v1933_v25, 16  ;;  %vm1405_vm9 = vcmp.eq.s32.totalorder %v4644_v8, 0 }
 0x21f   :  { %vm1939_vm8 = vc.u32 %v1931_v48, %v1935_v59  ;;  %v1941_v6 = vadd.s32 %v1935_v59, %v1931_v48  ;;  %v1953_v27 = vmul.u32 %v1951_v2, %v1927_v31  ;;  %v1957_v34 = vshll.u32 %v1954_v18, 16 }
 0x220   :  { %v1940_v17 = vsel %vm1939_vm8, 1, %v5715_v40  ;;  %v2037_v1 = vshrl.u32 %v2036_v43, 23  ;;  %vm1570_vm10 = vcmp.lt.s32.totalorder %v5751_v44, 0  ;;  %v1828_v24 = vsel %vm1826_vm7, %v1827_v36, %v4735_v22 }
 0x221   :  { %v1942_v19 = vadd.s32 %v1940_v17, %v1934_v56  ;;  %vm1943_vm4 = vc.u32 %v1941_v6, %v1937_v41  ;;  %v1956_v60 = vmul.u32 %v1952_v14, %v1928_v4  ;;  %v1959_v20 = vshll.u32 %v1955_v58, 16 }
 0x222   :  { %v1944_v49 = vsel %vm1943_vm4, 1, %v5715_v40  ;;  %vm1961_vm12 = vc.u32 %v1953_v27, %v1957_v34  ;;  %v1963_v15 = vadd.s32 %v1957_v34, %v1953_v27  ;;  %v1894_v48 = vshrl.u32 %v5721_v21, %v4640_v0 }
 0x223   :  { %v1936_v59 = vshrl.u32 %v1932_v46, 16  ;;  %v1946_v42 = vadd.s32 %v1944_v49, %v1942_v19  ;;  %v1962_v31 = vsel %vm1961_vm12, 1, %v5715_v40  ;;  %vm1408_vm14 = vcmp.eq.s32.totalorder %v4644_v8, 2 }
 0x224   :  { %v5772_v2 = vand.u32 2147483647, %v5751_v44  ;;  %v1829_v4 = vclz %v1828_v24  ;;  %v1915_v27 = vsel %vm1913_vm1, %v4686_v52, 2102212464  ;;  %v1964_v14 = vadd.s32 %v1962_v31, %v1956_v60 }
 0x225   :  { %vm1965_vm13 = vc.u32 %v1963_v15, %v1959_v20  ;;  %vm1246_vm11 = vweird.f32 %v5755_v13  ;;  %vm1404_vm15 = vcmp.lt.s32.totalorder %v4644_v8, 2  ;;  %v1938_v0 = vshrl.u32 %v1933_v25, 16 }
 0x226   :  { %vm4760_vm6 = vcmp.le.f32.partialorder %v5772_v2, 0.7853982  ;;  %v1947_v46 = vadd.s32 %v1946_v42, %v1936_v59  ;;  %v1966_v36 = vsel %vm1965_vm13, 1, %v5715_v40  ;;  %v2762_v56 = vadd.s32 4294967169, %v2037_v1 }
 0x227   :  { %v1551_v41 = vmul.f32 %v1550_v29, %v4679_v11  ;;  %v1690_v6 = vxor.u32 2147483648, %v1689_v16  ;;  %v1958_v17 = vshrl.u32 %v1954_v18, 16  ;;  %v1968_v34 = vadd.s32 %v1966_v36, %v1964_v14 }
 0x228   :  { %v1914_v52 = vsel %vm1910_vm2, %v1894_v48, %v4682_v55  ;;  %v1916_v24 = vsel %vm1912_vm3, %v4684_v50, %v1915_v27  ;;  %v4777_v19 = vadd.s32 %v1947_v46, %v1938_v0  ;;  %v2043_v25 = vadd.s32 1, %v2762_v56 }
 0x229   :  { %v1557_v42 = vadd.s32 3, %v1540_v47  ;;  %v2757_v60 = vadd.s32 4294967294, %v1829_v4  ;;  %v1960_v49 = vshrl.u32 %v1955_v58, 16  ;;  %v1969_v1 = vadd.s32 %v1968_v34, %v1958_v17 }
 0x22a   :  { %v1407_v18 = vsel %vm1405_vm9, %v4739_v51, %v1406_v33  ;;  %v1409_v29 = vxor.u32 2147483648, %v4739_v51  ;;  %v4783_v59 = vadd.s32 %v1963_v15, %v1959_v20  ;;  %vm2044_vm0 = vcmp.gt.s32.totalorder %v2043_v25, 0 }
 0x22b   :  { %v1691_v55 = vsel %vm1570_vm10, %v1690_v6, %v1689_v16  ;;  %v1917_v50 = vsel %vm1911_vm5, %v1914_v52, %v1916_v24  ;;  %v1970_v48 = vadd.s32 %v1969_v1, %v1960_v49  ;;  %v2045_v47 = vsel %vm2044_vm0, %v2043_v25, 0 }
 0x22c   :  { %v1545_v31 = vadd.f32 -0.4999988, %v1544_v7  ;;  %v1552_v58 = vadd.f32 -0.16666654, %v1551_v41  ;;  %vm1973_vm1 = vc.u32 %v4777_v19, %v4783_v59  ;;  %v2047_v2 = vand.u32 31, %v2045_v47 }
 0x22d   :  { %v1692_v33 = vsub.s32 4, %v4507_v38  ;;  %vm2758_vm2 = vcmp.lt.s32.totalorder %v2757_v60, 0  ;;  %v1974_v15 = vadd.s32 1, %v1970_v48  ;;  %v5675_v51 = vand.u32 2147483647, %v5771_v30 }
 0x22e   :  { %v1410_v16 = vsel %vm1408_vm14, %v1409_v29, %v4721_v53  ;;  %v4799_v54 = vsel %vm4760_vm6, %v5751_v44, %v1691_v55  ;;  %v1971_v7 = vmul.u32 %v4713_v39, %v1917_v50  ;;  %v4802_v20 = vsub.s32 32, %v2047_v2 }
 0x22f   :  { %v4807_v4 = vsel %vm1246_vm11, nan, %v4674_v12  ;;  %v4811_v27 = vsel %vm1404_vm15, %v1407_v18, %v1410_v16  ;;  %v4813_v14 = vand.u32 3, %v1557_v42  ;;  %v1975_v53 = vsel %vm1973_vm1, %v1974_v15, %v1970_v48 }
 0x230   :  { %5775 = vst [vmem:[#allocation25_spill] sm:$0xff] %v4807_v4  ;;  %v1546_v0 = vmul.f32 %v1545_v31, %v4679_v11  ;;  %v1553_v46 = vmul.f32 %v1552_v58, %v4679_v11  ;;  %v4817_v36 = vsel %vm2758_vm2, 0, %v2757_v60  ;;  %v1976_v39 = vadd.s32 %v1975_v53, %v1971_v7 }
 0x231   :  { %5776 = vst [vmem:[#allocation20_spill] sm:$0xff] %v4811_v27  ;;  %v1693_v13 = vsel %vm1570_vm10, %v1692_v33, %v4507_v38  ;;  %v4824_v12 = vmul.f32 %v4799_v54, %v4799_v54  ;;  %v2040_v8 = vand.u32 8388607, %v5675_v51  ;;  %v2060_v56 = vshrl.u32 %v5722_v9, %v4802_v20 }
 0x232   :  { %v1977_v41 = vadd.s32 536870912, %v1976_v39  ;;  %v2054_v11 = vshrl.u32 %v5720_v26, %v4802_v20  ;;  %v2057_v6 = vshrl.u32 %v5718_v45, %v4802_v20  ;;  %v2059_v17 = vshll.u32 %v5718_v45, %v2047_v2 }
 0x233   :  { %v1837_v38 = vsub.s32 4294967266, %v4817_v36  ;;  %v4836_v34 = vshrl.u32 %v2045_v47, 5  ;;  %v2051_v52 = vshrl.u32 %v5719_v61, %v4802_v20  ;;  %v2063_v24 = vshrl.u32 %v5702_v5, %v4802_v20 }
 0x234   :  { %v4842_v25 = vshrl.u32 %v1977_v41, 30  ;;  %v2053_v42 = vshll.u32 %v5719_v61, %v2047_v2  ;;  %v2056_v60 = vshll.u32 %v5720_v26, %v2047_v2  ;;  %v2061_v49 = vor.u32 %v2060_v56, %v2059_v17 }
 0x235   :  { %v1695_v1 = vsel %vm4760_vm6, 0, %v1693_v13  ;;  %v2041_v18 = vor.u32 8388608, %v2040_v8  ;;  %v2050_v29 = vshll.u32 %v5721_v21, %v2047_v2  ;;  %v2062_v55 = vshll.u32 %v5722_v9, %v2047_v2 }
 0x236   :  { %v1697_v50 = vmul.f32 -0.001358992, %v4824_v12  ;;  %v1979_v48 = vshll.u32 %v4842_v25, 30  ;;  %v4852_v47 = vor.u32 %v2054_v11, %v2053_v42  ;;  %v4854_v31 = vor.u32 %v2057_v6, %v2056_v60 }
 0x237   :  { %v1838_v58 = vadd.s32 127, %v1837_v38  ;;  %v4856_v33 = vor.u32 %v2051_v52, %v2050_v29  ;;  %v2064_v15 = vor.u32 %v2063_v24, %v2062_v55  ;;  %vm2068_vm3 = vcmp.lt.s32.totalorder %v4836_v34, 4 }
 0x238   :  { %v4859_v43 = vadd.f32 1.0, %v1546_v0  ;;  %v1704_v16 = vmul.f32 -0.00019511016, %v4824_v12  ;;  %v4862_v7 = vsub.s32 %v1976_v39, %v1979_v48  ;;  %v2074_v2 = vsel %vm2068_vm3, %v2061_v49, 920167782 }
 0x239   :  { %v1554_v53 = vadd.f32 1.0, %v1553_v46  ;;  %v1833_v13 = vsub.s32 32, %v4817_v36  ;;  %vm2065_vm5 = vcmp.lt.s32.totalorder %v4836_v34, 1  ;;  %v4868_v8 = vshll.u32 %v2041_v18, 8 }
 0x23a   :  { %v1698_v56 = vadd.f32 0.041655596, %v1697_v50  ;;  %v1817_v41 = vadd.s32 %v4625_v10, %v4622_v32  ;;  %vm2067_vm7 = vcmp.lt.s32.totalorder %v4836_v34, 3  ;;  %v2077_v0 = vsel %vm2065_vm5, %v4852_v47, %v4854_v31 }
 0x23b   :  { %v1839_v39 = vshll.u32 %v1838_v58, 23  ;;  %v2073_v46 = vsel %vm2065_vm5, %v4856_v33, %v4852_v47  ;;  %v2075_v11 = vsel %vm2067_vm7, %v4854_v31, %v2074_v2  ;;  %v2078_v32 = vsel %vm2068_vm3, %v2064_v15, 1326507024 }
 0x23c   :  { %v1705_v10 = vadd.f32 0.008332121, %v1704_v16  ;;  %v1982_v6 = vsub.s32 0, %v4862_v7  ;;  %vm2066_vm8 = vcmp.lt.s32.totalorder %v4836_v34, 2  ;;  %v2079_v17 = vsel %vm2067_vm7, %v2061_v49, %v2078_v32 }
 0x23d   :  { %v1835_v38 = vshrl.u32 %v1817_v41, %v1833_v13  ;;  %vm1981_vm9 = vcmp.lt.s32.totalorder %v4862_v7, 0  ;;  %v2080_v52 = vsel %vm2066_vm8, %v2077_v0, %v2079_v17  ;;  %v2082_v24 = vand.u32 65535, %v4868_v8 }
 0x23e   :  { %v2076_v42 = vsel %vm2066_vm8, %v2073_v46, %v2075_v11  ;;  %v2083_v60 = vshrl.u32 %v4868_v8, 16  ;;  %v2084_v18 = vand.u32 65535, %v2080_v52  ;;  %v2085_v29 = vshrl.u32 %v2080_v52, 16 }
 0x23f   :  { %v4898_v55 = vmul.f32 %v1554_v53, %v4652_v37  ;;  %v1699_v49 = vmul.f32 %v1698_v56, %v4824_v12  ;;  %v1834_v50 = vshll.u32 %v4735_v22, %v4817_v36  ;;  %v1840_v48 = vor.u32 4788187, %v1839_v39  ;;  %v5777_v56 = vld [vmem:[#allocation22_spill] sm:$0xff] }
 0x240   :  { %v4903_v58 = vadd.s32 3, %v1695_v1  ;;  %v1983_v15 = vsel %vm1981_vm9, %v1982_v6, %v4862_v7  ;;  %v2087_v16 = vmul.u32 %v2085_v29, %v2082_v24  ;;  %v2088_v2 = vmul.u32 %v2084_v18, %v2083_v60 }
 0x241   :  { %v1706_v41 = vmul.f32 %v1705_v10, %v4824_v12  ;;  %v1836_v0 = vor.u32 %v1835_v38, %v1834_v50  ;;  %v2107_v46 = vshrl.u32 %v2076_v42, 16  ;;  %v2086_v37 = vmul.u32 %v2084_v18, %v2082_v24 }
 0x242   :  { %v2090_v53 = vshll.u32 %v2087_v16, 16  ;;  %v2106_v11 = vand.u32 65535, %v2076_v42  ;;  %v2191_v32 = vand.u32 2139095040, %v5777_v56  ;;  %v1700_v36 = vadd.f32 -0.4999988, %v1699_v49 }
 0x243   :  { %v1841_v1 = vand.u32 2147483647, %v1840_v48  ;;  %v1984_v39 = vclz %v1983_v15  ;;  %v2089_v17 = vmul.u32 %v2085_v29, %v2083_v60  ;;  %v2092_v6 = vshll.u32 %v2088_v2, 16 }
 0x244   :  { %vm2094_vm10 = vc.u32 %v2086_v37, %v2090_v53  ;;  %v2096_v52 = vadd.s32 %v2090_v53, %v2086_v37  ;;  %v1707_v51 = vadd.f32 -0.16666654, %v1706_v41  ;;  %v1843_v13 = vcvt.s32.f32 %v1836_v0 }
 0x245   :  { %v2095_v10 = vsel %vm2094_vm10, 1, %v5715_v40  ;;  %v2109_v38 = vmul.u32 %v2107_v46, %v2082_v24  ;;  %v2110_v18 = vmul.u32 %v2106_v11, %v2083_v60  ;;  %v2192_v42 = vshrl.u32 %v2191_v32, 23 }
 0x246   :  { %v2097_v50 = vadd.s32 %v2095_v10, %v2089_v17  ;;  %vm2098_vm4 = vc.u32 %v2096_v52, %v2092_v6  ;;  %v1847_v27 = vsub.s32 4, %v4689_v62  ;;  %v2108_v49 = vmul.u32 %v2106_v11, %v2082_v24 }
 0x247   :  { %v2099_v22 = vsel %vm2098_vm4, 1, %v5715_v40  ;;  %v2112_v48 = vshll.u32 %v2109_v38, 16  ;;  %vm1725_vm12 = vcmp.lt.s32.totalorder %v5759_v28, 0  ;;  %v1844_v29 = vmul.f32 %v1843_v13, %v1841_v1 }
 0x248   :  { %v2760_v15 = vadd.s32 4294967294, %v1984_v39  ;;  %v2091_v37 = vshrl.u32 %v2087_v16, 16  ;;  %v2101_v41 = vadd.s32 %v2099_v22, %v2097_v50  ;;  %vm1563_vm14 = vcmp.eq.s32.totalorder %v4813_v14, 2 }
 0x249   :  { %v2111_v0 = vmul.u32 %v2107_v46, %v2083_v60  ;;  %v2114_v53 = vshll.u32 %v2110_v18, 16  ;;  %vm2116_vm6 = vc.u32 %v2108_v49, %v2112_v48  ;;  %v2118_v17 = vadd.s32 %v2112_v48, %v2108_v49 }
 0x24a   :  { %vm1560_vm13 = vcmp.eq.s32.totalorder %v4813_v14, 0  ;;  %v1708_v32 = vmul.f32 %v1707_v51, %v4824_v12  ;;  %v2102_v6 = vadd.s32 %v2101_v41, %v2091_v37  ;;  %v2117_v24 = vsel %vm2116_vm6, 1, %v5715_v40 }
 0x24b   :  { %v2765_v11 = vadd.s32 4294967169, %v2192_v42  ;;  %v5778_v52 = vand.u32 2147483647, %v5759_v28  ;;  %v2049_v60 = vshrl.u32 %v5721_v21, %v4802_v20  ;;  %v2070_v16 = vsel %vm2068_vm3, %v4854_v31, 2102212464 }
 0x24c   :  { %v2119_v46 = vadd.s32 %v2117_v24, %v2111_v0  ;;  %vm2120_vm15 = vc.u32 %v2118_v17, %v2114_v53  ;;  %vm2761_vm0 = vcmp.lt.s32.totalorder %v2760_v15, 0  ;;  %v2093_v51 = vshrl.u32 %v2088_v2, 16 }
 0x24d   :  { %vm4920_vm11 = vcmp.le.f32.partialorder %v5778_v52, 0.7853982  ;;  %v2121_v22 = vsel %vm2120_vm15, 1, %v5715_v40  ;;  %v2198_v1 = vadd.s32 1, %v2765_v11  ;;  %v1701_v39 = vmul.f32 %v1700_v36, %v4824_v12 }
 0x24e   :  { %v1845_v10 = vxor.u32 2147483648, %v1844_v29  ;;  %v2113_v50 = vshrl.u32 %v2109_v38, 16  ;;  %v2123_v42 = vadd.s32 %v2121_v22, %v2119_v46  ;;  %v2069_v20 = vsel %vm2065_vm5, %v2049_v60, %v4856_v33 }
 0x24f   :  { %v2071_v31 = vsel %vm2067_vm7, %v4852_v47, %v2070_v16  ;;  %v4937_v49 = vadd.s32 %v2102_v6, %v2093_v51  ;;  %vm2199_vm1 = vcmp.gt.s32.totalorder %v2198_v1, 0  ;;  %v4939_v2 = vsel %vm2761_vm0, 0, %v2760_v15 }
 0x250   :  { %v2115_v48 = vshrl.u32 %v2110_v18, 16  ;;  %v2124_v37 = vadd.s32 %v2123_v42, %v2113_v50  ;;  %v2200_v41 = vsel %vm2199_vm1, %v2198_v1, 0  ;;  %v1709_v12 = vadd.f32 1.0, %v1708_v32 }
 0x251   :  { %v4941_v36 = vadd.s32 %v2118_v17, %v2114_v53  ;;  %v5676_v38 = vand.u32 2147483647, %v5777_v56  ;;  %v2202_v0 = vand.u32 31, %v2200_v41  ;;  %v4945_v33 = vand.u32 3, %v4903_v58 }
 0x252   :  { %v1846_v47 = vsel %vm1725_vm12, %v1845_v10, %v1844_v29  ;;  %v2072_v6 = vsel %vm2066_vm8, %v2069_v20, %v2071_v31  ;;  %v2125_v15 = vadd.s32 %v2124_v37, %v2115_v48  ;;  %v5781_v18 = vxor.u32 2147483648, %v4859_v43 }
 0x253   :  { %v1992_v17 = vsub.s32 4294967266, %v4939_v2  ;;  %vm2128_vm2 = vc.u32 %v4937_v49, %v4941_v36  ;;  %v4961_v58 = vsub.s32 32, %v2202_v0  ;;  %v5782_v29 = vxor.u32 2147483648, %v4898_v55 }
 0x254   :  { %v4956_v53 = vsel %vm1563_vm14, %v5781_v18, %v4898_v55  ;;  %v4970_v32 = vadd.f32 1.0, %v1701_v39  ;;  %v4975_v24 = vsel %vm1725_vm12, %v1847_v27, %v4689_v62  ;;  %v2129_v11 = vadd.s32 1, %v2125_v15 }
 0x255   :  { %v4968_v34 = vsel %vm1560_vm13, %v4859_v43, %v5782_v29  ;;  %v4978_v52 = vmul.f32 %v1709_v12, %v4799_v54  ;;  %v4983_v55 = vsel %vm4920_vm11, %v5759_v28, %v1846_v47  ;;  %v2126_v60 = vmul.u32 %v4868_v8, %v2072_v6 }
 0x256   :  { %v2195_v43 = vand.u32 8388607, %v5676_v38  ;;  %v2130_v16 = vsel %vm2128_vm2, %v2129_v11, %v2125_v15  ;;  %v2209_v46 = vshrl.u32 %v5720_v26, %v4961_v58  ;;  %v2212_v62 = vshrl.u32 %v5718_v45, %v4961_v58 }
 0x257   :  { %v2215_v54 = vshrl.u32 %v5722_v9, %v4961_v58  ;;  %v1993_v27 = vadd.s32 127, %v1992_v17  ;;  %v2131_v51 = vadd.s32 %v2130_v16, %v2126_v60  ;;  %v2206_v22 = vshrl.u32 %v5719_v61, %v4961_v58 }
 0x258   :  { %v2214_v8 = vshll.u32 %v5718_v45, %v2202_v0  ;;  %v4997_v1 = vshrl.u32 %v2200_v41, 5  ;;  %v2205_v39 = vshll.u32 %v5721_v21, %v2202_v0  ;;  %v2208_v10 = vshll.u32 %v5719_v61, %v2202_v0 }
 0x259   :  { %v2211_v50 = vshll.u32 %v5720_v26, %v2202_v0  ;;  %v2132_v42 = vadd.s32 536870912, %v2131_v51  ;;  %v2217_v31 = vshll.u32 %v5722_v9, %v2202_v0  ;;  %v2218_v48 = vshrl.u32 %v5702_v5, %v4961_v58 }
 0x25a   :  { %v2216_v20 = vor.u32 %v2215_v54, %v2214_v8  ;;  %vm1559_vm3 = vcmp.lt.s32.totalorder %v4813_v14, 2  ;;  %v1988_v37 = vsub.s32 32, %v4939_v2  ;;  %v2196_v12 = vor.u32 8388608, %v2195_v43 }
 0x25b   :  { %v5007_v41 = vor.u32 %v2209_v46, %v2208_v10  ;;  %v5009_v47 = vor.u32 %v2212_v62, %v2211_v50  ;;  %v1719_v6 = vxor.u32 2147483648, %v4970_v32  ;;  %v5012_v15 = vshrl.u32 %v2132_v42, 30 }
 0x25c   :  { %v5014_v18 = vor.u32 %v2206_v22, %v2205_v39  ;;  %v2219_v17 = vor.u32 %v2218_v48, %v2217_v31  ;;  %vm1715_vm5 = vcmp.eq.s32.totalorder %v4945_v33, 0  ;;  %v1716_v0 = vxor.u32 2147483648, %v4978_v52 }
 0x25d   :  { %vm1718_vm7 = vcmp.eq.s32.totalorder %v4945_v33, 2  ;;  %v1972_v29 = vadd.s32 %v4783_v59, %v4777_v19  ;;  %v1994_v11 = vshll.u32 %v1993_v27, 23  ;;  %vm2223_vm8 = vcmp.lt.s32.totalorder %v4997_v1, 4 }
 0x25e   :  { %v5024_v60 = vmul.f32 %v4983_v55, %v4983_v55  ;;  %v2134_v43 = vshll.u32 %v5012_v15, 30  ;;  %vm2220_vm9 = vcmp.lt.s32.totalorder %v4997_v1, 1  ;;  %v2229_v16 = vsel %vm2223_vm8, %v2216_v20, 920167782 }
 0x25f   :  { %v1990_v46 = vshrl.u32 %v1972_v29, %v1988_v37  ;;  %vm2222_vm10 = vcmp.lt.s32.totalorder %v4997_v1, 3  ;;  %v2232_v19 = vsel %vm2220_vm9, %v5007_v41, %v5009_v47  ;;  %v5035_v59 = vshll.u32 %v2196_v12, 8 }
 0x260   :  { %v5037_v62 = vsub.s32 %v2131_v51, %v2134_v43  ;;  %v2228_v54 = vsel %vm2220_vm9, %v5014_v18, %v5007_v41  ;;  %v2230_v27 = vsel %vm2222_vm10, %v5009_v47, %v2229_v16  ;;  %v2233_v22 = vsel %vm2223_vm8, %v2219_v17, 1326507024 }
 0x261   :  { %v1989_v8 = vshll.u32 %v4862_v7, %v4939_v2  ;;  %v1995_v39 = vor.u32 4788187, %v1994_v11  ;;  %vm2221_vm4 = vcmp.lt.s32.totalorder %v4997_v1, 2  ;;  %v2234_v51 = vsel %vm2222_vm10, %v2216_v20, %v2233_v22 }
 0x262   :  { %vm1714_vm12 = vcmp.lt.s32.totalorder %v4945_v33, 2  ;;  %v1852_v10 = vmul.f32 -0.001358992, %v5024_v60  ;;  %vm2136_vm14 = vcmp.lt.s32.totalorder %v5037_v62, 0  ;;  %v2137_v50 = vsub.s32 0, %v5037_v62 }
 0x263   :  { %v2235_v42 = vsel %vm2221_vm4, %v2232_v19, %v2234_v51  ;;  %v1991_v31 = vor.u32 %v1990_v46, %v1989_v8  ;;  %v2231_v7 = vsel %vm2221_vm4, %v2228_v54, %v2230_v27  ;;  %v5065_v20 = vsel %vm1559_vm3, %v4968_v34, %v4956_v53 }
 0x264   :  { %v2239_v2 = vand.u32 65535, %v2235_v42  ;;  %v2240_v48 = vshrl.u32 %v2235_v42, 16  ;;  %v1859_v37 = vmul.f32 -0.00019511016, %v5024_v60  ;;  %v2138_v12 = vsel %vm2136_vm14, %v2137_v50, %v5037_v62 }
 0x265   :  { %v2237_v17 = vand.u32 65535, %v5035_v59  ;;  %v1850_v29 = vsel %vm4920_vm11, 0, %v4975_v24  ;;  %v1996_v11 = vand.u32 2147483647, %v1995_v39  ;;  %v2139_v43 = vclz %v2138_v12 }
 0x266   :  { %v2238_v16 = vshrl.u32 %v5035_v59, 16  ;;  %v1717_v14 = vsel %vm1715_vm5, %v4970_v32, %v1716_v0  ;;  %v1720_v53 = vsel %vm1718_vm7, %v1719_v6, %v4978_v52  ;;  %v2262_v46 = vshrl.u32 %v2231_v7, 16 }
 0x267   :  { %v2242_v34 = vmul.u32 %v2240_v48, %v2237_v17  ;;  %v1853_v19 = vadd.f32 0.041655596, %v1852_v10  ;;  %v1998_v54 = vcvt.s32.f32 %v1991_v31  ;;  %v2763_v27 = vadd.s32 4294967294, %v2139_v43 }
 0x268   :  { %v2243_v22 = vmul.u32 %v2239_v2, %v2238_v16  ;;  %v1860_v13 = vadd.f32 0.008332121, %v1859_v37  ;;  %v2241_v24 = vmul.u32 %v2239_v2, %v2237_v17  ;;  %v2261_v39 = vand.u32 65535, %v2231_v7  ;;  %v5783_v37 = vld [vmem:[#allocation28_spill] sm:$0xff] }
 0x269   :  { %v2245_v8 = vshll.u32 %v2242_v34, 16  ;;  %v1999_v51 = vmul.f32 %v1998_v54, %v1996_v11  ;;  %vm2764_vm6 = vcmp.lt.s32.totalorder %v2763_v27, 0  ;;  %v2244_v50 = vmul.u32 %v2240_v48, %v2238_v16 }
 0x26a   :  { %v2247_v42 = vshll.u32 %v2243_v22, 16  ;;  %vm1880_vm13 = vcmp.lt.s32.totalorder %v5766_v57, 0  ;;  %v5081_v32 = vsel %vm2764_vm6, 0, %v2763_v27  ;;  %v2264_v6 = vmul.u32 %v2262_v46, %v2237_v17 }
 0x26b   :  { %vm2249_vm11 = vc.u32 %v2241_v24, %v2245_v8  ;;  %v2251_v52 = vadd.s32 %v2245_v8, %v2241_v24  ;;  %v5085_v0 = vsel %vm1714_vm12, %v1717_v14, %v1720_v53  ;;  %v1854_v10 = vmul.f32 %v1853_v19, %v5024_v60 }
 0x26c   :  { %v1867_v31 = vadd.s32 3, %v1850_v29  ;;  %v2250_v7 = vsel %vm2249_vm11, 1, %v5715_v40  ;;  %v2265_v48 = vmul.u32 %v2261_v39, %v2238_v16  ;;  %v2346_v12 = vand.u32 2139095040, %v5783_v37 }
 0x26d   :  { %v2252_v2 = vadd.s32 %v2250_v7, %v2244_v50  ;;  %vm2253_vm15 = vc.u32 %v2251_v52, %v2247_v42  ;;  %v5784_v11 = vand.u32 2147483647, %v5766_v57  ;;  %v2147_v33 = vsub.s32 4294967266, %v5081_v32 }
 0x26e   :  { %v2254_v14 = vsel %vm2253_vm15, 1, %v5715_v40  ;;  %v2263_v53 = vmul.u32 %v2261_v39, %v2237_v17  ;;  %v2267_v19 = vshll.u32 %v2264_v6, 16  ;;  %v1861_v29 = vmul.f32 %v1860_v13, %v5024_v60 }
 0x26f   :  { %vm5092_vm0 = vcmp.le.f32.partialorder %v5784_v11, 0.7853982  ;;  %v2000_v54 = vxor.u32 2147483648, %v1999_v51  ;;  %v2246_v27 = vshrl.u32 %v2242_v34, 16  ;;  %v2256_v24 = vadd.s32 %v2254_v14, %v2252_v2 }
 0x270   :  { %v2266_v8 = vmul.u32 %v2262_v46, %v2238_v16  ;;  %v2269_v50 = vshll.u32 %v2265_v48, 16  ;;  %vm2271_vm1 = vc.u32 %v2263_v53, %v2267_v19  ;;  %v2273_v42 = vadd.s32 %v2267_v19, %v2263_v53 }
 0x271   :  { %v1855_v52 = vadd.f32 -0.4999988, %v1854_v10  ;;  %v2257_v7 = vadd.s32 %v2256_v24, %v2246_v27  ;;  %v2272_v11 = vsel %vm2271_vm1, 1, %v5715_v40  ;;  %v2347_v38 = vshrl.u32 %v2346_v12, 23 }
 0x272   :  { %vm1556_vm2 = vweird.f32 %v5767_v3  ;;  %v2148_v4 = vadd.s32 127, %v2147_v33  ;;  %v2225_v17 = vsel %vm2223_vm8, %v5009_v47, 2102212464  ;;  %v2274_v13 = vadd.s32 %v2272_v11, %v2266_v8 }
 0x273   :  { %vm2275_vm3 = vc.u32 %v2273_v42, %v2269_v50  ;;  %vm1711_vm5 = vweird.f32 %v5751_v44  ;;  %v2204_v16 = vshrl.u32 %v5721_v21, %v4961_v58  ;;  %v2248_v34 = vshrl.u32 %v2243_v22, 16 }
 0x274   :  { %v2276_v46 = vsel %vm2275_vm3, 1, %v5715_v40  ;;  %v2768_v39 = vadd.s32 4294967169, %v2347_v38  ;;  %v2001_v10 = vsel %vm1880_vm13, %v2000_v54, %v1999_v51  ;;  %v2143_v2 = vsub.s32 32, %v5081_v32 }
 0x275   :  { %v2268_v12 = vshrl.u32 %v2264_v6, 16  ;;  %v2278_v33 = vadd.s32 %v2276_v46, %v2274_v13  ;;  %v2224_v47 = vsel %vm2220_vm9, %v2204_v16, %v5014_v18  ;;  %v2226_v14 = vsel %vm2222_vm10, %v5007_v41, %v2225_v17 }
 0x276   :  { %v5117_v58 = vadd.s32 %v2257_v7, %v2248_v34  ;;  %v2353_v22 = vadd.s32 1, %v2768_v39  ;;  %v2127_v38 = vadd.s32 %v4941_v36, %v4937_v49  ;;  %v2149_v53 = vshll.u32 %v2148_v4, 23 }
 0x277   :  { %v2270_v51 = vshrl.u32 %v2265_v48, 16  ;;  %v2279_v19 = vadd.s32 %v2278_v33, %v2268_v12  ;;  %v1862_v54 = vadd.f32 -0.16666654, %v1861_v29  ;;  %v5124_v6 = vsel %vm5092_vm0, %v5766_v57, %v2001_v10 }
 0x278   :  { %v5126_v18 = vadd.s32 %v2273_v42, %v2269_v50  ;;  %vm2354_vm7 = vcmp.gt.s32.totalorder %v2353_v22, 0  ;;  %v2145_v27 = vshrl.u32 %v2127_v38, %v2143_v2  ;;  %v2227_v41 = vsel %vm2221_vm4, %v2224_v47, %v2226_v14 }
 0x279   :  { %v2280_v24 = vadd.s32 %v2279_v19, %v2270_v51  ;;  %v2355_v8 = vsel %vm2354_vm7, %v2353_v22, 0  ;;  %v2002_v49 = vsub.s32 4, %v4842_v25  ;;  %v5677_v4 = vand.u32 2147483647, %v5783_v37 }
 0x27a   :  { %vm2283_vm8 = vc.u32 %v5117_v58, %v5126_v18  ;;  %v2357_v36 = vand.u32 31, %v2355_v8  ;;  %v5136_v48 = vmul.f32 %v5124_v6, %v5124_v6  ;;  %v2144_v29 = vshll.u32 %v5037_v62, %v5081_v32 }
 0x27b   :  { %v2150_v50 = vor.u32 4788187, %v2149_v53  ;;  %v2284_v1 = vadd.s32 1, %v2280_v24  ;;  %v5143_v42 = vsel %vm1556_vm2, nan, %v5065_v20  ;;  %v5145_v7 = vand.u32 3, %v1867_v31 }
 0x27c   :  { %v2281_v11 = vmul.u32 %v5035_v59, %v2227_v41  ;;  %v5148_v17 = vsub.s32 32, %v2357_v36  ;;  %v5153_v13 = vsel %vm1711_vm5, nan, %v5085_v0  ;;  %v1856_v62 = vmul.f32 %v1855_v52, %v5024_v60 }
 0x27d   :  { %5787 = vst [vmem:[#allocation7_spill] sm:$0xff] %v5153_v13  ;;  %v2146_v32 = vor.u32 %v2145_v27, %v2144_v29  ;;  %v2285_v16 = vsel %vm2283_vm8, %v2284_v1, %v2280_v24  ;;  %v1863_v34 = vmul.f32 %v1862_v54, %v5024_v60  ;;  %v2003_v3 = vsel %vm1880_vm13, %v2002_v49, %v4842_v25 }
 0x27e   :  { %v2286_v20 = vadd.s32 %v2285_v16, %v2281_v11  ;;  %v2350_v59 = vand.u32 8388607, %v5677_v4  ;;  %v2014_v31 = vmul.f32 -0.00019511016, %v5136_v48  ;;  %v2151_v46 = vand.u32 2147483647, %v2150_v50 }
 0x27f   :  { %v2361_v44 = vshrl.u32 %v5719_v61, %v5148_v17  ;;  %v2370_v0 = vshrl.u32 %v5722_v9, %v5148_v17  ;;  %v2364_v60 = vshrl.u32 %v5720_v26, %v5148_v17  ;;  %v2367_v25 = vshrl.u32 %v5718_v45, %v5148_v17 }
 0x280   :  { %v2287_v52 = vadd.s32 536870912, %v2286_v20  ;;  %v2369_v39 = vshll.u32 %v5718_v45, %v2357_v36  ;;  %v2153_v10 = vcvt.s32.f32 %v2146_v32  ;;  %v5172_v2 = vshrl.u32 %v2355_v8, 5 }
 0x281   :  { %v2360_v12 = vshll.u32 %v5721_v21, %v2357_v36  ;;  %v2363_v33 = vshll.u32 %v5719_v61, %v2357_v36  ;;  %vm2035_vm9 = vcmp.lt.s32.totalorder %v5771_v30, 0  ;;  %v2366_v14 = vshll.u32 %v5720_v26, %v2357_v36 }
 0x282   :  { %v5177_v47 = vshrl.u32 %v2287_v52, 30  ;;  %v2371_v22 = vor.u32 %v2370_v0, %v2369_v39  ;;  %v2373_v38 = vshrl.u32 %v5702_v5, %v5148_v17  ;;  %v2005_v53 = vsel %vm5092_vm0, 0, %v2003_v3 }
 0x283   :  { %v2007_v51 = vmul.f32 -0.001358992, %v5136_v48  ;;  %v2154_v19 = vmul.f32 %v2153_v10, %v2151_v46  ;;  %v5185_v54 = vor.u32 %v2361_v44, %v2360_v12  ;;  %v5188_v41 = vor.u32 %v2364_v60, %v2363_v33 }
 0x284   :  { %v2289_v27 = vshll.u32 %v5177_v47, 30  ;;  %v5190_v24 = vor.u32 %v2367_v25, %v2366_v14  ;;  %v2372_v8 = vshll.u32 %v5722_v9, %v2357_v36  ;;  %v5193_v49 = vadd.f32 1.0, %v1856_v62 }
 0x285   :  { %v2015_v29 = vadd.f32 0.008332121, %v2014_v31  ;;  %v5788_v50 = vand.u32 2147483647, %v5771_v30  ;;  %v2351_v1 = vor.u32 8388608, %v2350_v59  ;;  %vm2378_vm4 = vcmp.lt.s32.totalorder %v5172_v2, 4 }
 0x286   :  { %v1864_v11 = vadd.f32 1.0, %v1863_v34  ;;  %v2290_v32 = vsub.s32 %v2286_v20, %v2289_v27  ;;  %v2374_v16 = vor.u32 %v2373_v38, %v2372_v8  ;;  %v2384_v3 = vsel %vm2378_vm4, %v2371_v22, 920167782 }
 0x287   :  { %vm5197_vm10 = vcmp.le.f32.partialorder %v5788_v50, 0.7853982  ;;  %v2008_v46 = vadd.f32 0.041655596, %v2007_v51  ;;  %v2155_v36 = vxor.u32 2147483648, %v2154_v19  ;;  %vm2375_vm12 = vcmp.lt.s32.totalorder %v5172_v2, 1 }
 0x288   :  { %vm2377_vm14 = vcmp.lt.s32.totalorder %v5172_v2, 3  ;;  %vm2291_vm6 = vcmp.lt.s32.totalorder %v2290_v32, 0  ;;  %v2292_v62 = vsub.s32 0, %v2290_v32  ;;  %v2383_v59 = vsel %vm2375_vm12, %v5185_v54, %v5188_v41 }
 0x289   :  { %v2385_v34 = vsel %vm2377_vm14, %v5190_v24, %v2384_v3  ;;  %v2016_v20 = vmul.f32 %v2015_v29, %v5136_v48  ;;  %v5214_v31 = vadd.s32 3, %v2005_v53  ;;  %v2387_v44 = vsel %vm2375_vm12, %v5188_v41, %v5190_v24  ;;  %v5791_v53 = vld [vmem:[#allocation35_spill] sm:$0xff] }
 0x28a   :  { %v5220_v0 = vshll.u32 %v2351_v1, 8  ;;  %v5223_v52 = vmul.f32 %v1864_v11, %v4983_v55  ;;  %v2293_v60 = vsel %vm2291_vm6, %v2292_v62, %v2290_v32  ;;  %vm2376_vm13 = vcmp.lt.s32.totalorder %v5172_v2, 2 }
 0x28b   :  { %v2388_v25 = vsel %vm2378_vm4, %v2374_v16, 1326507024  ;;  %v2156_v39 = vsel %vm2035_vm9, %v2155_v36, %v2154_v19  ;;  %v2294_v10 = vclz %v2293_v60  ;;  %v2386_v12 = vsel %vm2376_vm13, %v2383_v59, %v2385_v34 }
 0x28c   :  { %v2389_v33 = vsel %vm2377_vm14, %v2371_v22, %v2388_v25  ;;  %v5236_v55 = vmul.f32 %v2008_v46, %v5136_v48  ;;  %v2501_v51 = vand.u32 2139095040, %v5791_v53  ;;  %v5241_v27 = vadd.f32 -0.16666654, %v2016_v20 }
 0x28d   :  { %v2390_v38 = vsel %vm2376_vm13, %v2387_v44, %v2389_v33  ;;  %v2766_v19 = vadd.s32 4294967294, %v2294_v10  ;;  %v2392_v8 = vand.u32 65535, %v5220_v0  ;;  %v5247_v22 = vsel %vm5197_vm10, %v5771_v30, %v2156_v39 }
 0x28e   :  { %v2394_v29 = vand.u32 65535, %v2390_v38  ;;  %v2393_v50 = vshrl.u32 %v5220_v0, 16  ;;  %v2395_v1 = vshrl.u32 %v2390_v38, 16  ;;  %v2416_v11 = vand.u32 65535, %v2386_v12 }
 0x28f   :  { %v2282_v3 = vadd.s32 %v5126_v18, %v5117_v58  ;;  %vm2767_vm11 = vcmp.lt.s32.totalorder %v2766_v19, 0  ;;  %v2417_v46 = vshrl.u32 %v2386_v12, 16  ;;  %v2502_v34 = vshrl.u32 %v2501_v51, 23 }
 0x290   :  { %v2297_v36 = vsel %vm2767_vm11, 0, %v2766_v19  ;;  %v2397_v62 = vmul.u32 %v2395_v1, %v2392_v8  ;;  %v2398_v59 = vmul.u32 %v2394_v29, %v2393_v50  ;;  %v5255_v20 = vmul.f32 %v5247_v22, %v5247_v22 }
 0x291   :  { %v2298_v44 = vsub.s32 32, %v2297_v36  ;;  %v2302_v60 = vsub.s32 4294967266, %v2297_v36  ;;  %v2359_v25 = vshrl.u32 %v5721_v21, %v5148_v17  ;;  %v2396_v39 = vmul.u32 %v2394_v29, %v2392_v8 }
 0x292   :  { %v2400_v10 = vshll.u32 %v2397_v62, 16  ;;  %v2418_v33 = vmul.u32 %v2416_v11, %v2392_v8  ;;  %v2420_v38 = vmul.u32 %v2416_v11, %v2393_v50  ;;  %v2299_v58 = vshll.u32 %v2290_v32, %v2297_v36 }
 0x293   :  { %v2300_v18 = vshrl.u32 %v2282_v3, %v2298_v44  ;;  %v2303_v12 = vadd.s32 127, %v2302_v60  ;;  %v2419_v19 = vmul.u32 %v2417_v46, %v2392_v8  ;;  %v2399_v14 = vmul.u32 %v2395_v1, %v2393_v50 }
 0x294   :  { %v2402_v4 = vshll.u32 %v2398_v59, 16  ;;  %vm2404_vm15 = vc.u32 %v2396_v39, %v2400_v10  ;;  %v2406_v51 = vadd.s32 %v2400_v10, %v2396_v39  ;;  %vm2190_vm0 = vcmp.lt.s32.totalorder %v5777_v56, 0 }
 0x295   :  { %v2301_v16 = vor.u32 %v2300_v18, %v2299_v58  ;;  %v2304_v57 = vshll.u32 %v2303_v12, 23  ;;  %v2405_v13 = vsel %vm2404_vm15, 1, %v5715_v40  ;;  %v2422_v28 = vshll.u32 %v2419_v19, 16 }
 0x296   :  { %v2401_v17 = vshrl.u32 %v2397_v62, 16  ;;  %v2407_v29 = vadd.s32 %v2405_v13, %v2399_v14  ;;  %vm2408_vm1 = vc.u32 %v2406_v51, %v2402_v4  ;;  %v2421_v63 = vmul.u32 %v2417_v46, %v2393_v50 }
 0x297   :  { %v2305_v11 = vor.u32 4788187, %v2304_v57  ;;  %v2409_v32 = vsel %vm2408_vm1, 1, %v5715_v40  ;;  %v2424_v3 = vshll.u32 %v2420_v38, 16  ;;  %vm2426_vm2 = vc.u32 %v2418_v33, %v2422_v28 }
 0x298   :  { %v2411_v8 = vadd.s32 %v2409_v32, %v2407_v29  ;;  %v2427_v1 = vsel %vm2426_vm2, 1, %v5715_v40  ;;  %v2428_v36 = vadd.s32 %v2422_v28, %v2418_v33  ;;  %v2771_v44 = vadd.s32 4294967169, %v2502_v34 }
 0x299   :  { %v2169_v60 = vmul.f32 -0.00019511016, %v5255_v20  ;;  %v5792_v39 = vand.u32 2147483647, %v5777_v56  ;;  %v2306_v4 = vand.u32 2147483647, %v2305_v11  ;;  %v2308_v13 = vcvt.s32.f32 %v2301_v16 }
 0x29a   :  { %v2429_v57 = vadd.s32 %v2427_v1, %v2421_v63  ;;  %v2380_v14 = vsel %vm2378_vm4, %v5190_v24, 2102212464  ;;  %v2412_v50 = vadd.s32 %v2411_v8, %v2401_v17  ;;  %vm2430_vm5 = vc.u32 %v2428_v36, %v2424_v3 }
 0x29b   :  { %vm5266_vm3 = vcmp.le.f32.partialorder %v5792_v39, 0.7853982  ;;  %v2508_v46 = vadd.s32 1, %v2771_v44  ;;  %v2309_v28 = vmul.f32 %v2308_v13, %v2306_v4  ;;  %v2403_v62 = vshrl.u32 %v2398_v59, 16 }
 0x29c   :  { %v2431_v34 = vsel %vm2430_vm5, 1, %v5715_v40  ;;  %v5681_v33 = vand.u32 2147483647, %v5791_v53  ;;  %v2379_v58 = vsel %vm2375_vm12, %v2359_v25, %v5185_v54  ;;  %v2423_v18 = vshrl.u32 %v2419_v19, 16 }
 0x29d   :  { %v2433_v16 = vadd.s32 %v2431_v34, %v2429_v57  ;;  %vm2509_vm7 = vcmp.gt.s32.totalorder %v2508_v46, 0  ;;  %v2310_v63 = vxor.u32 2147483648, %v2309_v28  ;;  %v2381_v24 = vsel %vm2377_vm14, %v5188_v41, %v2380_v14 }
 0x29e   :  { %v5281_v12 = vadd.s32 %v2412_v50, %v2403_v62  ;;  %v2510_v51 = vsel %vm2509_vm7, %v2508_v46, 0  ;;  %v2162_v59 = vmul.f32 -0.001358992, %v5255_v20  ;;  %v2170_v17 = vadd.f32 0.008332121, %v2169_v60 }
 0x29f   :  { %v2425_v29 = vshrl.u32 %v2420_v38, 16  ;;  %v2434_v11 = vadd.s32 %v2433_v16, %v2423_v18  ;;  %v5285_v32 = vand.u32 3, %v5214_v31  ;;  %v2311_v54 = vsel %vm2190_vm0, %v2310_v63, %v2309_v28 }
 0x2a0   :  { %v5289_v25 = vadd.s32 %v2428_v36, %v2424_v3  ;;  %v2512_v19 = vand.u32 31, %v2510_v51  ;;  %v2010_v8 = vadd.f32 -0.4999988, %v5236_v55  ;;  %v2018_v41 = vmul.f32 %v5241_v27, %v5136_v48 }
 0x2a1   :  { %v2382_v1 = vsel %vm2376_vm13, %v2379_v58, %v2381_v24  ;;  %v2435_v44 = vadd.s32 %v2434_v11, %v2425_v29  ;;  %v5795_v38 = vsub.s32 4, %v5012_v15  ;;  %v2505_v3 = vand.u32 8388607, %v5681_v33 }
 0x2a2   :  { %vm2438_vm8 = vc.u32 %v5281_v12, %v5289_v25  ;;  %v5305_v55 = vsub.s32 32, %v2512_v19  ;;  %v2163_v36 = vadd.f32 0.041655596, %v2162_v59  ;;  %v2171_v27 = vmul.f32 %v2170_v17, %v5255_v20 }
 0x2a3   :  { %v2158_v31 = vsel %vm2035_vm9, %v5795_v38, %v5012_v15  ;;  %v5311_v2 = vsel %vm5266_vm3, %v5777_v56, %v2311_v54  ;;  %v2439_v60 = vadd.s32 1, %v2435_v44  ;;  %v2436_v39 = vmul.u32 %v5220_v0, %v2382_v1 }
 0x2a4   :  { %v5314_v15 = vshrl.u32 %v2510_v51, 5  ;;  %v2516_v4 = vshrl.u32 %v5719_v61, %v5305_v55  ;;  %v2524_v13 = vshll.u32 %v5718_v45, %v2512_v19  ;;  %v2519_v14 = vshrl.u32 %v5720_v26, %v5305_v55 }
 0x2a5   :  { %v2440_v57 = vsel %vm2438_vm8, %v2439_v60, %v2435_v44  ;;  %v2522_v50 = vshrl.u32 %v5718_v45, %v5305_v55  ;;  %v2525_v46 = vshrl.u32 %v5722_v9, %v5305_v55  ;;  %v5327_v0 = vmul.f32 %v5311_v2, %v5311_v2 }
 0x2a6   :  { %v2441_v28 = vadd.s32 %v2440_v57, %v2436_v39  ;;  %v2518_v62 = vshll.u32 %v5719_v61, %v2512_v19  ;;  %v2521_v34 = vshll.u32 %v5720_v26, %v2512_v19  ;;  %v2515_v58 = vshll.u32 %v5721_v21, %v2512_v19 }
 0x2a7   :  { %v2526_v18 = vor.u32 %v2525_v46, %v2524_v13  ;;  %v2527_v16 = vshll.u32 %v5722_v9, %v2512_v19  ;;  %v2528_v45 = vshrl.u32 %v5702_v5, %v5305_v55  ;;  %v2172_v63 = vadd.f32 -0.16666654, %v2171_v27 }
 0x2a8   :  { %v2442_v24 = vadd.s32 536870912, %v2441_v28  ;;  %v5335_v51 = vor.u32 %v2519_v14, %v2518_v62  ;;  %v5337_v59 = vor.u32 %v2522_v50, %v2521_v34  ;;  %v2160_v17 = vsel %vm5197_vm10, 0, %v2158_v31 }
 0x2a9   :  { %v2506_v61 = vor.u32 8388608, %v2505_v3  ;;  %v5341_v29 = vor.u32 %v2516_v4, %v2515_v58  ;;  %v2529_v26 = vor.u32 %v2528_v45, %v2527_v16  ;;  %v2164_v11 = vmul.f32 %v2163_v36, %v5255_v20 }
 0x2aa   :  { %v2324_v9 = vmul.f32 -0.00019511016, %v5327_v0  ;;  %v5345_v54 = vshrl.u32 %v2442_v24, 30  ;;  %vm2533_vm9 = vcmp.lt.s32.totalorder %v5314_v15, 4  ;;  %v2312_v5 = vsub.s32 4, %v5177_v47 }
 0x2ab   :  { %vm2530_vm4 = vcmp.lt.s32.totalorder %v5314_v15, 1  ;;  %v2539_v43 = vsel %vm2533_vm9, %v2526_v18, 920167782  ;;  %v2543_v19 = vsel %vm2533_vm9, %v2529_v26, 1326507024  ;;  %v2173_v1 = vmul.f32 %v2172_v63, %v5255_v20 }
 0x2ac   :  { %v2444_v44 = vshll.u32 %v5345_v54, 30  ;;  %vm2532_vm10 = vcmp.lt.s32.totalorder %v5314_v15, 3  ;;  %v2542_v38 = vsel %vm2530_vm4, %v5335_v51, %v5337_v59  ;;  %v2538_v31 = vsel %vm2530_vm4, %v5341_v29, %v5335_v51 }
 0x2ad   :  { %v2540_v3 = vsel %vm2532_vm10, %v5337_v59, %v2539_v43  ;;  %v2544_v36 = vsel %vm2532_vm10, %v2526_v18, %v2543_v19  ;;  %v5370_v27 = vshll.u32 %v2506_v61, 8  ;;  %v5373_v60 = vmul.f32 %v2010_v8, %v5136_v48 }
 0x2ae   :  { %v2325_v39 = vadd.f32 0.008332121, %v2324_v9  ;;  %v2445_v4 = vsub.s32 %v2441_v28, %v2444_v44  ;;  %vm2531_vm12 = vcmp.lt.s32.totalorder %v5314_v15, 2  ;;  %v2019_v13 = vadd.f32 1.0, %v2018_v41 }
 0x2af   :  { %v2165_v57 = vadd.f32 -0.4999988, %v2164_v11  ;;  %v2177_v14 = vadd.s32 3, %v2160_v17  ;;  %v2545_v50 = vsel %vm2531_vm12, %v2542_v38, %v2544_v36  ;;  %v5381_v46 = vsel %vm2190_vm0, %v2312_v5, %v5177_v47 }
 0x2b0   :  { %vm2446_vm14 = vcmp.lt.s32.totalorder %v2445_v4, 0  ;;  %v2447_v62 = vsub.s32 0, %v2445_v4  ;;  %v2541_v48 = vsel %vm2531_vm12, %v2538_v31, %v2540_v3  ;;  %v2174_v8 = vadd.f32 1.0, %v2173_v1 }
 0x2b1   :  { %v2547_v28 = vand.u32 65535, %v5370_v27  ;;  %v2549_v34 = vand.u32 65535, %v2545_v50  ;;  %v2550_v41 = vshrl.u32 %v2545_v50, 16  ;;  %v2317_v58 = vmul.f32 -0.001358992, %v5327_v0 }
 0x2b2   :  { %v2326_v18 = vmul.f32 %v2325_v39, %v5327_v0  ;;  %v2448_v16 = vsel %vm2446_vm14, %v2447_v62, %v2445_v4  ;;  %v2548_v45 = vshrl.u32 %v5370_v27, 16  ;;  %v5390_v47 = vmul.f32 %v2019_v13, %v5124_v6 }
 0x2b3   :  { %v2449_v63 = vclz %v2448_v16  ;;  %v2552_v24 = vmul.u32 %v2550_v41, %v2547_v28  ;;  %v2572_v17 = vshrl.u32 %v2541_v48, 16  ;;  %v2166_v61 = vmul.f32 %v2165_v57, %v5255_v20 }
 0x2b4   :  { %v5393_v26 = vand.u32 3, %v2177_v14  ;;  %v2553_v11 = vmul.u32 %v2549_v34, %v2548_v45  ;;  %v2571_v9 = vand.u32 65535, %v2541_v48  ;;  %v5396_v5 = vmul.f32 %v2174_v8, %v5247_v22 }
 0x2b5   :  { %v2437_v6 = vadd.s32 %v5289_v25, %v5281_v12  ;;  %v2769_v19 = vadd.s32 4294967294, %v2449_v63  ;;  %v2318_v1 = vadd.f32 0.041655596, %v2317_v58  ;;  %v2327_v44 = vadd.f32 -0.16666654, %v2326_v18 }
 0x2b6   :  { %v2551_v38 = vmul.u32 %v2549_v34, %v2547_v28  ;;  %v2555_v31 = vshll.u32 %v2552_v24, 16  ;;  %v2554_v20 = vmul.u32 %v2550_v41, %v2548_v45  ;;  %v2557_v3 = vshll.u32 %v2553_v11, 16 }
 0x2b7   :  { %vm2770_vm6 = vcmp.lt.s32.totalorder %v2769_v19, 0  ;;  %v2574_v36 = vmul.u32 %v2572_v17, %v2547_v28  ;;  %v2575_v13 = vmul.u32 %v2571_v9, %v2548_v45  ;;  %v2573_v62 = vmul.u32 %v2571_v9, %v2547_v28 }
 0x2b8   :  { %v2452_v39 = vsel %vm2770_vm6, 0, %v2769_v19  ;;  %vm2559_vm13 = vc.u32 %v2551_v38, %v2555_v31  ;;  %v2561_v22 = vadd.s32 %v2555_v31, %v2551_v38  ;;  %v2556_v48 = vshrl.u32 %v2552_v24, 16 }
 0x2b9   :  { %v2453_v57 = vsub.s32 32, %v2452_v39  ;;  %v2457_v14 = vsub.s32 4294967266, %v2452_v39  ;;  %v2560_v50 = vsel %vm2559_vm13, 1, %v5715_v40  ;;  %v2577_v25 = vshll.u32 %v2574_v36, 16 }
 0x2ba   :  { %v2562_v12 = vadd.s32 %v2560_v50, %v2554_v20  ;;  %vm2563_vm11 = vc.u32 %v2561_v22, %v2557_v3  ;;  %v2454_v8 = vshll.u32 %v2445_v4, %v2452_v39  ;;  %v2576_v16 = vmul.u32 %v2572_v17, %v2548_v45 }
 0x2bb   :  { %v2455_v34 = vshrl.u32 %v2437_v6, %v2453_v57  ;;  %v2458_v58 = vadd.s32 127, %v2457_v14  ;;  %v2564_v41 = vsel %vm2563_vm11, 1, %v5715_v40  ;;  %v2579_v63 = vshll.u32 %v2575_v13, 16 }
 0x2bc   :  { %v2566_v18 = vadd.s32 %v2564_v41, %v2562_v12  ;;  %vm2581_vm15 = vc.u32 %v2573_v62, %v2577_v25  ;;  %v2583_v33 = vadd.s32 %v2577_v25, %v2573_v62  ;;  %v2167_v43 = vadd.f32 1.0, %v2166_v61 }
 0x2bd   :  { %v2456_v19 = vor.u32 %v2455_v34, %v2454_v8  ;;  %v2459_v38 = vshll.u32 %v2458_v58, 23  ;;  %v2582_v31 = vsel %vm2581_vm15, 1, %v5715_v40  ;;  %v2319_v28 = vmul.f32 %v2318_v1, %v5327_v0 }
 0x2be   :  { %vm2345_vm0 = vcmp.lt.s32.totalorder %v5783_v37, 0  ;;  %v2567_v24 = vadd.s32 %v2566_v18, %v2556_v48  ;;  %v2584_v4 = vadd.s32 %v2582_v31, %v2576_v16  ;;  %v2181_v9 = vxor.u32 2147483648, %v5396_v5 }
 0x2bf   :  { %v5796_v6 = vand.u32 2147483647, %v5783_v37  ;;  %v2460_v17 = vor.u32 4788187, %v2459_v38  ;;  %v2535_v20 = vsel %vm2533_vm9, %v5337_v59, 2102212464  ;;  %vm2585_vm2 = vc.u32 %v2583_v33, %v2579_v63 }
 0x2c0   :  { %v2328_v61 = vmul.f32 %v2327_v44, %v5327_v0  ;;  %v2514_v1 = vshrl.u32 %v5721_v21, %v5305_v55  ;;  %v2558_v3 = vshrl.u32 %v2553_v11, 16  ;;  %v2586_v39 = vsel %vm2585_vm2, 1, %v5715_v40 }
 0x2c1   :  { %vm5411_vm1 = vcmp.le.f32.partialorder %v5796_v6, 0.7853982  ;;  %vm2179_vm5 = vcmp.lt.s32.totalorder %v5393_v26, 2  ;;  %v2461_v22 = vand.u32 2147483647, %v2460_v17  ;;  %v2463_v57 = vcvt.s32.f32 %v2456_v19  ;;  %v5802_v6 = vld [vmem:[#allocation36_spill] sm:$0xff] }
 0x2c2   :  { %v2578_v14 = vshrl.u32 %v2574_v36, 16  ;;  %v2588_v50 = vadd.s32 %v2586_v39, %v2584_v4  ;;  %v2320_v62 = vadd.f32 -0.4999988, %v2319_v28  ;;  %v2534_v59 = vsel %vm2530_vm4, %v2514_v1, %v5341_v29  ;;  %v5803_v17 = vld [vmem:[#allocation5_spill] sm:$0xff] }
 0x2c3   :  { %v2536_v44 = vsel %vm2532_vm10, %v5335_v51, %v2535_v20  ;;  %v5429_v48 = vadd.s32 %v2567_v24, %v2558_v3  ;;  %vm2180_vm7 = vcmp.eq.s32.totalorder %v5393_v26, 0  ;;  %v2464_v21 = vmul.f32 %v2463_v57, %v2461_v22  ;;  %v5804_v20 = vld [vmem:[#allocation11_spill] sm:$0xff] }
 0x2c4   :  { %v2580_v55 = vshrl.u32 %v2575_v13, 16  ;;  %v2589_v11 = vadd.s32 %v2588_v50, %v2578_v14  ;;  %vm2183_vm8 = vcmp.eq.s32.totalorder %v5393_v26, 2  ;;  %v2329_v36 = vadd.f32 1.0, %v2328_v61  ;;  %v2653_v13 = vld [vmem:[%s5606_s3] sm:$0x1]  ;;  %s2822_s3 = smov [#allocation2]  }
 0x2c5   :  { %v5799_v12 = vsel %vm5266_vm3, 0, %v5381_v46  ;;  %v5437_v29 = vadd.s32 %v2583_v33, %v2579_v63  ;;  %vm1873_vm9 = vcmp.eq.s32.totalorder %v5145_v7, 2  ;;  %v2184_v51 = vxor.u32 2147483648, %v2167_v43  ;;  %s2695_s25 = sshll.u32 %s2822_s3, 4  ;;  %s2696_s25 = int_to_ptr.vmem [resolvable:$true] %s2695_s25 }
 0x2c6   :  { %v2332_v25 = vadd.s32 3, %v5799_v12  ;;  %v2465_v8 = vxor.u32 2147483648, %v2464_v21  ;;  %v2537_v34 = vsel %vm2531_vm12, %v2534_v59, %v2536_v44  ;;  %v2590_v58 = vadd.s32 %v2589_v11, %v2580_v55 }
 0x2c7   :  { %v2182_v41 = vsel %vm2180_vm7, %v2167_v43, %v2181_v9  ;;  %v2321_v10 = vmul.f32 %v2320_v62, %v5327_v0  ;;  %vm2593_vm3 = vc.u32 %v5429_v48, %v5437_v29  ;;  %vm2654_vm4 = vcmp.gt.f32.partialorder %v2653_v13, 0.5 }
 0x2c8   :  { %v2466_v33 = vsel %vm2345_vm0, %v2465_v8, %v2464_v21  ;;  %v2467_v46 = vsub.s32 4, %v5345_v54  ;;  %v2594_v18 = vadd.s32 1, %v2590_v58  ;;  %v2655_v15 = vsel %vm2654_vm4, 1, %v5715_v40  ;;  %v5807_v8 = vld [vmem:[#allocation14_spill] sm:$0xff] }
 0x2c9   :  { %v2330_v16 = vmul.f32 %v2329_v36, %v5311_v2  ;;  %v5456_v43 = vsel %vm5411_vm1, %v5783_v37, %v2466_v33  ;;  %v2591_v0 = vmul.u32 %v5370_v27, %v2537_v34  ;;  %v2656_v63 = vperm.slane %v2655_v15, 0  ;;  %v5809_v33 = vld [vmem:[#allocation6_spill] sm:$0xff]  ;;  %v5810_v15 = vld [vmem:[#allocation15_spill] sm:$0xff] }
 0x2ca   :  { %v2185_v19 = vsel %vm2183_vm8, %v2184_v51, %v5396_v5  ;;  %v2333_v38 = vand.u32 3, %v2332_v25  ;;  %v2471_v31 = vmul.f32 %v5456_v43, %v5456_v43  ;;  %v2595_v28 = vsel %vm2593_vm3, %v2594_v18, %v2590_v58  ;;  %v5806_v25 = vld [vmem:[#allocation13_spill] sm:$0xff] }
 0x2cb   :  { %v2186_v40 = vsel %vm2179_vm5, %v2182_v41, %v2185_v19  ;;  %v2322_v2 = vadd.f32 1.0, %v2321_v10  ;;  %v2596_v24 = vadd.s32 %v2595_v28, %v2591_v0  ;;  %vm5466_vm10 = vcmp.eq.s32.totalorder %v2656_v63, 1  ;;  %v5808_v10 = vld [vmem:[#allocation29_spill] sm:$0xff]  ;;  %v5812_v63 = vld [vmem:[#allocation32_spill] sm:$0xff]  ;;  %v5813_v19 = vld [vmem:[#allocation26_spill] sm:$0xff] }
 0x2cc   :  { %v2472_v27 = vmul.f32 -0.001358992, %v2471_v31  ;;  %v2479_v9 = vmul.f32 -0.00019511016, %v2471_v31  ;;  %v2658_v5 = vsel %vm5466_vm10, %v5803_v17, %v5802_v6  ;;  %v2662_v61 = vsel %vm5466_vm10, %v5804_v20, %v4475_v23 }
 0x2cd   :  { %vm1870_vm12 = vcmp.eq.s32.totalorder %v5145_v7, 0  ;;  %v2336_v26 = vxor.u32 2147483648, %v2330_v16  ;;  %v2468_v1 = vsel %vm2345_vm0, %v2467_v46, %v5345_v54  ;;  %v2597_v3 = vadd.s32 536870912, %v2596_v24 }
 0x2ce   :  { %vm2674_vm14 = vcmask 1031168   ;;  %v1871_v39 = vxor.u32 2147483648, %v5223_v52  ;;  %vm2176_vm6 = vweird.f32 %v5771_v30  ;;  %v2473_v22 = vadd.f32 0.041655596, %v2472_v27 }
 0x2cf   :  { %v2480_v57 = vadd.f32 0.008332121, %v2479_v9  ;;  %2675 = vst.msk [vmem:[#allocation2] sm:$0xff] %vm2674_vm14, %v2658_v5  ;;  %v5805_v23 = vxor.u32 2147483648, %v5193_v49  ;;  %v2187_v50 = vsel %vm2176_vm6, nan, %v2186_v40  ;;  %vm2335_vm13 = vcmp.eq.s32.totalorder %v2333_v38, 0 }
 0x2d0   :  { %v5490_v62 = vshrl.u32 %v2597_v3, 30  ;;  %2679 = vst.msk [vmem:[#allocation2 + $0x20] sm:$0xff] %vm2674_vm14, %v2662_v61  ;;  %vm1869_vm11 = vcmp.lt.s32.totalorder %v5145_v7, 2  ;;  %v2339_v54 = vxor.u32 2147483648, %v2322_v2  ;;  %v2470_v30 = vsel %vm5411_vm1, 0, %v2468_v1  ;;  %v5814_v61 = vld [vmem:[#allocation7_spill] sm:$0xff] }
 0x2d1   :  { %v1875_v14 = vsel %vm1873_vm9, %v5805_v23, %v5223_v52  ;;  %v2474_v59 = vmul.f32 %v2473_v22, %v2471_v31  ;;  %v2481_v44 = vmul.f32 %v2480_v57, %v2471_v31  ;;  %v2012_v21 = vadd.f32 1.0, %v5373_v60  ;;  %v5819_v57 = vld [vmem:[#allocation25_spill] sm:$0xff]  ;;  %v5820_v23 = vld [vmem:[#allocation23_spill] sm:$0xff] }
 0x2d2   :  { %v2026_v55 = vxor.u32 2147483648, %v5390_v47  ;;  %v2337_v11 = vsel %vm2335_vm13, %v2322_v2, %v2336_v26  ;;  %v2599_v52 = vshll.u32 %v5490_v62, 30  ;;  %v2666_v51 = vsel %vm5466_vm10, %v5806_v25, %v5143_v42  ;;  %v5815_v26 = vld [vmem:[#allocation17_spill] sm:$0xff] }
 0x2d3   :  { %v2475_v36 = vadd.f32 -0.4999988, %v2474_v59  ;;  %v2482_v12 = vadd.f32 -0.16666654, %v2481_v44  ;;  %v2670_v45 = vsel %vm5466_vm10, %v5807_v8, %v2187_v50  ;;  %vm2334_vm15 = vcmp.lt.s32.totalorder %v2333_v38, 2  ;;  %2683 = vst.msk [vmem:[#allocation2 + $0x40] sm:$0xff] %vm2674_vm14, %v2666_v51 }
 0x2d4   :  { %vm2338_vm0 = vcmp.eq.s32.totalorder %v2333_v38, 2  ;;  %v2487_v34 = vadd.s32 3, %v2470_v30  ;;  %v5506_v60 = vsub.s32 %v2596_v24, %v2599_v52  ;;  %v2659_v46 = vsel %vm5466_vm10, %v5809_v33, %v5808_v10  ;;  %2687 = vst.msk [vmem:[#allocation2 + $0x60] sm:$0xff] %vm2674_vm14, %v2670_v45  ;;  %v5821_v50 = vld [vmem:[#allocation33_spill] sm:$0xff]  ;;  %v5825_v10 = vld [vmem:[#allocation30_spill] sm:$0xff] }
 0x2d5   :  { %v2340_v58 = vsel %vm2338_vm0, %v2339_v54, %v2330_v16  ;;  %v2476_v13 = vmul.f32 %v2475_v36, %v2471_v31  ;;  %v2483_v41 = vmul.f32 %v2482_v12, %v2471_v31  ;;  %v2663_v0 = vsel %vm5466_vm10, %v5810_v15, %v4533_v35  ;;  %2676 = vst.msk [vmem:[#allocation2 + $0x8] sm:$0xff] %vm2674_vm14, %v2659_v46  ;;  %v5811_v16 = vld [vmem:[#allocation10_spill] sm:$0xff]  ;;  %v5823_v36 = vld [vmem:[#allocation20_spill] sm:$0xff]  ;;  %v5828_v15 = vld [vmem:[#allocation27_spill] sm:$0xff] }
 0x2d6   :  { %v2341_v42 = vsel %vm2334_vm15, %v2337_v11, %v2340_v58  ;;  %vm2601_vm1 = vcmp.lt.s32.totalorder %v5506_v60, 0  ;;  %v2602_v18 = vsub.s32 0, %v5506_v60  ;;  %vm781_vm2 = vweird.f32 %v5811_v16  ;;  %2680 = vst.msk [vmem:[#allocation2 + $0x28] sm:$0xff] %vm2674_vm14, %v2663_v0  ;;  %v5822_v11 = vld [vmem:[#allocation21_spill] sm:$0xff]  ;;  %v5826_v46 = vld [vmem:[#allocation24_spill] sm:$0xff] }
 0x2d7   :  { %vm1401_vm5 = vweird.f32 %v5812_v63  ;;  %vm1866_vm7 = vweird.f32 %v5813_v19  ;;  %v1872_v38 = vsel %vm1870_vm12, %v5193_v49, %v1871_v39  ;;  %v2029_v31 = vxor.u32 2147483648, %v2012_v21  ;;  %v5817_v39 = vld [vmem:[#allocation12_spill] sm:$0xff] }
 0x2d8   :  { %v2477_v28 = vadd.f32 1.0, %v2476_v13  ;;  %v2484_v40 = vadd.f32 1.0, %v2483_v41  ;;  %vm2025_vm8 = vcmp.eq.s32.totalorder %v5285_v32, 0  ;;  %vm2331_vm9 = vweird.f32 %v5777_v56  ;;  %v5824_v13 = vld [vmem:[#allocation9_spill] sm:$0xff] }
 0x2d9   :  { %v2488_v35 = vand.u32 3, %v2487_v34  ;;  %v2603_v2 = vsel %vm2601_vm1, %v2602_v18, %v5506_v60  ;;  %v2027_v24 = vsel %vm2025_vm8, %v2012_v21, %v2026_v55  ;;  %v2342_v27 = vsel %vm2331_vm9, nan, %v2341_v42 }
 0x2da   :  { %v2485_v9 = vmul.f32 %v2484_v40, %v5456_v43  ;;  %v2604_v6 = vclz %v2603_v2  ;;  %v1876_v49 = vsel %vm1869_vm11, %v1872_v38, %v1875_v14  ;;  %vm2024_vm3 = vcmp.lt.s32.totalorder %v5285_v32, 2  ;;  %v5816_v43 = vld [vmem:[#allocation19_spill] sm:$0xff] }
 0x2db   :  { %vm2028_vm4 = vcmp.eq.s32.totalorder %v5285_v32, 2  ;;  %v2494_v17 = vxor.u32 2147483648, %v2477_v28  ;;  %v2667_v1 = vsel %vm5466_vm10, %v5815_v26, %v5814_v61  ;;  %vm2490_vm12 = vcmp.eq.s32.totalorder %v2488_v35, 0 }
 0x2dc   :  { %v2030_v5 = vsel %vm2028_vm4, %v2029_v31, %v5390_v47  ;;  %v2491_v20 = vxor.u32 2147483648, %v2485_v9  ;;  %v2772_v56 = vadd.s32 4294967294, %v2604_v6  ;;  %vm2493_vm6 = vcmp.eq.s32.totalorder %v2488_v35, 2  ;;  %2684 = vst.msk [vmem:[#allocation2 + $0x48] sm:$0xff] %vm2674_vm14, %v2667_v1  ;;  %v5818_v47 = vld [vmem:[#allocation8_spill] sm:$0xff] }
 0x2dd   :  { %v2031_v3 = vsel %vm2024_vm3, %v2027_v24, %v2030_v5  ;;  %v2671_v7 = vsel %vm5466_vm10, %v5816_v43, %v2342_v27  ;;  %v2660_v22 = vsel %vm5466_vm10, %v5818_v47, %v5817_v39  ;;  %v2664_v14 = vsel %vm5466_vm10, %v5820_v23, %v5819_v57 }
 0x2de   :  { %v2492_v32 = vsel %vm2490_vm12, %v2477_v28, %v2491_v20  ;;  %vm2773_vm13 = vcmp.lt.s32.totalorder %v2772_v56, 0  ;;  %2688 = vst.msk [vmem:[#allocation2 + $0x68] sm:$0xff] %vm2674_vm14, %v2671_v7  ;;  %vm2021_vm11 = vweird.f32 %v5821_v50  ;;  %vm2489_vm15 = vcmp.lt.s32.totalorder %v2488_v35, 2  ;;  %v5830_v50 = vld [vmem:[#allocation34_spill] sm:$0xff] }
 0x2df   :  { %v2495_v54 = vsel %vm2493_vm6, %v2494_v17, %v2485_v9  ;;  %v2607_v30 = vsel %vm2773_vm13, 0, %v2772_v56  ;;  %2677 = vst.msk [vmem:[#allocation2 + $0x10] sm:$0xff] %vm2674_vm14, %v2660_v22  ;;  %v2592_v44 = vadd.s32 %v5437_v29, %v5429_v48  ;;  %v792_v52 = vsel %vm781_vm2, nan, %v5822_v11 }
 0x2e0   :  { %v2496_v59 = vsel %vm2489_vm15, %v2492_v32, %v2495_v54  ;;  %v2608_v21 = vsub.s32 32, %v2607_v30  ;;  %v2612_v55 = vsub.s32 4294967266, %v2607_v30  ;;  %2681 = vst.msk [vmem:[#allocation2 + $0x30] sm:$0xff] %vm2674_vm14, %v2664_v14  ;;  %v1412_v12 = vsel %vm1401_vm5, nan, %v5823_v36 }
 0x2e1   :  { %v1877_v25 = vsel %vm1866_vm7, nan, %v1876_v49  ;;  %v2032_v51 = vsel %vm2021_vm11, nan, %v2031_v3  ;;  %vm2486_vm0 = vweird.f32 %v5783_v37  ;;  %v2609_v48 = vshll.u32 %v5506_v60, %v2607_v30  ;;  %v5827_v37 = vld [vmem:[#allocation31_spill] sm:$0xff] }
 0x2e2   :  { %v2610_v29 = vshrl.u32 %v2592_v44, %v2608_v21  ;;  %v2613_v8 = vadd.s32 127, %v2612_v55  ;;  %v2497_v45 = vsel %vm2486_vm0, nan, %v2496_v59  ;;  %v2661_v41 = vsel %vm5466_vm10, %v5824_v13, %v792_v52 }
 0x2e3   :  { %v2665_v33 = vsel %vm5466_vm10, %v5825_v10, %v1412_v12  ;;  %v2668_v42 = vsel %vm5466_vm10, %v5826_v46, %v1877_v25  ;;  %v2669_v60 = vsel %vm5466_vm10, %v5827_v37, %v2032_v51  ;;  %2678 = vst.msk [vmem:[#allocation2 + $0x18] sm:$0xff] %vm2674_vm14, %v2661_v41  ;;  %v2672_v0 = vsel %vm5466_vm10, %v5828_v15, %v2497_v45 }
 0x2e4   :  { %v2611_v34 = vor.u32 %v2610_v29, %v2609_v48  ;;  %v2614_v58 = vshll.u32 %v2613_v8, 23  ;;  %2682 = vst.msk [vmem:[#allocation2 + $0x38] sm:$0xff] %vm2674_vm14, %v2665_v33  ;;  %vm2500_vm1 = vcmp.lt.s32.totalorder %v5791_v53, 0  ;;  %v5829_v31 = vand.u32 2147483647, %v5791_v53 }
 0x2e5   :  { %2685 = vst.msk [vmem:[#allocation2 + $0x50] sm:$0xff] %vm2674_vm14, %v2668_v42  ;;  %v2622_v40 = vsub.s32 4, %v5490_v62  ;;  %vm2641_vm9 = vweird.f32 %v5791_v53 }
 0x2e6   :  { %v2615_v18 = vor.u32 4788187, %v2614_v58  ;;  %v2618_v63 = vcvt.s32.f32 %v2611_v34  ;;  %2686 = vst.msk [vmem:[#allocation2 + $0x58] sm:$0xff] %vm2674_vm14, %v2669_v60  ;;  %vm2499_vm2 = vcmp.le.f32.partialorder %v5829_v31, 0.7853982 }
 0x2e7   :  { %2689 = vst.msk [vmem:[#allocation2 + $0x70] sm:$0xff] %vm2674_vm14, %v2672_v0  ;;  %v2623_v9 = vsel %vm2500_vm1, %v2622_v40, %v5490_v62 }
 0x2e8   :  { %v2616_v16 = vand.u32 2147483647, %v2615_v18  ;;  %v2625_v17 = vsel %vm2499_vm2, 0, %v2623_v9 }
 0x2e9   :  { %v2642_v26 = vadd.s32 3, %v2625_v17 }
 0x2ea   :  { %v2619_v19 = vmul.f32 %v2618_v63, %v2616_v16 }
 0x2eb   :  { %v2643_v32 = vand.u32 3, %v2642_v26 }
 0x2ec   :  { %v2620_v38 = vxor.u32 2147483648, %v2619_v19 }
 0x2ed   :  { %vm2645_vm5 = vcmp.eq.s32.totalorder %v2643_v32, 0  ;;  %vm2648_vm7 = vcmp.eq.s32.totalorder %v2643_v32, 2  ;;  %vm2644_vm8 = vcmp.lt.s32.totalorder %v2643_v32, 2 }
 0x2ee   :  { %v2621_v28 = vsel %vm2500_vm1, %v2620_v38, %v2619_v19 }
 0x2ef   :  { %v2624_v35 = vsel %vm2499_vm2, %v5791_v53, %v2621_v28 }
 0x2f0   :  { %v2626_v2 = vmul.f32 %v2624_v35, %v2624_v35 }
 0x2f2   :  { %v2627_v24 = vmul.f32 -0.001358992, %v2626_v2  ;;  %v2634_v27 = vmul.f32 -0.00019511016, %v2626_v2 }
 0x2f4   :  { %v2628_v6 = vadd.f32 0.041655596, %v2627_v24  ;;  %v2635_v49 = vadd.f32 0.008332121, %v2634_v27 }
 0x2f6   :  { %v2629_v5 = vmul.f32 %v2628_v6, %v2626_v2  ;;  %v2636_v20 = vmul.f32 %v2635_v49, %v2626_v2 }
 0x2f8   :  { %v2630_v56 = vadd.f32 -0.4999988, %v2629_v5  ;;  %v2637_v61 = vadd.f32 -0.16666654, %v2636_v20 }
 0x2fa   :  { %v2631_v1 = vmul.f32 %v2630_v56, %v2626_v2  ;;  %v2638_v3 = vmul.f32 %v2637_v61, %v2626_v2 }
 0x2fc   :  { %v2632_v43 = vadd.f32 1.0, %v2631_v1  ;;  %v2639_v7 = vadd.f32 1.0, %v2638_v3 }
 0x2fe   :  { %v2640_v39 = vmul.f32 %v2639_v7, %v2624_v35  ;;  %v2649_v47 = vxor.u32 2147483648, %v2632_v43 }
 0x300   :  { %v2646_v22 = vxor.u32 2147483648, %v2640_v39  ;;  %v2650_v57 = vsel %vm2648_vm7, %v2649_v47, %v2640_v39 }
 0x302   :  { %v2647_v62 = vsel %vm2645_vm5, %v2632_v43, %v2646_v22 }
 0x303   :  { %v2651_v23 = vsel %vm2644_vm8, %v2647_v62, %v2650_v57 }
 0x304   :  { %v2652_v14 = vsel %vm2641_vm9, nan, %v2651_v23 }
 0x305   :  { %v2673_v54 = vsel %vm5466_vm10, %v5830_v50, %v2652_v14 }
 0x306   :  { %2690 = vst.msk [vmem:[#allocation2 + $0x78] sm:$0xff] %vm2674_vm14, %v2673_v54 }
 0x307   :  { %2703 = dma.vmem_to_hbm [thread:$0]  %s2696_s25, 2048, %s2698_s28, [#allocation3], %s2823_s29, %s2823_s29, %s2824_s30  }
 0x308   :  { %2813 = dma.done.wait [#allocation3], 2048  }
 0x309   :  { %2814 = vsyncadd [#allocation3], 4294965248 }
 0x30a   :  { %2708 = vsyncpa [#allocation3], 1 }

</bundles_post_ra>
